<compile_context>
chip_gen: v7x
topology: tpu7x:2x2x1
jax: 0.10.0
libtpu: 0.0.40
codegen_flags: <defaults>
</compile_context>

<pallas_src>
import functools
import math

import jax
import jax.numpy as jnp
from jax.experimental import pallas as pl
from jax.experimental.pallas import tpu as pltpu

# ---- module-level constants from the original file (values assumed) ----
DEPTH = 2                      # fused kernel implements exactly DEPTH == 2
MIN_ATTENTION_SIZE = 8
ATTENTION_EVERY_NTH_LAYER = 2

_EPS = 1e-5


# ===========================  in-kernel helpers  =============================

def _group_tile(v, group):
    """Sum a [1, group*C] row over its `group` lane blocks and tile back."""
    if group == 1:
        return v
    C = v.shape[1] // group
    tot = v[:, 0:C]
    for p in range(1, group):
        tot = tot + v[:, p * C:(p + 1) * C]
    return jnp.concatenate([tot] * group, axis=1)


def _instance_norm(x, gamma, beta, eps, group=1):
    """Two-pass affine instance norm over axis 0 (spatial).  `group` folds the
    space-to-depth parity copies of each original channel into one statistic."""
    S = x.shape[0]
    r = 1.0 / float(S * group)
    mean = _group_tile(jnp.sum(x, axis=0, keepdims=True), group) * r
    xc = x - mean
    var = _group_tile(jnp.sum(xc * xc, axis=0, keepdims=True), group) * r
    inv = jax.lax.rsqrt(var + eps)
    return xc * inv * gamma + beta


def _zero_pad_borders(pad_ref, all_sides):
    """Zero only the 1-element borders of a pad scratch (interior is always
    fully overwritten each grid step, so a full zero-fill is wasted stores)."""
    Hp, Wp, C = pad_ref.shape
    z_row = jnp.zeros((1, Wp, C), pad_ref.dtype)
    z_col = jnp.zeros((Hp, 1, C), pad_ref.dtype)
    pad_ref[0:1, :, :] = z_row
    pad_ref[:, 0:1, :] = z_col
    if all_sides:
        pad_ref[Hp - 1:Hp, :, :] = z_row
        pad_ref[:, Wp - 1:Wp, :] = z_col


def _main_branch(x, pad1_ref, pad2_ref, gam_i, bet_i, w1, b1, w2e, b2e,
                 *, ho, wo, cin, g, taps1, eps):
    """scale_1x1(x) + s0 * conv2(relu(conv1(instance_norm(x)))).

    s0, the 1x1 scale path and its bias are pre-folded into w2e / b2e, so the
    second matmul produces the whole residual sum in one MXU pass."""
    S = ho * wo
    cs = x.shape[1]
    cout = w2e.shape[1]
    T1 = len(taps1)

    y = _instance_norm(x, gam_i, bet_i, eps, group=g)
    yb = y.astype(jnp.bfloat16)                              # cast once

    # ---- conv layer 0 (+ReLU): im2col slab -> single matmul ----
    _zero_pad_borders(pad1_ref, all_sides=(pad1_ref.shape[0] == ho + 2))
    pad1_ref[1:1 + ho, 1:1 + wo, :] = yb.reshape(ho, wo, cs)
    slab1 = jnp.concatenate(
        [pad1_ref[a:a + ho, b:b + wo, :] for (a, b) in taps1],
        axis=-1).reshape(S, T1 * cs)
    h1 = jnp.maximum(
        jnp.dot(slab1, w1, preferred_element_type=jnp.float32) + b1, 0.0)

    # ---- conv layer 1 + folded 1x1 scale path: one matmul ----
    _zero_pad_borders(pad2_ref, all_sides=True)
    pad2_ref[1:1 + ho, 1:1 + wo, :] = h1.astype(jnp.bfloat16).reshape(ho, wo, cout)
    taps2 = [pad2_ref[a:a + ho, b:b + wo, :] for a in range(3) for b in range(3)]
    # raw-input columns for the strided 1x1 scale path ride the same matmul
    taps2.append(x[:, 0:cin].astype(jnp.bfloat16).reshape(ho, wo, cin))
    slab2 = jnp.concatenate(taps2, axis=-1).reshape(S, 9 * cout + cin)
    return jnp.dot(slab2, w2e, preferred_element_type=jnp.float32) + b2e


def _feature_attention(x, gam, bet, w1, b1, w2, b2, s1, eps):
    """x + s1 * SE-style feature attention of instance_norm(x)."""
    S, C = x.shape
    y = _instance_norm(x, gam, bet, eps)
    pooled = jnp.sum(y, axis=0, keepdims=True) * (1.0 / float(S))
    p8 = jnp.broadcast_to(pooled, (8, C)).astype(jnp.bfloat16)   # full sublane tile
    h = jnp.maximum(
        jnp.dot(p8, w1, preferred_element_type=jnp.float32) + b1, 0.0)
    gate = jax.nn.sigmoid(
        jnp.dot(h.astype(jnp.bfloat16), w2, preferred_element_type=jnp.float32) + b2)
    return x + s1 * (y * gate[0:1, :])


def _self_attention(x, gam, bet, wqkv_ref, bqkv_ref, wo, bo, s2, eps, kv_t):
    """x + s2 * single-head self-attention of instance_norm(x) (online softmax)."""
    S, C = x.shape
    y = _instance_norm(x, gam, bet, eps).astype(jnp.bfloat16)
    q = jnp.dot(y, wqkv_ref[0], preferred_element_type=jnp.float32) + bqkv_ref[0]
    k = jnp.dot(y, wqkv_ref[1], preferred_element_type=jnp.float32) + bqkv_ref[1]
    v = jnp.dot(y, wqkv_ref[2], preferred_element_type=jnp.float32) + bqkv_ref[2]
    qb = (q * (1.0 / math.sqrt(C))).astype(jnp.bfloat16)
    kb = k.astype(jnp.bfloat16)
    vb = v.astype(jnp.bfloat16)

    m = l = acc = None
    for c in range(S // kv_t):                        # KV-tiled online softmax
        kc = kb[c * kv_t:(c + 1) * kv_t, :]
        vc = vb[c * kv_t:(c + 1) * kv_t, :]
        logits = jax.lax.dot_general(qb, kc, (((1,), (1,)), ((), ())),
                                     preferred_element_type=jnp.float32)
        m_c = jnp.max(logits, axis=-1, keepdims=True)
        if m is None:
            m = m_c
            p = jnp.exp(logits - m)
            l = jnp.sum(p, axis=-1, keepdims=True)
            acc = jnp.dot(p.astype(jnp.bfloat16), vc,
                          preferred_element_type=jnp.float32)
        else:
            m_new = jnp.maximum(m, m_c)
            alpha = jnp.exp(m - m_new)
            p = jnp.exp(logits - m_new)
            l = alpha * l + jnp.sum(p, axis=-1, keepdims=True)
            acc = alpha * acc + jnp.dot(p.astype(jnp.bfloat16), vc,
                                        preferred_element_type=jnp.float32)
            m = m_new
    attn = acc * pl.reciprocal(l, approx=True)
    o = jnp.dot(attn.astype(jnp.bfloat16), wo,
                preferred_element_type=jnp.float32) + bo
    return x + s2 * o


# ============================  fused kernel  =================================

def _block_kernel(*refs, ho, wo, cin, g, taps1, s1, s2, eps, kv_t, attention):
    if attention:
        (x_ref, gi_ref, bi_ref, w1_ref, b1_ref, w2e_ref, b2e_ref,
         gf_ref, bfa_ref, fw1_ref, fb1_ref, fw2_ref, fb2_ref,
         gs_ref, bs_ref, wqkv_ref, bqkv_ref, wo_ref, bo_ref,
         o_ref, pad1_ref, pad2_ref) = refs
    else:
        (x_ref, gi_ref, bi_ref, w1_ref, b1_ref, w2e_ref, b2e_ref,
         o_ref, pad1_ref, pad2_ref) = refs

    x = x_ref[0]                                             # [S, cs] f32

    out = _main_branch(x, pad1_ref, pad2_ref,
                       gi_ref[...], bi_ref[...],
                       w1_ref[...], b1_ref[...], w2e_ref[...], b2e_ref[...],
                       ho=ho, wo=wo, cin=cin, g=g, taps1=taps1, eps=eps)

    if attention:                                            # stays in VMEM
        out = _feature_attention(out, gf_ref[...], bfa_ref[...],
                                 fw1_ref[...], fb1_ref[...],
                                 fw2_ref[...], fb2_ref[...], s1, eps)
        out = _self_attention(out, gs_ref[...], bs_ref[...],
                              wqkv_ref, bqkv_ref, wo_ref[...], bo_ref[...],
                              s2, eps, kv_t)

    o_ref[0] = out.astype(o_ref.dtype)


# ============================  Block forward  ================================

def _wspec(shape):
    """Whole-array block for weights/constants (constant index map)."""
    return pl.BlockSpec(shape, lambda n, _nd=len(shape): (0,) * _nd)


def _kv_tile(S):
    if S <= 1024:
        return S
    for t in (1024, 512, 256):
        if S % t == 0:
            return t
    return S  # TODO(synk): non-divisible very large S keeps full logits


def block_forward(params, x, scales=None):
    """ResModule(f, g) semantics assumed: out = f(a) + scale * g(b)."""
    if scales is None:
        scales = [None] * 4
    s0 = 1.0 if scales[0] is None else float(scales[0])
    s1 = 1.0 if scales[1] is None else float(scales[1])
    s2 = 1.0 if scales[2] is None else float(scales[2])

    stride = params["stride"]
    cin, cout = params["cin"], params["cout"]
    N, C, H, W = x.shape
    assert C == cin
    Ho, Wo = H // stride, W // stride
    S = Ho * Wo
    g = stride * stride
    cs = g * cin

    # ---- single layout conversion at the public NCHW boundary ----
    if stride == 2:
        # fused NCHW -> channels-last + space-to-depth (folds the conv stride)
        xw = (x.reshape(N, cin, Ho, 2, Wo, 2)
               .transpose(0, 2, 4, 3, 5, 1)
               .reshape(N, S, cs))
        taps1 = ((0, 0), (0, 1), (1, 0), (1, 1))
        pad1_shape = (Ho + 1, Wo + 1, cs)     # top/left zero pad only
    elif stride == 1:
        xw = x.transpose(0, 2, 3, 1).reshape(N, S, cs)
        taps1 = tuple((a, b) for a in range(3) for b in range(3))
        pad1_shape = (Ho + 2, Wo + 2, cs)
    else:
        raise NotImplementedError("stride must be 1 or 2")  # TODO(synk): other strides
    T1 = len(taps1)

    # fold the static residual scale s0 and the strided 1x1 scale path into
    # conv2's im2col matmul (extra weight rows + raw-x columns)
    w1c = params["w1"].reshape(T1 * cs, cout).astype(jnp.bfloat16)
    w2e = jnp.concatenate([params["w2"].reshape(9 * cout, cout) * s0,
                           params["w_scale"]], axis=0).astype(jnp.bfloat16)
    b2e = s0 * params["b2"] + params["b_scale"]

    attention = params["attention"]
    kv_t = _kv_tile(S)

    in_arrays = [xw, params["gamma_i"], params["beta_i"],
                 w1c, params["b1"], w2e, b2e]
    in_specs = [
        pl.BlockSpec((1, S, cs), lambda n: (n, 0, 0)),
        _wspec((1, cs)), _wspec((1, cs)),
        _wspec((T1 * cs, cout)), _wspec((1, cout)),
        _wspec((9 * cout + cin, cout)), _wspec((1, cout)),
    ]
    if attention:
        hidden = params["fa_w1"].shape[1]
        in_arrays += [params["gamma_f"], params["beta_f"],
                      params["fa_w1"].astype(jnp.bfloat16), params["fa_b1"],
                      params["fa_w2"].astype(jnp.bfloat16), params["fa_b2"],
                      params["gamma_s"], params["beta_s"],
                      params["wqkv"].astype(jnp.bfloat16), params["bqkv"],
                      params["wo"].astype(jnp.bfloat16), params["bo"]]
        in_specs += [_wspec((1, cout)), _wspec((1, cout)),
                     _wspec((cout, hidden)), _wspec((1, hidden)),
                     _wspec((hidden, cout)), _wspec((1, cout)),
                     _wspec((1, cout)), _wspec((1, cout)),
                     _wspec((3, cout, cout)), _wspec((3, 1, cout)),
                     _wspec((cout, cout)), _wspec((1, cout))]

    # ---- VMEM budget derived from the actual footprint (valid on 64 MiB v7x) ----
    pad1_bytes = pad1_shape[0] * pad1_shape[1] * cs * 2
    pad2_bytes = (Ho + 2) * (Wo + 2) * cout * 2
    slab_bytes = S * (T1 * cs + 9 * cout + cin) * 2
    live_f32 = S * (cs + 4 * cout) * 4
    if attention:
        live_f32 += S * (6 * cout + 2 * kv_t) * 4
    est = (2 * S * cs * 4 + 2 * S * cout * 4
           + pad1_bytes + pad2_bytes + slab_bytes + live_f32)
    vmem_limit = int(min(max(2 * est + (8 << 20), 32 << 20), 64 << 20))

    out = pl.pallas_call(
        functools.partial(_block_kernel, ho=Ho, wo=Wo, cin=cin, g=g,
                          taps1=taps1, s1=s1, s2=s2, eps=_EPS,
                          kv_t=kv_t, attention=attention),
        out_shape=jax.ShapeDtypeStruct((N, S, cout), jnp.float32),
        grid=(N,),
        in_specs=in_specs,
        out_specs=pl.BlockSpec((1, S, cout), lambda n: (n, 0, 0)),
        scratch_shapes=[pltpu.VMEM(pad1_shape, jnp.bfloat16),
                        pltpu.VMEM((Ho + 2, Wo + 2, cout), jnp.bfloat16)],
        compiler_params=pltpu.CompilerParams(
            dimension_semantics=("parallel",),
            vmem_limit_bytes=vmem_limit),
    )(*in_arrays)

    # back to the public NCHW layout
    return out.reshape(N, Ho, Wo, cout).transpose(0, 3, 1, 2)


# ==========================  deterministic init  =============================

def _winit(key, shape, fan_in):
    return jax.random.normal(key, shape, jnp.float32) / math.sqrt(fan_in)


def _conv1_s2d_weight(w):
    """Rearrange a [3,3,Cin,Cout] stride-2 conv weight into the equivalent
    stride-1 2x2 conv weight [4, 4*Cin, Cout] over the space-to-depth input."""
    cin, cout = w.shape[2], w.shape[3]
    # padded-offset a in {0,1}  ->  ((kernel index i, row parity p), ...)
    mp = {0: ((0, 1),), 1: ((1, 0), (2, 1))}
    wt = jnp.zeros((4, 4 * cin, cout), w.dtype)
    for a in (0, 1):
        for b in (0, 1):
            t = a * 2 + b
            for i, p in mp[a]:
                for j, q in mp[b]:
                    grp = p * 2 + q
                    wt = wt.at[t, grp * cin:(grp + 1) * cin, :].set(w[i, j])
    return wt


def init_block_params(key, in_size, in_features, out_features, stride, block_number):
    keys = iter(jax.random.split(key, 16))
    cin, cout = in_features, out_features
    g = stride * stride
    cs = g * cin
    p = {"stride": stride, "cin": cin, "cout": cout}

    # Scale(in, out, stride): assumed strided 1x1 conv
    p["w_scale"] = _winit(next(keys), (cin, cout), cin)
    p["b_scale"] = jnp.zeros((1, cout), jnp.float32)

    # Norm before DRC (affine instance norm), tiled across s2d parity copies
    p["gamma_i"] = jnp.ones((1, cs), jnp.float32)
    p["beta_i"] = jnp.zeros((1, cs), jnp.float32)

    # DeepResidualConv: DEPTH(=2) 3x3 convs, first strided + channel change
    assert DEPTH == 2  # fused kernel implements exactly two conv layers
    w1 = _winit(next(keys), (3, 3, cin, cout), cin * 9)
    w2 = _winit(next(keys), (3, 3, cout, cout), cout * 9)
    if stride == 2:
        p["w1"] = _conv1_s2d_weight(w1)                      # [4, 4*cin, cout]
    else:
        p["w1"] = w1.reshape(9, cin, cout)
    p["b1"] = jnp.zeros((1, cout), jnp.float32)
    p["w2"] = w2.reshape(9, cout, cout)
    p["b2"] = jnp.zeros((1, cout), jnp.float32)

    attention = (in_size >= MIN_ATTENTION_SIZE) and \
                (block_number % ATTENTION_EVERY_NTH_LAYER == 0)
    p["attention"] = attention
    if attention:
        hidden = max(cout // 2, 1)
        p["gamma_f"] = jnp.ones((1, cout), jnp.float32)
        p["beta_f"] = jnp.zeros((1, cout), jnp.float32)
        p["fa_w1"] = _winit(next(keys), (cout, hidden), cout)
        p["fa_b1"] = jnp.zeros((1, hidden), jnp.float32)
        p["fa_w2"] = _winit(next(keys), (hidden, cout), hidden)
        p["fa_b2"] = jnp.zeros((1, cout), jnp.float32)

        p["gamma_s"] = jnp.ones((1, cout), jnp.float32)
        p["beta_s"] = jnp.zeros((1, cout), jnp.float32)
        p["wqkv"] = jnp.stack(
            [_winit(next(keys), (cout, cout), cout) for _ in range(3)])
        p["bqkv"] = jnp.zeros((3, 1, cout), jnp.float32)
        p["wo"] = _winit(next(keys), (cout, cout), cout)
        p["bo"] = jnp.zeros((1, cout), jnp.float32)
    return p


# ================================  main  =====================================

if __name__ == "__main__":
    key = jax.random.PRNGKey(0)
    kx, kp = jax.random.split(key)

    N, Cin, H, W = 2, 4, 16, 16
    Cout, stride = 8, 2

    x = jax.random.normal(kx, (N, Cin, H, W), jnp.float32)
    params = init_block_params(kp, in_size=H, in_features=Cin,
                               out_features=Cout, stride=stride, block_number=0)

    fwd = jax.jit(lambda inp: block_forward(params, inp))
    out = jax.block_until_ready(fwd(x))

    assert out.shape == (N, Cout, H // stride, W // stride), out.shape
    assert bool(jnp.all(jnp.isfinite(out)))
    print("KERNEL_OK")
</pallas_src>

<mosaic_0001>
module attributes {stable_mosaic.version = 11 : i64} {
  func.func @_block_kernel(%arg0: i32, %arg1: memref<1x64x16xf32, #tpu.memory_space<vmem>>, %arg2: memref<1x16xf32, #tpu.memory_space<vmem>>, %arg3: memref<1x16xf32, #tpu.memory_space<vmem>>, %arg4: memref<64x8xbf16, #tpu.memory_space<vmem>>, %arg5: memref<1x8xf32, #tpu.memory_space<vmem>>, %arg6: memref<76x8xbf16, #tpu.memory_space<vmem>>, %arg7: memref<1x8xf32, #tpu.memory_space<vmem>>, %arg8: memref<1x8xf32, #tpu.memory_space<vmem>>, %arg9: memref<1x8xf32, #tpu.memory_space<vmem>>, %arg10: memref<8x4xbf16, #tpu.memory_space<vmem>>, %arg11: memref<1x4xf32, #tpu.memory_space<vmem>>, %arg12: memref<4x8xbf16, #tpu.memory_space<vmem>>, %arg13: memref<1x8xf32, #tpu.memory_space<vmem>>, %arg14: memref<1x8xf32, #tpu.memory_space<vmem>>, %arg15: memref<1x8xf32, #tpu.memory_space<vmem>>, %arg16: memref<3x8x8xbf16, #tpu.memory_space<vmem>>, %arg17: memref<3x1x8xf32, #tpu.memory_space<vmem>>, %arg18: memref<8x8xbf16, #tpu.memory_space<vmem>>, %arg19: memref<1x8xf32, #tpu.memory_space<vmem>>, %arg20: memref<1x64x8xf32, #tpu.memory_space<vmem>>, %arg21: memref<9x9x16xbf16, #tpu.memory_space<vmem>>, %arg22: memref<10x10x8xbf16, #tpu.memory_space<vmem>>) attributes {dimension_semantics = [#tpu.dimension_semantics<parallel>], iteration_bounds = array<i64: 2>, scalar_prefetch = 0 : i64, scratch_operands = 2 : i64, tpu.core_type = #tpu.core_type<tc>, window_params = [{transform_indices = @transform_0, window_bounds = array<i64: 1, 64, 16>}, {pipeline_mode = #tpu.pipeline_mode<synchronous>, transform_indices = @transform_1, window_bounds = array<i64: 1, 16>}, {pipeline_mode = #tpu.pipeline_mode<synchronous>, transform_indices = @transform_2, window_bounds = array<i64: 1, 16>}, {pipeline_mode = #tpu.pipeline_mode<synchronous>, transform_indices = @transform_3, window_bounds = array<i64: 64, 8>}, {pipeline_mode = #tpu.pipeline_mode<synchronous>, transform_indices = @transform_4, window_bounds = array<i64: 1, 8>}, {pipeline_mode = #tpu.pipeline_mode<synchronous>, transform_indices = @transform_5, window_bounds = array<i64: 76, 8>}, {pipeline_mode = #tpu.pipeline_mode<synchronous>, transform_indices = @transform_6, window_bounds = array<i64: 1, 8>}, {pipeline_mode = #tpu.pipeline_mode<synchronous>, transform_indices = @transform_7, window_bounds = array<i64: 1, 8>}, {pipeline_mode = #tpu.pipeline_mode<synchronous>, transform_indices = @transform_8, window_bounds = array<i64: 1, 8>}, {pipeline_mode = #tpu.pipeline_mode<synchronous>, transform_indices = @transform_9, window_bounds = array<i64: 8, 4>}, {pipeline_mode = #tpu.pipeline_mode<synchronous>, transform_indices = @transform_10, window_bounds = array<i64: 1, 4>}, {pipeline_mode = #tpu.pipeline_mode<synchronous>, transform_indices = @transform_11, window_bounds = array<i64: 4, 8>}, {pipeline_mode = #tpu.pipeline_mode<synchronous>, transform_indices = @transform_12, window_bounds = array<i64: 1, 8>}, {pipeline_mode = #tpu.pipeline_mode<synchronous>, transform_indices = @transform_13, window_bounds = array<i64: 1, 8>}, {pipeline_mode = #tpu.pipeline_mode<synchronous>, transform_indices = @transform_14, window_bounds = array<i64: 1, 8>}, {pipeline_mode = #tpu.pipeline_mode<synchronous>, transform_indices = @transform_15, window_bounds = array<i64: 3, 8, 8>}, {pipeline_mode = #tpu.pipeline_mode<synchronous>, transform_indices = @transform_16, window_bounds = array<i64: 3, 1, 8>}, {pipeline_mode = #tpu.pipeline_mode<synchronous>, transform_indices = @transform_17, window_bounds = array<i64: 8, 8>}, {pipeline_mode = #tpu.pipeline_mode<synchronous>, transform_indices = @transform_18, window_bounds = array<i64: 1, 8>}, {transform_indices = @transform_19, window_bounds = array<i64: 1, 64, 8>}]} {
    %c0 = arith.constant 0 : index
    %c0_0 = arith.constant 0 : index
    %c0_1 = arith.constant 0 : index
    %0 = vector.load %arg1[%c0, %c0_0, %c0_1] : memref<1x64x16xf32, #tpu.memory_space<vmem>>, vector<1x64x16xf32>
    %1 = vector.shape_cast %0 : vector<1x64x16xf32> to vector<64x16xf32>
    %c0_2 = arith.constant 0 : index
    %c0_3 = arith.constant 0 : index
    %2 = vector.load %arg2[%c0_2, %c0_3] : memref<1x16xf32, #tpu.memory_space<vmem>>, vector<1x16xf32>
    %c0_4 = arith.constant 0 : index
    %c0_5 = arith.constant 0 : index
    %3 = vector.load %arg3[%c0_4, %c0_5] : memref<1x16xf32, #tpu.memory_space<vmem>>, vector<1x16xf32>
    %c0_6 = arith.constant 0 : index
    %c0_7 = arith.constant 0 : index
    %4 = vector.load %arg4[%c0_6, %c0_7] : memref<64x8xbf16, #tpu.memory_space<vmem>>, vector<64x8xbf16>
    %c0_8 = arith.constant 0 : index
    %c0_9 = arith.constant 0 : index
    %5 = vector.load %arg5[%c0_8, %c0_9] : memref<1x8xf32, #tpu.memory_space<vmem>>, vector<1x8xf32>
    %c0_10 = arith.constant 0 : index
    %c0_11 = arith.constant 0 : index
    %6 = vector.load %arg6[%c0_10, %c0_11] : memref<76x8xbf16, #tpu.memory_space<vmem>>, vector<76x8xbf16>
    %c0_12 = arith.constant 0 : index
    %c0_13 = arith.constant 0 : index
    %7 = vector.load %arg7[%c0_12, %c0_13] : memref<1x8xf32, #tpu.memory_space<vmem>>, vector<1x8xf32>
    %cst = arith.constant dense<0.000000e+00> : vector<16xf32>
    %8 = vector.multi_reduction <add>, %1, %cst [0] : vector<64x16xf32> to vector<16xf32>
    %9 = vector.shape_cast %8 : vector<16xf32> to vector<1x16xf32>
    %10 = vector.extract_strided_slice %9 {offsets = [0, 0], sizes = [1, 4], strides = [1, 1]} : vector<1x16xf32> to vector<1x4xf32>
    %11 = vector.extract_strided_slice %9 {offsets = [0, 4], sizes = [1, 4], strides = [1, 1]} : vector<1x16xf32> to vector<1x4xf32>
    %12 = arith.addf %10, %11 : vector<1x4xf32>
    %13 = vector.extract_strided_slice %9 {offsets = [0, 8], sizes = [1, 4], strides = [1, 1]} : vector<1x16xf32> to vector<1x4xf32>
    %14 = arith.addf %12, %13 : vector<1x4xf32>
    %15 = vector.extract_strided_slice %9 {offsets = [0, 12], sizes = [1, 4], strides = [1, 1]} : vector<1x16xf32> to vector<1x4xf32>
    %16 = arith.addf %14, %15 : vector<1x4xf32>
    %17 = tpu.concatenate %16, %16, %16, %16 in 1 : vector<1x4xf32>, vector<1x4xf32>, vector<1x4xf32>, vector<1x4xf32> -> vector<1x16xf32>
    %cst_14 = arith.constant 3.906250e-03 : f32
    %18 = vector.broadcast %cst_14 : f32 to vector<1x16xf32>
    %19 = arith.mulf %17, %18 : vector<1x16xf32>
    %20 = vector.broadcast %19 : vector<1x16xf32> to vector<64x16xf32>
    %21 = arith.subf %1, %20 : vector<64x16xf32>
    %22 = arith.mulf %21, %21 : vector<64x16xf32>
    %cst_15 = arith.constant dense<0.000000e+00> : vector<16xf32>
    %23 = vector.multi_reduction <add>, %22, %cst_15 [0] : vector<64x16xf32> to vector<16xf32>
    %24 = vector.shape_cast %23 : vector<16xf32> to vector<1x16xf32>
    %25 = vector.extract_strided_slice %24 {offsets = [0, 0], sizes = [1, 4], strides = [1, 1]} : vector<1x16xf32> to vector<1x4xf32>
    %26 = vector.extract_strided_slice %24 {offsets = [0, 4], sizes = [1, 4], strides = [1, 1]} : vector<1x16xf32> to vector<1x4xf32>
    %27 = arith.addf %25, %26 : vector<1x4xf32>
    %28 = vector.extract_strided_slice %24 {offsets = [0, 8], sizes = [1, 4], strides = [1, 1]} : vector<1x16xf32> to vector<1x4xf32>
    %29 = arith.addf %27, %28 : vector<1x4xf32>
    %30 = vector.extract_strided_slice %24 {offsets = [0, 12], sizes = [1, 4], strides = [1, 1]} : vector<1x16xf32> to vector<1x4xf32>
    %31 = arith.addf %29, %30 : vector<1x4xf32>
    %32 = tpu.concatenate %31, %31, %31, %31 in 1 : vector<1x4xf32>, vector<1x4xf32>, vector<1x4xf32>, vector<1x4xf32> -> vector<1x16xf32>
    %cst_16 = arith.constant 3.906250e-03 : f32
    %33 = vector.broadcast %cst_16 : f32 to vector<1x16xf32>
    %34 = arith.mulf %32, %33 : vector<1x16xf32>
    %cst_17 = arith.constant 9.99999974E-6 : f32
    %35 = vector.broadcast %cst_17 : f32 to vector<1x16xf32>
    %36 = arith.addf %34, %35 : vector<1x16xf32>
    %37 = math.rsqrt %36 : vector<1x16xf32>
    %38 = vector.broadcast %37 : vector<1x16xf32> to vector<64x16xf32>
    %39 = arith.mulf %21, %38 : vector<64x16xf32>
    %40 = vector.broadcast %2 : vector<1x16xf32> to vector<64x16xf32>
    %41 = arith.mulf %39, %40 : vector<64x16xf32>
    %42 = vector.broadcast %3 : vector<1x16xf32> to vector<64x16xf32>
    %43 = arith.addf %41, %42 : vector<64x16xf32>
    %44 = arith.truncf %43 : vector<64x16xf32> to vector<64x16xbf16>
    %cst_18 = arith.constant 0.000000e+00 : bf16
    %45 = vector.broadcast %cst_18 : bf16 to vector<1x9x16xbf16>
    %cst_19 = arith.constant 0.000000e+00 : bf16
    %46 = vector.broadcast %cst_19 : bf16 to vector<9x1x16xbf16>
    %c0_20 = arith.constant 0 : index
    %c0_21 = arith.constant 0 : index
    %c0_22 = arith.constant 0 : index
    %47 = vector.load %arg21[%c0_20, %c0_21, %c0_22] : memref<9x9x16xbf16, #tpu.memory_space<vmem>>, vector<1x9x16xbf16>
    tpu.vector_store %arg21[%c0_20, %c0_21, %c0_22], %45 {strides = array<i32>} : memref<9x9x16xbf16, #tpu.memory_space<vmem>>, vector<1x9x16xbf16>,
    %c0_23 = arith.constant 0 : index
    %c0_24 = arith.constant 0 : index
    %c0_25 = arith.constant 0 : index
    %48 = vector.load %arg21[%c0_23, %c0_24, %c0_25] : memref<9x9x16xbf16, #tpu.memory_space<vmem>>, vector<9x1x16xbf16>
    tpu.vector_store %arg21[%c0_23, %c0_24, %c0_25], %46 {strides = array<i32>} : memref<9x9x16xbf16, #tpu.memory_space<vmem>>, vector<9x1x16xbf16>,
    %49 = vector.shape_cast %44 : vector<64x16xbf16> to vector<8x8x16xbf16>
    %c1 = arith.constant 1 : index
    %c1_26 = arith.constant 1 : index
    %c0_27 = arith.constant 0 : index
    %50 = vector.load %arg21[%c1, %c1_26, %c0_27] : memref<9x9x16xbf16, #tpu.memory_space<vmem>>, vector<8x8x16xbf16>
    tpu.vector_store %arg21[%c1, %c1_26, %c0_27], %49 {strides = array<i32>} : memref<9x9x16xbf16, #tpu.memory_space<vmem>>, vector<8x8x16xbf16>,
    %c0_28 = arith.constant 0 : index
    %c0_29 = arith.constant 0 : index
    %c0_30 = arith.constant 0 : index
    %51 = vector.load %arg21[%c0_28, %c0_29, %c0_30] : memref<9x9x16xbf16, #tpu.memory_space<vmem>>, vector<8x8x16xbf16>
    %c0_31 = arith.constant 0 : index
    %c1_32 = arith.constant 1 : index
    %c0_33 = arith.constant 0 : index
    %52 = vector.load %arg21[%c0_31, %c1_32, %c0_33] : memref<9x9x16xbf16, #tpu.memory_space<vmem>>, vector<8x8x16xbf16>
    %c1_34 = arith.constant 1 : index
    %c0_35 = arith.constant 0 : index
    %c0_36 = arith.constant 0 : index
    %53 = vector.load %arg21[%c1_34, %c0_35, %c0_36] : memref<9x9x16xbf16, #tpu.memory_space<vmem>>, vector<8x8x16xbf16>
    %c1_37 = arith.constant 1 : index
    %c1_38 = arith.constant 1 : index
    %c0_39 = arith.constant 0 : index
    %54 = vector.load %arg21[%c1_37, %c1_38, %c0_39] : memref<9x9x16xbf16, #tpu.memory_space<vmem>>, vector<8x8x16xbf16>
    %55 = tpu.concatenate %51, %52, %53, %54 in 2 : vector<8x8x16xbf16>, vector<8x8x16xbf16>, vector<8x8x16xbf16>, vector<8x8x16xbf16> -> vector<8x8x64xbf16>
    %56 = vector.shape_cast %55 : vector<8x8x64xbf16> to vector<64x64xbf16>
    %cst_40 = arith.constant dense<0.000000e+00> : vector<64x8xf32>
    %57 = tpu.matmul %56, %4, %cst_40 {dimension_numbers = #tpu.dot_dimension_numbers<[1], [0], [0], [1], [0, 0, 1, 1], [], []>} : vector<64x64xbf16>, vector<64x8xbf16>, vector<64x8xf32> -> vector<64x8xf32>
    %58 = vector.broadcast %5 : vector<1x8xf32> to vector<64x8xf32>
    %59 = arith.addf %57, %58 : vector<64x8xf32>
    %cst_41 = arith.constant 0.000000e+00 : f32
    %60 = vector.broadcast %cst_41 : f32 to vector<64x8xf32>
    %61 = arith.maximumf %59, %60 : vector<64x8xf32>
    %cst_42 = arith.constant 0.000000e+00 : bf16
    %62 = vector.broadcast %cst_42 : bf16 to vector<1x10x8xbf16>
    %cst_43 = arith.constant 0.000000e+00 : bf16
    %63 = vector.broadcast %cst_43 : bf16 to vector<10x1x8xbf16>
    %c0_44 = arith.constant 0 : index
    %c0_45 = arith.constant 0 : index
    %c0_46 = arith.constant 0 : index
    %64 = vector.load %arg22[%c0_44, %c0_45, %c0_46] : memref<10x10x8xbf16, #tpu.memory_space<vmem>>, vector<1x10x8xbf16>
    tpu.vector_store %arg22[%c0_44, %c0_45, %c0_46], %62 {strides = array<i32>} : memref<10x10x8xbf16, #tpu.memory_space<vmem>>, vector<1x10x8xbf16>,
    %c0_47 = arith.constant 0 : index
    %c0_48 = arith.constant 0 : index
    %c0_49 = arith.constant 0 : index
    %65 = vector.load %arg22[%c0_47, %c0_48, %c0_49] : memref<10x10x8xbf16, #tpu.memory_space<vmem>>, vector<10x1x8xbf16>
    tpu.vector_store %arg22[%c0_47, %c0_48, %c0_49], %63 {strides = array<i32>} : memref<10x10x8xbf16, #tpu.memory_space<vmem>>, vector<10x1x8xbf16>,
    %c9 = arith.constant 9 : index
    %c0_50 = arith.constant 0 : index
    %c0_51 = arith.constant 0 : index
    %66 = vector.load %arg22[%c9, %c0_50, %c0_51] : memref<10x10x8xbf16, #tpu.memory_space<vmem>>, vector<1x10x8xbf16>
    tpu.vector_store %arg22[%c9, %c0_50, %c0_51], %62 {strides = array<i32>} : memref<10x10x8xbf16, #tpu.memory_space<vmem>>, vector<1x10x8xbf16>,
    %c0_52 = arith.constant 0 : index
    %c9_53 = arith.constant 9 : index
    %c0_54 = arith.constant 0 : index
    %67 = vector.load %arg22[%c0_52, %c9_53, %c0_54] : memref<10x10x8xbf16, #tpu.memory_space<vmem>>, vector<10x1x8xbf16>
    tpu.vector_store %arg22[%c0_52, %c9_53, %c0_54], %63 {strides = array<i32>} : memref<10x10x8xbf16, #tpu.memory_space<vmem>>, vector<10x1x8xbf16>,
    %68 = arith.truncf %61 : vector<64x8xf32> to vector<64x8xbf16>
    %69 = vector.shape_cast %68 : vector<64x8xbf16> to vector<8x8x8xbf16>
    %c1_55 = arith.constant 1 : index
    %c1_56 = arith.constant 1 : index
    %c0_57 = arith.constant 0 : index
    %70 = vector.load %arg22[%c1_55, %c1_56, %c0_57] : memref<10x10x8xbf16, #tpu.memory_space<vmem>>, vector<8x8x8xbf16>
    tpu.vector_store %arg22[%c1_55, %c1_56, %c0_57], %69 {strides = array<i32>} : memref<10x10x8xbf16, #tpu.memory_space<vmem>>, vector<8x8x8xbf16>,
    %c0_58 = arith.constant 0 : index
    %c0_59 = arith.constant 0 : index
    %c0_60 = arith.constant 0 : index
    %71 = vector.load %arg22[%c0_58, %c0_59, %c0_60] : memref<10x10x8xbf16, #tpu.memory_space<vmem>>, vector<8x8x8xbf16>
    %c0_61 = arith.constant 0 : index
    %c1_62 = arith.constant 1 : index
    %c0_63 = arith.constant 0 : index
    %72 = vector.load %arg22[%c0_61, %c1_62, %c0_63] : memref<10x10x8xbf16, #tpu.memory_space<vmem>>, vector<8x8x8xbf16>
    %c0_64 = arith.constant 0 : index
    %c2 = arith.constant 2 : index
    %c0_65 = arith.constant 0 : index
    %73 = vector.load %arg22[%c0_64, %c2, %c0_65] : memref<10x10x8xbf16, #tpu.memory_space<vmem>>, vector<8x8x8xbf16>
    %c1_66 = arith.constant 1 : index
    %c0_67 = arith.constant 0 : index
    %c0_68 = arith.constant 0 : index
    %74 = vector.load %arg22[%c1_66, %c0_67, %c0_68] : memref<10x10x8xbf16, #tpu.memory_space<vmem>>, vector<8x8x8xbf16>
    %c1_69 = arith.constant 1 : index
    %c1_70 = arith.constant 1 : index
    %c0_71 = arith.constant 0 : index
    %75 = vector.load %arg22[%c1_69, %c1_70, %c0_71] : memref<10x10x8xbf16, #tpu.memory_space<vmem>>, vector<8x8x8xbf16>
    %c1_72 = arith.constant 1 : index
    %c2_73 = arith.constant 2 : index
    %c0_74 = arith.constant 0 : index
    %76 = vector.load %arg22[%c1_72, %c2_73, %c0_74] : memref<10x10x8xbf16, #tpu.memory_space<vmem>>, vector<8x8x8xbf16>
    %c2_75 = arith.constant 2 : index
    %c0_76 = arith.constant 0 : index
    %c0_77 = arith.constant 0 : index
    %77 = vector.load %arg22[%c2_75, %c0_76, %c0_77] : memref<10x10x8xbf16, #tpu.memory_space<vmem>>, vector<8x8x8xbf16>
    %c2_78 = arith.constant 2 : index
    %c1_79 = arith.constant 1 : index
    %c0_80 = arith.constant 0 : index
    %78 = vector.load %arg22[%c2_78, %c1_79, %c0_80] : memref<10x10x8xbf16, #tpu.memory_space<vmem>>, vector<8x8x8xbf16>
    %c2_81 = arith.constant 2 : index
    %c2_82 = arith.constant 2 : index
    %c0_83 = arith.constant 0 : index
    %79 = vector.load %arg22[%c2_81, %c2_82, %c0_83] : memref<10x10x8xbf16, #tpu.memory_space<vmem>>, vector<8x8x8xbf16>
    %80 = vector.extract_strided_slice %1 {offsets = [0, 0], sizes = [64, 4], strides = [1, 1]} : vector<64x16xf32> to vector<64x4xf32>
    %81 = arith.truncf %80 : vector<64x4xf32> to vector<64x4xbf16>
    %82 = vector.shape_cast %81 : vector<64x4xbf16> to vector<8x8x4xbf16>
    %83 = tpu.concatenate %71, %72, %73, %74, %75, %76, %77, %78, %79, %82 in 2 : vector<8x8x8xbf16>, vector<8x8x8xbf16>, vector<8x8x8xbf16>, vector<8x8x8xbf16>, vector<8x8x8xbf16>, vector<8x8x8xbf16>, vector<8x8x8xbf16>, vector<8x8x8xbf16>, vector<8x8x8xbf16>, vector<8x8x4xbf16> -> vector<8x8x76xbf16>
    %84 = vector.shape_cast %83 : vector<8x8x76xbf16> to vector<64x76xbf16>
    %cst_84 = arith.constant dense<0.000000e+00> : vector<64x8xf32>
    %85 = tpu.matmul %84, %6, %cst_84 {dimension_numbers = #tpu.dot_dimension_numbers<[1], [0], [0], [1], [0, 0, 1, 1], [], []>} : vector<64x76xbf16>, vector<76x8xbf16>, vector<64x8xf32> -> vector<64x8xf32>
    %86 = vector.broadcast %7 : vector<1x8xf32> to vector<64x8xf32>
    %87 = arith.addf %85, %86 : vector<64x8xf32>
    %c0_85 = arith.constant 0 : index
    %c0_86 = arith.constant 0 : index
    %88 = vector.load %arg8[%c0_85, %c0_86] : memref<1x8xf32, #tpu.memory_space<vmem>>, vector<1x8xf32>
    %c0_87 = arith.constant 0 : index
    %c0_88 = arith.constant 0 : index
    %89 = vector.load %arg9[%c0_87, %c0_88] : memref<1x8xf32, #tpu.memory_space<vmem>>, vector<1x8xf32>
    %c0_89 = arith.constant 0 : index
    %c0_90 = arith.constant 0 : index
    %90 = vector.load %arg10[%c0_89, %c0_90] : memref<8x4xbf16, #tpu.memory_space<vmem>>, vector<8x4xbf16>
    %c0_91 = arith.constant 0 : index
    %c0_92 = arith.constant 0 : index
    %91 = vector.load %arg11[%c0_91, %c0_92] : memref<1x4xf32, #tpu.memory_space<vmem>>, vector<1x4xf32>
    %c0_93 = arith.constant 0 : index
    %c0_94 = arith.constant 0 : index
    %92 = vector.load %arg12[%c0_93, %c0_94] : memref<4x8xbf16, #tpu.memory_space<vmem>>, vector<4x8xbf16>
    %c0_95 = arith.constant 0 : index
    %c0_96 = arith.constant 0 : index
    %93 = vector.load %arg13[%c0_95, %c0_96] : memref<1x8xf32, #tpu.memory_space<vmem>>, vector<1x8xf32>
    %cst_97 = arith.constant dense<0.000000e+00> : vector<8xf32>
    %94 = vector.multi_reduction <add>, %87, %cst_97 [0] : vector<64x8xf32> to vector<8xf32>
    %95 = vector.shape_cast %94 : vector<8xf32> to vector<1x8xf32>
    %cst_98 = arith.constant 1.562500e-02 : f32
    %96 = vector.broadcast %cst_98 : f32 to vector<1x8xf32>
    %97 = arith.mulf %95, %96 : vector<1x8xf32>
    %98 = vector.broadcast %97 : vector<1x8xf32> to vector<64x8xf32>
    %99 = arith.subf %87, %98 : vector<64x8xf32>
    %100 = arith.mulf %99, %99 : vector<64x8xf32>
    %cst_99 = arith.constant dense<0.000000e+00> : vector<8xf32>
    %101 = vector.multi_reduction <add>, %100, %cst_99 [0] : vector<64x8xf32> to vector<8xf32>
    %102 = vector.shape_cast %101 : vector<8xf32> to vector<1x8xf32>
    %cst_100 = arith.constant 1.562500e-02 : f32
    %103 = vector.broadcast %cst_100 : f32 to vector<1x8xf32>
    %104 = arith.mulf %102, %103 : vector<1x8xf32>
    %cst_101 = arith.constant 9.99999974E-6 : f32
    %105 = vector.broadcast %cst_101 : f32 to vector<1x8xf32>
    %106 = arith.addf %104, %105 : vector<1x8xf32>
    %107 = math.rsqrt %106 : vector<1x8xf32>
    %108 = vector.broadcast %107 : vector<1x8xf32> to vector<64x8xf32>
    %109 = arith.mulf %99, %108 : vector<64x8xf32>
    %110 = vector.broadcast %88 : vector<1x8xf32> to vector<64x8xf32>
    %111 = arith.mulf %109, %110 : vector<64x8xf32>
    %112 = vector.broadcast %89 : vector<1x8xf32> to vector<64x8xf32>
    %113 = arith.addf %111, %112 : vector<64x8xf32>
    %cst_102 = arith.constant dense<0.000000e+00> : vector<8xf32>
    %114 = vector.multi_reduction <add>, %113, %cst_102 [0] : vector<64x8xf32> to vector<8xf32>
    %115 = vector.shape_cast %114 : vector<8xf32> to vector<1x8xf32>
    %cst_103 = arith.constant 1.562500e-02 : f32
    %116 = vector.broadcast %cst_103 : f32 to vector<1x8xf32>
    %117 = arith.mulf %115, %116 : vector<1x8xf32>
    %118 = vector.shape_cast %117 : vector<1x8xf32> to vector<1x8xf32>
    %119 = vector.broadcast %118 : vector<1x8xf32> to vector<8x8xf32>
    %120 = arith.truncf %119 : vector<8x8xf32> to vector<8x8xbf16>
    %cst_104 = arith.constant dense<0.000000e+00> : vector<8x4xf32>
    %121 = tpu.matmul %120, %90, %cst_104 {dimension_numbers = #tpu.dot_dimension_numbers<[1], [0], [0], [1], [0, 0, 1, 1], [], []>} : vector<8x8xbf16>, vector<8x4xbf16>, vector<8x4xf32> -> vector<8x4xf32>
    %122 = vector.broadcast %91 : vector<1x4xf32> to vector<8x4xf32>
    %123 = arith.addf %121, %122 : vector<8x4xf32>
    %cst_105 = arith.constant 0.000000e+00 : f32
    %124 = vector.broadcast %cst_105 : f32 to vector<8x4xf32>
    %125 = arith.maximumf %123, %124 : vector<8x4xf32>
    %126 = arith.truncf %125 : vector<8x4xf32> to vector<8x4xbf16>
    %cst_106 = arith.constant dense<0.000000e+00> : vector<8x8xf32>
    %127 = tpu.matmul %126, %92, %cst_106 {dimension_numbers = #tpu.dot_dimension_numbers<[1], [0], [0], [1], [0, 0, 1, 1], [], []>} : vector<8x4xbf16>, vector<4x8xbf16>, vector<8x8xf32> -> vector<8x8xf32>
    %128 = vector.broadcast %93 : vector<1x8xf32> to vector<8x8xf32>
    %129 = arith.addf %127, %128 : vector<8x8xf32>
    %130 = arith.negf %129 : vector<8x8xf32>
    %131 = math.exp %130 : vector<8x8xf32>
    %cst_107 = arith.constant 1.000000e+00 : f32
    %132 = vector.broadcast %cst_107 : f32 to vector<8x8xf32>
    %133 = arith.addf %132, %131 : vector<8x8xf32>
    %134 = arith.divf %132, %133 : vector<8x8xf32>
    %135 = vector.extract_strided_slice %134 {offsets = [0, 0], sizes = [1, 8], strides = [1, 1]} : vector<8x8xf32> to vector<1x8xf32>
    %136 = vector.broadcast %135 : vector<1x8xf32> to vector<64x8xf32>
    %137 = arith.mulf %113, %136 : vector<64x8xf32>
    %cst_108 = arith.constant 1.000000e+00 : f32
    %138 = vector.broadcast %cst_108 : f32 to vector<64x8xf32>
    %139 = arith.mulf %138, %137 : vector<64x8xf32>
    %140 = arith.addf %87, %139 : vector<64x8xf32>
    %c0_109 = arith.constant 0 : index
    %c0_110 = arith.constant 0 : index
    %141 = vector.load %arg14[%c0_109, %c0_110] : memref<1x8xf32, #tpu.memory_space<vmem>>, vector<1x8xf32>
    %c0_111 = arith.constant 0 : index
    %c0_112 = arith.constant 0 : index
    %142 = vector.load %arg15[%c0_111, %c0_112] : memref<1x8xf32, #tpu.memory_space<vmem>>, vector<1x8xf32>
    %c0_113 = arith.constant 0 : index
    %c0_114 = arith.constant 0 : index
    %143 = vector.load %arg18[%c0_113, %c0_114] : memref<8x8xbf16, #tpu.memory_space<vmem>>, vector<8x8xbf16>
    %c0_115 = arith.constant 0 : index
    %c0_116 = arith.constant 0 : index
    %144 = vector.load %arg19[%c0_115, %c0_116] : memref<1x8xf32, #tpu.memory_space<vmem>>, vector<1x8xf32>
    %cst_117 = arith.constant dense<0.000000e+00> : vector<8xf32>
    %145 = vector.multi_reduction <add>, %140, %cst_117 [0] : vector<64x8xf32> to vector<8xf32>
    %146 = vector.shape_cast %145 : vector<8xf32> to vector<1x8xf32>
    %cst_118 = arith.constant 1.562500e-02 : f32
    %147 = vector.broadcast %cst_118 : f32 to vector<1x8xf32>
    %148 = arith.mulf %146, %147 : vector<1x8xf32>
    %149 = vector.broadcast %148 : vector<1x8xf32> to vector<64x8xf32>
    %150 = arith.subf %140, %149 : vector<64x8xf32>
    %151 = arith.mulf %150, %150 : vector<64x8xf32>
    %cst_119 = arith.constant dense<0.000000e+00> : vector<8xf32>
    %152 = vector.multi_reduction <add>, %151, %cst_119 [0] : vector<64x8xf32> to vector<8xf32>
    %153 = vector.shape_cast %152 : vector<8xf32> to vector<1x8xf32>
    %cst_120 = arith.constant 1.562500e-02 : f32
    %154 = vector.broadcast %cst_120 : f32 to vector<1x8xf32>
    %155 = arith.mulf %153, %154 : vector<1x8xf32>
    %cst_121 = arith.constant 9.99999974E-6 : f32
    %156 = vector.broadcast %cst_121 : f32 to vector<1x8xf32>
    %157 = arith.addf %155, %156 : vector<1x8xf32>
    %158 = math.rsqrt %157 : vector<1x8xf32>
    %159 = vector.broadcast %158 : vector<1x8xf32> to vector<64x8xf32>
    %160 = arith.mulf %150, %159 : vector<64x8xf32>
    %161 = vector.broadcast %141 : vector<1x8xf32> to vector<64x8xf32>
    %162 = arith.mulf %160, %161 : vector<64x8xf32>
    %163 = vector.broadcast %142 : vector<1x8xf32> to vector<64x8xf32>
    %164 = arith.addf %162, %163 : vector<64x8xf32>
    %165 = arith.truncf %164 : vector<64x8xf32> to vector<64x8xbf16>
    %c0_122 = arith.constant 0 : index
    %c0_123 = arith.constant 0 : index
    %c0_124 = arith.constant 0 : index
    %166 = vector.load %arg16[%c0_122, %c0_123, %c0_124] : memref<3x8x8xbf16, #tpu.memory_space<vmem>>, vector<1x8x8xbf16>
    %167 = vector.shape_cast %166 : vector<1x8x8xbf16> to vector<8x8xbf16>
    %cst_125 = arith.constant dense<0.000000e+00> : vector<64x8xf32>
    %168 = tpu.matmul %165, %167, %cst_125 {dimension_numbers = #tpu.dot_dimension_numbers<[1], [0], [0], [1], [0, 0, 1, 1], [], []>} : vector<64x8xbf16>, vector<8x8xbf16>, vector<64x8xf32> -> vector<64x8xf32>
    %c0_126 = arith.constant 0 : index
    %c0_127 = arith.constant 0 : index
    %c0_128 = arith.constant 0 : index
    %169 = vector.load %arg17[%c0_126, %c0_127, %c0_128] : memref<3x1x8xf32, #tpu.memory_space<vmem>>, vector<1x1x8xf32>
    %170 = vector.shape_cast %169 : vector<1x1x8xf32> to vector<1x8xf32>
    %171 = vector.broadcast %170 : vector<1x8xf32> to vector<64x8xf32>
    %172 = arith.addf %168, %171 : vector<64x8xf32>
    %c1_129 = arith.constant 1 : index
    %c0_130 = arith.constant 0 : index
    %c0_131 = arith.constant 0 : index
    %173 = vector.load %arg16[%c1_129, %c0_130, %c0_131] : memref<3x8x8xbf16, #tpu.memory_space<vmem>>, vector<1x8x8xbf16>
    %174 = vector.shape_cast %173 : vector<1x8x8xbf16> to vector<8x8xbf16>
    %cst_132 = arith.constant dense<0.000000e+00> : vector<64x8xf32>
    %175 = tpu.matmul %165, %174, %cst_132 {dimension_numbers = #tpu.dot_dimension_numbers<[1], [0], [0], [1], [0, 0, 1, 1], [], []>} : vector<64x8xbf16>, vector<8x8xbf16>, vector<64x8xf32> -> vector<64x8xf32>
    %c1_133 = arith.constant 1 : index
    %c0_134 = arith.constant 0 : index
    %c0_135 = arith.constant 0 : index
    %176 = vector.load %arg17[%c1_133, %c0_134, %c0_135] : memref<3x1x8xf32, #tpu.memory_space<vmem>>, vector<1x1x8xf32>
    %177 = vector.shape_cast %176 : vector<1x1x8xf32> to vector<1x8xf32>
    %178 = vector.broadcast %177 : vector<1x8xf32> to vector<64x8xf32>
    %179 = arith.addf %175, %178 : vector<64x8xf32>
    %c2_136 = arith.constant 2 : index
    %c0_137 = arith.constant 0 : index
    %c0_138 = arith.constant 0 : index
    %180 = vector.load %arg16[%c2_136, %c0_137, %c0_138] : memref<3x8x8xbf16, #tpu.memory_space<vmem>>, vector<1x8x8xbf16>
    %181 = vector.shape_cast %180 : vector<1x8x8xbf16> to vector<8x8xbf16>
    %cst_139 = arith.constant dense<0.000000e+00> : vector<64x8xf32>
    %182 = tpu.matmul %165, %181, %cst_139 {dimension_numbers = #tpu.dot_dimension_numbers<[1], [0], [0], [1], [0, 0, 1, 1], [], []>} : vector<64x8xbf16>, vector<8x8xbf16>, vector<64x8xf32> -> vector<64x8xf32>
    %c2_140 = arith.constant 2 : index
    %c0_141 = arith.constant 0 : index
    %c0_142 = arith.constant 0 : index
    %183 = vector.load %arg17[%c2_140, %c0_141, %c0_142] : memref<3x1x8xf32, #tpu.memory_space<vmem>>, vector<1x1x8xf32>
    %184 = vector.shape_cast %183 : vector<1x1x8xf32> to vector<1x8xf32>
    %185 = vector.broadcast %184 : vector<1x8xf32> to vector<64x8xf32>
    %186 = arith.addf %182, %185 : vector<64x8xf32>
    %cst_143 = arith.constant 0.353553385 : f32
    %187 = vector.broadcast %cst_143 : f32 to vector<64x8xf32>
    %188 = arith.mulf %172, %187 : vector<64x8xf32>
    %189 = arith.truncf %188 : vector<64x8xf32> to vector<64x8xbf16>
    %190 = arith.truncf %179 : vector<64x8xf32> to vector<64x8xbf16>
    %191 = arith.truncf %186 : vector<64x8xf32> to vector<64x8xbf16>
    %cst_144 = arith.constant dense<0.000000e+00> : vector<64x64xf32>
    %192 = tpu.matmul %189, %190, %cst_144 {dimension_numbers = #tpu.dot_dimension_numbers<[1], [1], [0], [0], [0, 0, 1, 0], [], []>} : vector<64x8xbf16>, vector<64x8xbf16>, vector<64x64xf32> -> vector<64x64xf32>
    %cst_145 = arith.constant dense<0xFF800000> : vector<64xf32>
    %193 = vector.multi_reduction <maximumf>, %192, %cst_145 [1] : vector<64x64xf32> to vector<64xf32>
    %194 = vector.shape_cast %193 : vector<64xf32> to vector<64x1xf32>
    %195 = vector.broadcast %194 : vector<64x1xf32> to vector<64x64xf32>
    %196 = arith.subf %192, %195 : vector<64x64xf32>
    %197 = math.exp %196 : vector<64x64xf32>
    %cst_146 = arith.constant dense<0.000000e+00> : vector<64xf32>
    %198 = vector.multi_reduction <add>, %197, %cst_146 [1] : vector<64x64xf32> to vector<64xf32>
    %199 = vector.shape_cast %198 : vector<64xf32> to vector<64x1xf32>
    %200 = arith.truncf %197 : vector<64x64xf32> to vector<64x64xbf16>
    %cst_147 = arith.constant dense<0.000000e+00> : vector<64x8xf32>
    %201 = tpu.matmul %200, %191, %cst_147 {dimension_numbers = #tpu.dot_dimension_numbers<[1], [0], [0], [1], [0, 0, 1, 1], [], []>} : vector<64x64xbf16>, vector<64x8xbf16>, vector<64x8xf32> -> vector<64x8xf32>
    %202 = tpu.reciprocal %199 {approx = true} : vector<64x1xf32> -> vector<64x1xf32>
    %203 = vector.broadcast %202 : vector<64x1xf32> to vector<64x8xf32>
    %204 = arith.mulf %201, %203 : vector<64x8xf32>
    %205 = arith.truncf %204 : vector<64x8xf32> to vector<64x8xbf16>
    %cst_148 = arith.constant dense<0.000000e+00> : vector<64x8xf32>
    %206 = tpu.matmul %205, %143, %cst_148 {dimension_numbers = #tpu.dot_dimension_numbers<[1], [0], [0], [1], [0, 0, 1, 1], [], []>} : vector<64x8xbf16>, vector<8x8xbf16>, vector<64x8xf32> -> vector<64x8xf32>
    %207 = vector.broadcast %144 : vector<1x8xf32> to vector<64x8xf32>
    %208 = arith.addf %206, %207 : vector<64x8xf32>
    %cst_149 = arith.constant 1.000000e+00 : f32
    %209 = vector.broadcast %cst_149 : f32 to vector<64x8xf32>
    %210 = arith.mulf %209, %208 : vector<64x8xf32>
    %211 = arith.addf %140, %210 : vector<64x8xf32>
    %c0_150 = arith.constant 0 : index
    %c0_151 = arith.constant 0 : index
    %c0_152 = arith.constant 0 : index
    %212 = vector.load %arg20[%c0_150, %c0_151, %c0_152] : memref<1x64x8xf32, #tpu.memory_space<vmem>>, vector<1x64x8xf32>
    %213 = vector.shape_cast %212 : vector<1x64x8xf32> to vector<64x8xf32>
    %214 = vector.shape_cast %211 : vector<64x8xf32> to vector<1x64x8xf32>
    tpu.vector_store %arg20[%c0_150, %c0_151, %c0_152], %214 {strides = array<i32>} : memref<1x64x8xf32, #tpu.memory_space<vmem>>, vector<1x64x8xf32>,
    return
  }
  func.func @transform_0(%arg0: i32) -> (i32, i32, i32) {
    %c0_i32 = arith.constant 0 : i32
    %c0_i32_0 = arith.constant 0 : i32
    %c0_i32_1 = arith.constant 0 : i32
    return %arg0, %c0_i32, %c0_i32_0 : i32, i32, i32
  }
  func.func @transform_1(%arg0: i32) -> (i32, i32) {
    %c0_i32 = arith.constant 0 : i32
    %c0_i32_0 = arith.constant 0 : i32
    %c0_i32_1 = arith.constant 0 : i32
    return %c0_i32, %c0_i32_0 : i32, i32
  }
  func.func @transform_2(%arg0: i32) -> (i32, i32) {
    %c0_i32 = arith.constant 0 : i32
    %c0_i32_0 = arith.constant 0 : i32
    %c0_i32_1 = arith.constant 0 : i32
    return %c0_i32, %c0_i32_0 : i32, i32
  }
  func.func @transform_3(%arg0: i32) -> (i32, i32) {
    %c0_i32 = arith.constant 0 : i32
    %c0_i32_0 = arith.constant 0 : i32
    %c0_i32_1 = arith.constant 0 : i32
    return %c0_i32, %c0_i32_0 : i32, i32
  }
  func.func @transform_4(%arg0: i32) -> (i32, i32) {
    %c0_i32 = arith.constant 0 : i32
    %c0_i32_0 = arith.constant 0 : i32
    %c0_i32_1 = arith.constant 0 : i32
    return %c0_i32, %c0_i32_0 : i32, i32
  }
  func.func @transform_5(%arg0: i32) -> (i32, i32) {
    %c0_i32 = arith.constant 0 : i32
    %c0_i32_0 = arith.constant 0 : i32
    %c0_i32_1 = arith.constant 0 : i32
    return %c0_i32, %c0_i32_0 : i32, i32
  }
  func.func @transform_6(%arg0: i32) -> (i32, i32) {
    %c0_i32 = arith.constant 0 : i32
    %c0_i32_0 = arith.constant 0 : i32
    %c0_i32_1 = arith.constant 0 : i32
    return %c0_i32, %c0_i32_0 : i32, i32
  }
  func.func @transform_7(%arg0: i32) -> (i32, i32) {
    %c0_i32 = arith.constant 0 : i32
    %c0_i32_0 = arith.constant 0 : i32
    %c0_i32_1 = arith.constant 0 : i32
    return %c0_i32, %c0_i32_0 : i32, i32
  }
  func.func @transform_8(%arg0: i32) -> (i32, i32) {
    %c0_i32 = arith.constant 0 : i32
    %c0_i32_0 = arith.constant 0 : i32
    %c0_i32_1 = arith.constant 0 : i32
    return %c0_i32, %c0_i32_0 : i32, i32
  }
  func.func @transform_9(%arg0: i32) -> (i32, i32) {
    %c0_i32 = arith.constant 0 : i32
    %c0_i32_0 = arith.constant 0 : i32
    %c0_i32_1 = arith.constant 0 : i32
    return %c0_i32, %c0_i32_0 : i32, i32
  }
  func.func @transform_10(%arg0: i32) -> (i32, i32) {
    %c0_i32 = arith.constant 0 : i32
    %c0_i32_0 = arith.constant 0 : i32
    %c0_i32_1 = arith.constant 0 : i32
    return %c0_i32, %c0_i32_0 : i32, i32
  }
  func.func @transform_11(%arg0: i32) -> (i32, i32) {
    %c0_i32 = arith.constant 0 : i32
    %c0_i32_0 = arith.constant 0 : i32
    %c0_i32_1 = arith.constant 0 : i32
    return %c0_i32, %c0_i32_0 : i32, i32
  }
  func.func @transform_12(%arg0: i32) -> (i32, i32) {
    %c0_i32 = arith.constant 0 : i32
    %c0_i32_0 = arith.constant 0 : i32
    %c0_i32_1 = arith.constant 0 : i32
    return %c0_i32, %c0_i32_0 : i32, i32
  }
  func.func @transform_13(%arg0: i32) -> (i32, i32) {
    %c0_i32 = arith.constant 0 : i32
    %c0_i32_0 = arith.constant 0 : i32
    %c0_i32_1 = arith.constant 0 : i32
    return %c0_i32, %c0_i32_0 : i32, i32
  }
  func.func @transform_14(%arg0: i32) -> (i32, i32) {
    %c0_i32 = arith.constant 0 : i32
    %c0_i32_0 = arith.constant 0 : i32
    %c0_i32_1 = arith.constant 0 : i32
    return %c0_i32, %c0_i32_0 : i32, i32
  }
  func.func @transform_15(%arg0: i32) -> (i32, i32, i32) {
    %c0_i32 = arith.constant 0 : i32
    %c0_i32_0 = arith.constant 0 : i32
    %c0_i32_1 = arith.constant 0 : i32
    %c0_i32_2 = arith.constant 0 : i32
    return %c0_i32, %c0_i32_0, %c0_i32_1 : i32, i32, i32
  }
  func.func @transform_16(%arg0: i32) -> (i32, i32, i32) {
    %c0_i32 = arith.constant 0 : i32
    %c0_i32_0 = arith.constant 0 : i32
    %c0_i32_1 = arith.constant 0 : i32
    %c0_i32_2 = arith.constant 0 : i32
    return %c0_i32, %c0_i32_0, %c0_i32_1 : i32, i32, i32
  }
  func.func @transform_17(%arg0: i32) -> (i32, i32) {
    %c0_i32 = arith.constant 0 : i32
    %c0_i32_0 = arith.constant 0 : i32
    %c0_i32_1 = arith.constant 0 : i32
    return %c0_i32, %c0_i32_0 : i32, i32
  }
  func.func @transform_18(%arg0: i32) -> (i32, i32) {
    %c0_i32 = arith.constant 0 : i32
    %c0_i32_0 = arith.constant 0 : i32
    %c0_i32_1 = arith.constant 0 : i32
    return %c0_i32, %c0_i32_0 : i32, i32
  }
  func.func @transform_19(%arg0: i32) -> (i32, i32, i32) {
    %c0_i32 = arith.constant 0 : i32
    %c0_i32_0 = arith.constant 0 : i32
    %c0_i32_1 = arith.constant 0 : i32
    return %arg0, %c0_i32, %c0_i32_0 : i32, i32, i32
  }
}

</mosaic_0001>

<bundles_post_ra>
// kernel: _lambda_.1
= control target key start
LH: loop header
LB: loop body
LE: loop exit
PB: predicated region body
PF: predicated region fallthrough
CT: control target
= control target key end

     0   :  { %s5438_s0 = inlined_call_operand.vmem [shape: f32[2,64,16], index: 0, kind: input, shape index: {}]   ;;  %s5439_s1 = inlined_call_operand.vmem [shape: f32[1,16], index: 1, kind: input, shape index: {}]   ;;  %s5440_s2 = inlined_call_operand.vmem [shape: f32[1,16], index: 2, kind: input, shape index: {}]   ;;  %s5441_s3 = inlined_call_operand.vmem [shape: bf16[64,8], index: 3, kind: input, shape index: {}]   ;;  %s5442_s4 = inlined_call_operand.vmem [shape: f32[1,8], index: 4, kind: input, shape index: {}, may-alias: {4,6,8,12,14,18}]   ;;  %s5443_s5 = inlined_call_operand.vmem [shape: bf16[76,8], index: 5, kind: input, shape index: {}]   ;;  %s5444_s6 = inlined_call_operand.vmem [shape: f32[1,8], index: 6, kind: input, shape index: {}, may-alias: {4,6,8,12,14,18}]   ;;  %s5445_s7 = inlined_call_operand.vmem [shape: f32[1,8], index: 7, kind: input, shape index: {}, may-alias: {7,13}]   ;;  %s5446_s8 = inlined_call_operand.vmem [shape: f32[1,8], index: 8, kind: input, shape index: {}, may-alias: {4,6,8,12,14,18}]   ;;  %s5447_s9 = inlined_call_operand.vmem [shape: bf16[8,4], index: 9, kind: input, shape index: {}]   ;;  %s5448_s10 = inlined_call_operand.vmem [shape: f32[1,4], index: 10, kind: input, shape index: {}]   ;;  %s5449_s11 = inlined_call_operand.vmem [shape: bf16[4,8], index: 11, kind: input, shape index: {}]   ;;  %s5450_s12 = inlined_call_operand.vmem [shape: f32[1,8], index: 12, kind: input, shape index: {}, may-alias: {4,6,8,12,14,18}]   ;;  %s5451_s13 = inlined_call_operand.vmem [shape: f32[1,8], index: 13, kind: input, shape index: {}, may-alias: {7,13}]   ;;  %s5452_s14 = inlined_call_operand.vmem [shape: f32[1,8], index: 14, kind: input, shape index: {}, may-alias: {4,6,8,12,14,18}]   ;;  %s5453_s15 = inlined_call_operand.vmem [shape: bf16[3,8,8], index: 15, kind: input, shape index: {}]   ;;  %s5454_s16 = inlined_call_operand.vmem [shape: f32[3,1,8], index: 16, kind: input, shape index: {}]   ;;  %s5455_s17 = inlined_call_operand.vmem [shape: bf16[8,8], index: 17, kind: input, shape index: {}]   ;;  %s5456_s18 = inlined_call_operand.vmem [shape: f32[1,8], index: 18, kind: input, shape index: {}, may-alias: {4,6,8,12,14,18}]   ;;  %s5457_s19 = inlined_call_operand.vmem [shape: f32[2,64,8], index: 19, kind: output, shape index: {}]  }
   0x1   :  { %5460 = sst [smem:[#allocation4_spill]] %s5438_s0  ;;  %s4370_s0 = smov 0  }
   0x2   :  { %5461 = sst [smem:[#allocation5_spill]] %s5439_s1 }
   0x3   :  { %5462 = sst [smem:[#allocation6_spill]] %s5440_s2 }
   0x4   :  { %5463 = sst [smem:[#allocation7_spill]] %s5441_s3 }
   0x5 LB: > { %s3670_s30 = sadd.s32 4294967295, %s4251_s0   ;;  %p3674_p0 = scmp.ge.s32.totalorder %s4251_s0, 1  ;;  %s4251_s0 = sphi %s4370_s0, %s29_s0  }
   0x6   : > { %p537_p1 = scmp.lt.s32.totalorder %s4251_s0, 3 }
   0x8   : > { %p538_p2 = pnand %p3674_p0, %p537_p1 }
   0x9   : > { %p593_p3 = scmp.lt.s32.totalorder (!%p538_p2), %s3670_s30, 1  ;;  %vm634_vm0 = vcmask (!%p538_p2), 130048   ;;  %s5464_s22 = sld [smem:[#allocation4_spill]] (!%p538_p2)  ;;  %v686_v35 = vlaneseq (!%p538_p2)  ;;  %vm679_vm1 = vcmask (!%p538_p2), 31744   ;;  %vm681_vm2 = vcmask (!%p538_p2), 64512  }
   0xa   : > { %541 = sbr.rel (%p538_p2) target bundleno = 3178 (0xc6a), region = 96  ;;  %s4253_s23 = smov (!%p538_p2), 124   ;;  %vm683_vm3 = vcmask (!%p538_p2), 97280   ;;  %vm800_vm4 = vcmask (!%p538_p2), 125952   ;;  %vm802_vm5 = vcmask (!%p538_p2), 122880   ;;  %vm1291_vm10 = vcmask (!%p538_p2), 261120  }
   0xb   : > { %s4254_s24 = smov (!%p538_p2), 116   ;;  %s4255_s25 = smov (!%p538_p2), 120   ;;  %v687_v37 = vshrl.u32 (!%p538_p2), %v686_v35, 7  ;;  %vm803_vm6 = vsmask.f32 (!%p538_p2), 256  ;;  %vm1308_vm11 = vcmask (!%p538_p2), 392192  }
   0xc   : > { %s4256_s3 = smov (!%p538_p2), 8   ;;  %s4257_s26 = smov (!%p538_p2), 4   ;;  %vm4465_vm7 = vmand (!%p538_p2), %vm802_vm5, %vm803_vm6  ;;  %vm937_vm8 = vsmask.f32 (!%p538_p2), 7938  ;;  %vm1375_vm12 = vcmask (!%p538_p2), 523264   ;;  %vm1461_vm13 = vcmask (!%p538_p2), 60416  }
   0xd   : > { %s4258_s27 = smov (!%p538_p2), 12   ;;  %v4412_v41 = vsub.s32 (!%p538_p2), 0, %v687_v37  ;;  %v817_v37 = vld [vmem:[#allocation2 + $0x18] sm:$0x1] (!%p538_p2)  ;;  %s4260_s28 = smov (!%p538_p2), 16   ;;  %vm4519_vm9 = vmand (!%p538_p2), %vm800_vm4, %vm937_vm8  ;;  %vm1463_vm14 = vcmask (!%p538_p2), 57344  }
   0xe   : > { %s5467_s1 = sld [smem:[#allocation5_spill]] (!%p538_p2)  ;;  %s5471_s29 = sld [smem:[#allocation7_spill]] (!%p538_p2)  ;;  %vm4678_vm15 = vmand (!%p538_p2), %vm1463_vm14, %vm803_vm6  ;;  %vm2551_vm5 = vcmask (!%p538_p2), 1045504   ;;  %vm2367_vm6 = vcmask (!%p538_p2), 195584  }
   0xf   : > { %s4263_s21 = smov (!%p538_p2), 72  }
  0x11   : > { %s5480_s30 = smov (!%p593_p3, %s3670_s30), 1 }
  0x12   : > { %s5459_s20 = sshll.u32 %s5480_s30, 6 }
  0x13   : > { %s4386_s2 = scalar_lea.vmem %s5464_s22, %s5459_s20  ;;  %s4265_s22 = smov 64  }
  0x14   : > { %v604_v0 = vld [vmem:[%s4386_s2] sm:$0xff]  ;;  %v605_v1 = vld [vmem:[%s4386_s2 + $0x8] sm:$0xff]  ;;  %v606_v2 = vld [vmem:[%s4386_s2 + $0x10] sm:$0xff] }
  0x15   : > { %v607_v3 = vld [vmem:[%s4386_s2 + $0x18] sm:$0xff]  ;;  %v635_v4 = vsel %vm634_vm0, %v604_v0, 0.0  ;;  %v636_v5 = vsel %vm634_vm0, %v605_v1, 0.0  ;;  %v638_v6 = vsel %vm634_vm0, %v606_v2, 0.0  ;;  %v608_v7 = vld [vmem:[%s4386_s2 + $0x20] sm:$0xff]  ;;  %v609_v9 = vld [vmem:[%s4386_s2 + $0x28] sm:$0xff] }
  0x16   : > { %v637_v8 = vadd.f32 %v636_v5, %v635_v4  ;;  %v640_v10 = vsel %vm634_vm0, %v607_v3, 0.0  ;;  %v642_v12 = vsel %vm634_vm0, %v608_v7, 0.0  ;;  %v610_v13 = vld [vmem:[%s4386_s2 + $0x30] sm:$0xff]  ;;  %v644_v15 = vsel %vm634_vm0, %v609_v9, 0.0  ;;  %v611_v16 = vld [vmem:[%s4386_s2 + $0x38] sm:$0xff] }
  0x17   : > { %v646_v18 = vsel %vm634_vm0, %v610_v13, 0.0  ;;  %v648_v20 = vsel %vm634_vm0, %v611_v16, 0.0 }
  0x18   : > { %v639_v11 = vadd.f32 %v638_v6, %v637_v8 }
  0x1a   : > { %v641_v14 = vadd.f32 %v640_v10, %v639_v11 }
  0x1c   : > { %v643_v17 = vadd.f32 %v642_v12, %v641_v14 }
  0x1e   : > { %v645_v19 = vadd.f32 %v644_v15, %v643_v17 }
  0x20   : > { %v647_v21 = vadd.f32 %v646_v18, %v645_v19 }
  0x22   : > { %v649_v22 = vadd.f32 %v648_v20, %v647_v21 }
  0x24   : > { %v650_v23 = vrot.slane %v649_v22, 4 }
  0x26   : > { %v651_v24 = vadd.f32 %v650_v23, %v649_v22 }
  0x28   : > { %v652_v25 = vrot.slane %v651_v24, 2 }
  0x2a   : > { %v653_v26 = vadd.f32 %v652_v25, %v651_v24  ;;  %v4259_v25 = vmov 0  }
  0x2b   : > { %801 = vst.msk [vmem:[#allocation2] sm:$0xf] %vm800_vm4, %v4259_v25  ;;  %vm4760_vm4 = vmand %vm1461_vm13, %vm937_vm8 }
  0x2c   : > { %v654_v27 = vrot.slane %v653_v26, 1  ;;  %1462 = vst.msk [vmem:[#allocation3] sm:$0xf] %vm1461_vm13, %v4259_v25 }
  0x2d   : > { %1464 = vst.msk [vmem:[#allocation3 + $0x4] sm:$0x1] %vm1463_vm14, %v4259_v25  ;;  %1499 = vst.msk [vmem:[#allocation3 + $0x4c] sm:$0x1] %vm1463_vm14, %v4259_v25 }
  0x2e   : > { %v655_v28 = vadd.f32 %v654_v27, %v653_v26  ;;  %v805_v26 = vld [vmem:[#allocation2 + $0x4] sm:$0x1]  ;;  %v4123_v27 = vld [vmem:[%s5471_s29 + $0x8] sm:$0xff]  }
  0x30   : > { %657 = vrot.lane.b32.xlu0 %v655_v28, %s4253_s23  ;;  %665 = vrot.lane.b32.xlu1 %v655_v28, %s4254_s24 }
  0x34   : > { %661 = vrot.lane.b32.xlu0 %v655_v28, %s4255_s25 }
  0xa2   : > { %v658_v29 = vpop.permute.xlu0 %657  ;;  %v666_v32 = vpop.permute.xlu1 %665 }
  0xa3   : > { %v660_v30 = vadd.f32 %v658_v29, %v655_v28  ;;  %v814_v28 = vld [vmem:[#allocation2 + $0x10] sm:$0x1]  ;;  %v806_v29 = vsel %vm4465_vm7, 0, %v805_v26 }
  0xa4   : > { %807 = vst [vmem:[#allocation2 + $0x4] sm:$0x1] %v806_v29 }
  0xa6   : > { %v662_v31 = vpop.permute.xlu0 %661 }
  0xa7   : > { %v664_v33 = vadd.f32 %v662_v31, %v660_v30  ;;  %v808_v30 = vld [vmem:[#allocation2] sm:$0x1]  ;;  %v815_v31 = vsel %vm4465_vm7, 0, %v814_v28 }
  0xa8   : > { %816 = vst [vmem:[#allocation2 + $0x10] sm:$0x1] %v815_v31 }
  0xa9   : > { %v668_v34 = vadd.f32 %v666_v32, %v664_v33  ;;  %v809_v32 = vsel %vm4465_vm7, 0, %v808_v30  ;;  %v811_v33 = vld [vmem:[#allocation2 + $0x8] sm:$0x1] }
  0xaa   : > { %810 = vst [vmem:[#allocation2] sm:$0x1] %v809_v32  ;;  %v812_v35 = vsel %vm4465_vm7, 0, %v811_v33 }
  0xab   : > { %673 = vrot.lane.b32.xlu0 %v668_v34, %s4256_s3  ;;  %670 = vrot.lane.b32.xlu1 %v668_v34, %s4257_s26  ;;  %813 = vst [vmem:[#allocation2 + $0x8] sm:$0x1] %v812_v35 }
  0xaf   : > { %676 = vrot.lane.b32.xlu1 %v668_v34, %s4258_s27 }
 0x11d   : > { %v671_v36 = vpop.permute.xlu1 %670  ;;  %v674_v38 = vpop.permute.xlu0 %673 }
 0x11e   : > { %v680_v39 = vsel %vm679_vm1, %v668_v34, %v671_v36  ;;  %v820_v34 = vld [vmem:[#allocation2 + $0x20] sm:$0x1] }
 0x11f   : > { %v682_v40 = vsel %vm681_vm2, %v680_v39, %v674_v38  ;;  %v821_v36 = vsel %vm4465_vm7, 0, %v820_v34  ;;  %v826_v38 = vld [vmem:[#allocation2 + $0x30] sm:$0x1]  ;;  %v818_v39 = vsel %vm4465_vm7, 0, %v817_v37 }
 0x120   : > { %822 = vst [vmem:[#allocation2 + $0x20] sm:$0x1] %v821_v36  ;;  %819 = vst [vmem:[#allocation2 + $0x18] sm:$0x1] %v818_v39 }
 0x121   : > { %v677_v42 = vpop.permute.xlu1 %676 }
 0x122   : > { %v684_v43 = vsel %vm683_vm3, %v682_v40, %v677_v42  ;;  %v827_v40 = vsel %vm4465_vm7, 0, %v826_v38  ;;  %v823_v42 = vld [vmem:[#allocation2 + $0x28] sm:$0x1] }
 0x123   : > { %v685_v44 = vmul.f32 0.00390625, %v684_v43  ;;  %828 = vst [vmem:[#allocation2 + $0x30] sm:$0x1] %v827_v40  ;;  %v824_v43 = vsel %vm4465_vm7, 0, %v823_v42  ;;  %v945_v40 = vld [vmem:[#allocation2 + $0x10] sm:$0xf] }
 0x124   : > { %825 = vst [vmem:[#allocation2 + $0x28] sm:$0x1] %v824_v43  ;;  %v948_v42 = vld [vmem:[#allocation2 + $0x14] sm:$0x1] }
 0x125   : > { %v689_v45 = vrot.slane %v685_v44, %v4412_v41  ;;  %v832_v44 = vld [vmem:[#allocation2 + $0x40] sm:$0x1] }
 0x127   : > { %v4416_v46 = vsub.f32 %v604_v0, %v689_v45  ;;  %v4418_v47 = vsub.f32 %v605_v1, %v689_v45  ;;  %v4420_v48 = vsub.f32 %v606_v2, %v689_v45  ;;  %v4422_v49 = vsub.f32 %v607_v3, %v689_v45 }
 0x128   : > { %v4424_v50 = vsub.f32 %v608_v7, %v689_v45  ;;  %v4432_v54 = vsub.f32 %v609_v9, %v689_v45  ;;  %v4438_v59 = vsub.f32 %v610_v13, %v689_v45  ;;  %v4443_v63 = vsub.f32 %v611_v16, %v689_v45 }
 0x129   : > { %v698_v51 = vmul.f32 %v4416_v46, %v4416_v46  ;;  %v699_v52 = vmul.f32 %v4418_v47, %v4418_v47  ;;  %v700_v53 = vmul.f32 %v4420_v48, %v4420_v48  ;;  %v701_v55 = vmul.f32 %v4422_v49, %v4422_v49 }
 0x12a   : > { %v702_v60 = vmul.f32 %v4424_v50, %v4424_v50  ;;  %v703_v0 = vmul.f32 %v4432_v54, %v4432_v54  ;;  %v704_v3 = vmul.f32 %v4438_v59, %v4438_v59  ;;  %v705_v6 = vmul.f32 %v4443_v63, %v4443_v63 }
 0x12b   : > { %v706_v56 = vsel %vm634_vm0, %v698_v51, 0.0  ;;  %v707_v57 = vsel %vm634_vm0, %v699_v52, 0.0  ;;  %v709_v61 = vsel %vm634_vm0, %v700_v53, 0.0  ;;  %v711_v1 = vsel %vm634_vm0, %v701_v55, 0.0  ;;  %v995_v51 = vld [vmem:[#allocation2 + $0x4] sm:$0x1] }
 0x12c   : > { %v708_v58 = vadd.f32 %v707_v57, %v706_v56  ;;  %v713_v4 = vsel %vm634_vm0, %v702_v60, 0.0  ;;  %v715_v7 = vsel %vm634_vm0, %v703_v0, 0.0  ;;  %v717_v9 = vsel %vm634_vm0, %v704_v3, 0.0  ;;  %v4487_v52 = vld [vmem:[#allocation2] sm:$0xf] }
 0x12d   : > { %v719_v11 = vsel %vm634_vm0, %v705_v6, 0.0  ;;  %v833_v45 = vsel %vm4465_vm7, 0, %v832_v44  ;;  %v829_v53 = vld [vmem:[#allocation2 + $0x38] sm:$0x1]  ;;  %v3689_v55 = vcombine.low %v4487_v52, %v995_v51  ;;  %v939_v44 = vld [vmem:[#allocation2 + $0x8] sm:$0xf] }
 0x12e   : > { %v710_v62 = vadd.f32 %v709_v61, %v708_v58  ;;  %834 = vst [vmem:[#allocation2 + $0x40] sm:$0x1] %v833_v45  ;;  %v830_v58 = vsel %vm4465_vm7, 0, %v829_v53  ;;  %v942_v45 = vld [vmem:[#allocation2 + $0xc] sm:$0x1] }
 0x12f   : > { %v1060_v56 = vshrl.u32 %v3689_v55, 16  ;;  %v1062_v57 = vshll.u32 %v3689_v55, 16  ;;  %831 = vst [vmem:[#allocation2 + $0x38] sm:$0x1] %v830_v58  ;;  %v957_v58 = vld [vmem:[#allocation2 + $0x20] sm:$0xf] }
 0x130   : > { %v712_v2 = vadd.f32 %v711_v1, %v710_v62 }
 0x131   : > { %v1064_v60 = vrot.slane %v1062_v57, 1 }
 0x132   : > { %v714_v5 = vadd.f32 %v713_v4, %v712_v2 }
 0x133   : > { %v1065_v61 = vor.u32 %v1064_v60, %v1060_v56 }
 0x134   : > { %v716_v8 = vadd.f32 %v715_v7, %v714_v5 }
 0x136   : > { %v718_v10 = vadd.f32 %v717_v9, %v716_v8  ;;  %v3679_v9 = vld [vmem:[%s5467_s1] ss:$0 sm:$0xff]  ;;  %s4264_s1 = smov 56  }
 0x138   : > { %v720_v12 = vadd.f32 %v719_v11, %v718_v10 }
 0x13a   : > { %v721_v13 = vrot.slane %v720_v12, 4 }
 0x13c   : > { %v722_v14 = vadd.f32 %v721_v13, %v720_v12 }
 0x13e   : > { %v723_v15 = vrot.slane %v722_v14, 2 }
 0x140   : > { %v724_v16 = vadd.f32 %v723_v15, %v722_v14 }
 0x142   : > { %v725_v17 = vrot.slane %v724_v16, 1 }
 0x144   : > { %v726_v18 = vadd.f32 %v725_v17, %v724_v16 }
 0x146   : > { %732 = vrot.lane.b32.xlu1 %v726_v18, %s4255_s25  ;;  %728 = vrot.lane.b32.xlu0 %v726_v18, %s4253_s23  ;;  %s4261_s25 = smov 32   ;;  %s4267_s23 = smov 40  }
 0x14a   : > { %736 = vrot.lane.b32.xlu0 %v726_v18, %s4254_s24  ;;  %s5468_s24 = sld [smem:[#allocation6_spill]] }
 0x1b8   : > { %v729_v19 = vpop.permute.xlu0 %728  ;;  %v733_v21 = vpop.permute.xlu1 %732 }
 0x1b9   : > { %v731_v20 = vadd.f32 %v729_v19, %v726_v18  ;;  %v3680_v18 = vld [vmem:[%s5468_s24] ss:$0 sm:$0xff] }
 0x1bb   : > { %v735_v22 = vadd.f32 %v733_v21, %v731_v20 }
 0x1bc   : > { %v737_v23 = vpop.permute.xlu0 %736 }
 0x1bd   : > { %v739_v24 = vadd.f32 %v737_v23, %v735_v22 }
 0x1bf   : > { %744 = vrot.lane.b32.xlu0 %v739_v24, %s4256_s3  ;;  %741 = vrot.lane.b32.xlu1 %v739_v24, %s4257_s26  ;;  %s4266_s26 = smov 24  }
 0x1c3   : > { %747 = vrot.lane.b32.xlu1 %v739_v24, %s4258_s27  ;;  %1115 = vrot.lane.b32.xlu0 %v1065_v61, %s4260_s28  ;;  %s4262_s27 = smov 48  }
 0x231   : > { %v742_v62 = vpop.permute.xlu1 %741  ;;  %v745_v0 = vpop.permute.xlu0 %744 }
 0x232   : > { %v750_v1 = vsel %vm679_vm1, %v739_v24, %v742_v62 }
 0x233   : > { %v751_v2 = vsel %vm681_vm2, %v750_v1, %v745_v0  ;;  %v960_v1 = vld [vmem:[#allocation2 + $0x24] sm:$0x1] }
 0x235   : > { %v748_v3 = vpop.permute.xlu1 %747 }
 0x236   : > { %v752_v4 = vsel %vm683_vm3, %v751_v2, %v748_v3  ;;  %vm4685_vm3 = vmand %vm1463_vm14, %vm937_vm8  ;;  %vm2433_vm8 = vcmask 457728  }
 0x237   : > { %v753_v5 = vmul.f32 0.00390625, %v752_v4 }
 0x239   : > { %v754_v6 = vadd.f32 1e-05, %v753_v5 }
 0x23b   : > { %4195 = vrsqrt.f32 %v754_v6 }
 0x245   : > { %v4196_v7 = vpop.eup %4195 }
 0x246   : > { %v759_v8 = vrot.slane %v4196_v7, %v4412_v41 }
 0x248   : > { %v760_v10 = vmul.f32 %v759_v8, %v4416_v46  ;;  %v761_v11 = vmul.f32 %v759_v8, %v4418_v47  ;;  %v762_v12 = vmul.f32 %v759_v8, %v4420_v48  ;;  %v763_v13 = vmul.f32 %v759_v8, %v4422_v49 }
 0x249   : > { %v764_v14 = vmul.f32 %v759_v8, %v4424_v50  ;;  %v765_v15 = vmul.f32 %v759_v8, %v4432_v54  ;;  %v766_v16 = vmul.f32 %v759_v8, %v4438_v59  ;;  %v767_v17 = vmul.f32 %v759_v8, %v4443_v63 }
 0x24a   : > { %v774_v19 = vmul.f32 %v3679_v9, %v760_v10  ;;  %v775_v46 = vmul.f32 %v3679_v9, %v761_v11  ;;  %v776_v20 = vmul.f32 %v3679_v9, %v762_v12  ;;  %v777_v47 = vmul.f32 %v3679_v9, %v763_v13  ;;  %v954_v10 = vld [vmem:[#allocation2 + $0x1c] sm:$0x1] }
 0x24b   : > { %v778_v21 = vmul.f32 %v3679_v9, %v764_v14  ;;  %v779_v48 = vmul.f32 %v3679_v9, %v765_v15  ;;  %v780_v22 = vmul.f32 %v3679_v9, %v766_v16  ;;  %v781_v49 = vmul.f32 %v3679_v9, %v767_v17  ;;  %v951_v9 = vld [vmem:[#allocation2 + $0x18] sm:$0xf] }
 0x24c   : > { %v789_v23 = vadd.f32 %v3680_v18, %v775_v46  ;;  %v788_v50 = vadd.f32 %v3680_v18, %v774_v19  ;;  %v791_v24 = vadd.f32 %v3680_v18, %v777_v47  ;;  %v790_v54 = vadd.f32 %v3680_v18, %v776_v20 }
 0x24d   : > { %v793_v26 = vadd.f32 %v3680_v18, %v779_v48  ;;  %v792_v59 = vadd.f32 %v3680_v18, %v778_v21  ;;  %v795_v28 = vadd.f32 %v3680_v18, %v781_v49  ;;  %v794_v63 = vadd.f32 %v3680_v18, %v780_v22  ;;  %v969_v21 = vld [vmem:[#allocation2 + $0x30] sm:$0xf]  ;;  %v972_v22 = vld [vmem:[#allocation2 + $0x34] sm:$0x1] }
 0x24e   : > { %v3866_v29 = vpack.c.bf16 %v789_v23, %v789_v23  ;;  %v3865_v30 = vpack.c.bf16 %v788_v50, %v788_v50  ;;  %v3868_v31 = vpack.c.bf16 %v791_v24, %v791_v24  ;;  %v3867_v32 = vpack.c.bf16 %v790_v54, %v790_v54  ;;  %v963_v24 = vld [vmem:[#allocation2 + $0x28] sm:$0xf]  ;;  %v966_v54 = vld [vmem:[#allocation2 + $0x2c] sm:$0x1] }
 0x24f   : > { %v3870_v33 = vpack.c.bf16 %v793_v26, %v793_v26  ;;  %v4511_v34 = vpack.c.bf16 %v792_v59, %v792_v59  ;;  %v4513_v35 = vpack.c.bf16 %v795_v28, %v795_v28  ;;  %v4515_v39 = vpack.c.bf16 %v794_v63, %v794_v63 }
 0x250   : > { %v864_v36 = vshrl.u32 %v3866_v29, 16  ;;  %v867_v37 = vshll.u32 %v3866_v29, 16  ;;  %v856_v38 = vshrl.u32 %v3865_v30, 16  ;;  %v859_v43 = vshll.u32 %v3865_v30, 16 }
 0x251   : > { %v880_v51 = vshrl.u32 %v3868_v31, 16  ;;  %v883_v53 = vshll.u32 %v3868_v31, 16  ;;  %v872_v55 = vshrl.u32 %v3867_v32, 16  ;;  %v875_v60 = vshll.u32 %v3867_v32, 16 }
 0x252   : > { %v866_v56 = vrot.slane %v864_v36, 7  ;;  %v858_v57 = vrot.slane %v856_v38, 7  ;;  %v896_v61 = vshrl.u32 %v3870_v33, 16  ;;  %v899_v3 = vshll.u32 %v3870_v33, 16 }
 0x253   : > { %v882_v0 = vrot.slane %v880_v51, 7  ;;  %v874_v2 = vrot.slane %v872_v55, 7  ;;  %v888_v4 = vshrl.u32 %v4511_v34, 16  ;;  %v891_v23 = vshll.u32 %v4511_v34, 16 }
 0x254   : > { %v869_v5 = vor.u32 %v867_v37, %v866_v56  ;;  %v870_v6 = vrot.slane %v866_v56, 4  ;;  %v861_v7 = vor.u32 %v859_v43, %v858_v57  ;;  %v862_v8 = vrot.slane %v858_v57, 4 }
 0x255   : > { %v885_v11 = vor.u32 %v883_v53, %v882_v0  ;;  %v886_v12 = vrot.slane %v882_v0, 4  ;;  %v877_v13 = vor.u32 %v875_v60, %v874_v2  ;;  %v878_v14 = vrot.slane %v874_v2, 4 }
 0x256   : > { %v946_v15 = vsel %vm4519_vm9, %v869_v5, %v945_v40  ;;  %v949_v16 = vsel %vm4465_vm7, %v870_v6, %v948_v42  ;;  %v940_v17 = vsel %vm4519_vm9, %v861_v7, %v939_v44  ;;  %v943_v18 = vsel %vm4465_vm7, %v862_v8, %v942_v45  ;;  %v981_v40 = vld [vmem:[#allocation2 + $0x40] sm:$0xf]  ;;  %v975_v44 = vld [vmem:[#allocation2 + $0x38] sm:$0xf] }
 0x257   : > { %947 = vst [vmem:[#allocation2 + $0x10] sm:$0xf] %v946_v15  ;;  %950 = vst [vmem:[#allocation2 + $0x14] sm:$0x1] %v949_v16  ;;  %v958_v19 = vsel %vm4519_vm9, %v885_v11, %v957_v58  ;;  %v961_v46 = vsel %vm4465_vm7, %v886_v12, %v960_v1  ;;  %v952_v20 = vsel %vm4519_vm9, %v877_v13, %v951_v9  ;;  %v898_v48 = vrot.slane %v896_v61, 7  ;;  %v4122_v7 = vld [vmem:[%s5471_s29] sm:$0xff]  }
 0x258   : > { %941 = vst [vmem:[#allocation2 + $0x8] sm:$0xf] %v940_v17  ;;  %944 = vst [vmem:[#allocation2 + $0xc] sm:$0x1] %v943_v18  ;;  %v955_v47 = vsel %vm4465_vm7, %v878_v14, %v954_v10  ;;  %v890_v49 = vrot.slane %v888_v4, 7  ;;  %v912_v50 = vshrl.u32 %v4513_v35, 16  ;;  %3946 = vmatprep.subr.bf16.mxu0 %v4122_v7 }
 0x259   : > { %959 = vst [vmem:[#allocation2 + $0x20] sm:$0xf] %v958_v19  ;;  %962 = vst [vmem:[#allocation2 + $0x24] sm:$0x1] %v961_v46  ;;  %v904_v26 = vshrl.u32 %v4515_v39, 16  ;;  %v901_v59 = vor.u32 %v899_v3, %v898_v48  ;;  %v902_v28 = vrot.slane %v898_v48, 4  ;;  %3947 = vmatpush3.bf16.msra.mxu0 %v4122_v7 }
 0x25a   : > { %953 = vst [vmem:[#allocation2 + $0x18] sm:$0xf] %v952_v20  ;;  %956 = vst [vmem:[#allocation2 + $0x1c] sm:$0x1] %v955_v47  ;;  %v893_v63 = vor.u32 %v891_v23, %v890_v49  ;;  %v894_v29 = vrot.slane %v890_v49, 4  ;;  %v914_v30 = vrot.slane %v912_v50, 7  ;;  %3948 = vmatprep.subr.bf16.mxu0 %v4123_v27 }
 0x25b   : > { %v915_v31 = vshll.u32 %v4513_v35, 16  ;;  %v906_v32 = vrot.slane %v904_v26, 7  ;;  %v907_v33 = vshll.u32 %v4515_v39, 16  ;;  %v970_v36 = vsel %vm4519_vm9, %v901_v59, %v969_v21  ;;  %v984_v39 = vld [vmem:[#allocation2 + $0x44] sm:$0x1] }
 0x25c   : > { %v973_v34 = vsel %vm4465_vm7, %v902_v28, %v972_v22  ;;  %v964_v37 = vsel %vm4519_vm9, %v893_v63, %v963_v24  ;;  %v967_v38 = vsel %vm4465_vm7, %v894_v29, %v966_v54  ;;  %971 = vst [vmem:[#allocation2 + $0x30] sm:$0xf] %v970_v36  ;;  %v918_v42 = vrot.slane %v914_v30, 4  ;;  %v978_v58 = vld [vmem:[#allocation2 + $0x3c] sm:$0x1]  ;;  %v4124_v22 = vld [vmem:[%s5471_s29 + $0x10] sm:$0xff]  }
 0x25d   : > { %974 = vst [vmem:[#allocation2 + $0x34] sm:$0x1] %v973_v34  ;;  %965 = vst [vmem:[#allocation2 + $0x28] sm:$0xf] %v964_v37  ;;  %v917_v35 = vor.u32 %v915_v31, %v914_v30  ;;  %v909_v43 = vor.u32 %v907_v33, %v906_v32  ;;  %v910_v53 = vrot.slane %v906_v32, 4  ;;  %3949 = vmatpush3.bf16.msra.mxu0 %v4123_v27  ;;  %v4125_v32 = vld [vmem:[%s5471_s29 + $0x18] sm:$0xff]  }
 0x25e   : > { %968 = vst [vmem:[#allocation2 + $0x2c] sm:$0x1] %v967_v38  ;;  %v1004_v45 = vld [vmem:[#allocation2 + $0x10] sm:$0xf]  ;;  %v985_v0 = vsel %vm4465_vm7, %v918_v42, %v984_v39  ;;  %v997_v3 = vld [vmem:[#allocation2 + $0x14] sm:$0x1]  ;;  %3950 = vmatprep.subr.bf16.mxu0 %v4124_v22 }
 0x25f   : > { %v1003_v51 = vld [vmem:[#allocation2 + $0x8] sm:$0xf]  ;;  %v3698_v55 = vcombine.low %v1004_v45, %v1004_v45  ;;  %v982_v57 = vsel %vm4519_vm9, %v917_v35, %v981_v40  ;;  %v4557_v1 = vld [vmem:[#allocation2 + $0x10] sm:$0xf]  ;;  %986 = vst [vmem:[#allocation2 + $0x44] sm:$0x1] %v985_v0  ;;  %v976_v2 = vsel %vm4519_vm9, %v909_v43, %v975_v44  ;;  %v979_v6 = vsel %vm4465_vm7, %v910_v53, %v978_v58 }
 0x260   : > { %v3697_v56 = vcombine.low %v1003_v51, %v1003_v51  ;;  %v1006_v60 = vld [vmem:[#allocation2 + $0x20] sm:$0xf]  ;;  %983 = vst [vmem:[#allocation2 + $0x40] sm:$0xf] %v982_v57  ;;  %v4563_v4 = vld [vmem:[#allocation2 + $0x8] sm:$0xf]  ;;  %v3691_v11 = vcombine.low %v4557_v1, %v997_v3 }
 0x261   : > { %v1005_v61 = vld [vmem:[#allocation2 + $0x18] sm:$0xf]  ;;  %1157 = vrot.lane.b32.xlu1 %v3698_v55, %s4261_s25  ;;  %v996_v5 = vld [vmem:[#allocation2 + $0xc] sm:$0x1]  ;;  %977 = vst [vmem:[#allocation2 + $0x38] sm:$0xf] %v976_v2  ;;  %v3700_v9 = vcombine.low %v1006_v60, %v1006_v60  ;;  %3951 = vmatpush3.bf16.msra.mxu0 %v4124_v22 }
 0x262   : > { %1155 = vrot.lane.b32.xlu0 %v3697_v56, %s4261_s25  ;;  %v1011_v8 = vld [vmem:[#allocation2 + $0xc] sm:$0x1]  ;;  %v3699_v10 = vcombine.low %v1005_v61, %v1005_v61  ;;  %980 = vst [vmem:[#allocation2 + $0x3c] sm:$0x1] %v979_v6  ;;  %v3690_v62 = vcombine.low %v4563_v4, %v996_v5  ;;  %v4572_v12 = vld [vmem:[#allocation2 + $0x18] sm:$0xf]  ;;  %3952 = vmatprep.subr.bf16.mxu0 %v4125_v32 }
 0x263   : > { %v998_v13 = vld [vmem:[#allocation2 + $0x1c] sm:$0x1]  ;;  %v4574_v14 = vld [vmem:[#allocation2 + $0x30] sm:$0xf]  ;;  %v3705_v16 = vcombine.low %v1003_v51, %v1011_v8  ;;  %v1012_v18 = vld [vmem:[#allocation2 + $0x14] sm:$0x1] }
 0x264   : > { %v4576_v15 = vld [vmem:[#allocation2 + $0x28] sm:$0xf]  ;;  %v3692_v17 = vcombine.low %v4572_v12, %v998_v13  ;;  %v1013_v19 = vld [vmem:[#allocation2 + $0x1c] sm:$0x1]  ;;  %v3702_v46 = vcombine.low %v4574_v14, %v4574_v14  ;;  %v1076_v47 = vshll.u32 %v3691_v11, 16  ;;  %v1069_v21 = vshll.u32 %v3690_v62, 16 }
 0x265   : > { %1161 = vrot.lane.b32.xlu1 %v3700_v9, %s4261_s25  ;;  %v3701_v20 = vcombine.low %v4576_v15, %v4576_v15  ;;  %v3706_v23 = vcombine.low %v1004_v45, %v1012_v18  ;;  %v1014_v50 = vld [vmem:[#allocation2 + $0x24] sm:$0x1]  ;;  %v3707_v24 = vcombine.low %v1005_v61, %v1013_v19  ;;  %v1198_v54 = vshll.u32 %v3705_v16, 16  ;;  %v4601_v30 = vld [vmem:[#allocation2 + $0x20] sm:$0xf]  ;;  %3953 = vmatpush3.bf16.msra.mxu0 %v4125_v32 }
 0x266   : > { %1159 = vrot.lane.b32.xlu0 %v3699_v10, %s4261_s25  ;;  %v1083_v26 = vshll.u32 %v3692_v17, 16  ;;  %v1078_v63 = vrot.slane %v1076_v47, 1  ;;  %v1071_v29 = vrot.slane %v1069_v21, 1  ;;  %v999_v31 = vld [vmem:[#allocation2 + $0x24] sm:$0x1]  ;;  %v3708_v33 = vcombine.low %v1006_v60, %v1014_v50 }
 0x267   : > { %v4588_v48 = vld [vmem:[#allocation2 + $0x40] sm:$0xf]  ;;  %v1074_v36 = vshrl.u32 %v3691_v11, 16  ;;  %v1067_v34 = vshrl.u32 %v3690_v62, 16  ;;  %v1196_v37 = vshrl.u32 %v3705_v16, 16  ;;  %v1200_v38 = vrot.slane %v1198_v54, 1 }
 0x268   : > { %v4595_v49 = vld [vmem:[#allocation2 + $0x38] sm:$0xf]  ;;  %v3704_v59 = vcombine.low %v4588_v48, %v4588_v48  ;;  %v1212_v40 = vshll.u32 %v3707_v24, 16  ;;  %v1205_v35 = vshll.u32 %v3706_v23, 16  ;;  %v1085_v43 = vrot.slane %v1083_v26, 1 }
 0x269   : > { %1165 = vrot.lane.b32.xlu1 %v3702_v46, %s4261_s25  ;;  %v3703_v28 = vcombine.low %v4595_v49, %v4595_v49  ;;  %v1079_v42 = vor.u32 %v1078_v63, %v1074_v36  ;;  %v1072_v39 = vor.u32 %v1071_v29, %v1067_v34  ;;  %v3693_v44 = vcombine.low %v4601_v30, %v999_v31  ;;  %v4609_v45 = vld [vmem:[#allocation2 + $0x30] sm:$0xf]  ;;  %v1001_v51 = vld [vmem:[#allocation2 + $0x34] sm:$0x1]  ;;  %v4611_v53 = vld [vmem:[#allocation2 + $0x28] sm:$0xf] }
 0x26a   : > { %1163 = vrot.lane.b32.xlu0 %v3701_v20, %s4261_s25  ;;  %v1000_v55 = vld [vmem:[#allocation2 + $0x2c] sm:$0x1]  ;;  %v1081_v56 = vshrl.u32 %v3692_v17, 16  ;;  %v1201_v57 = vor.u32 %v1200_v38, %v1196_v37  ;;  %v1214_v58 = vrot.slane %v1212_v40, 1  ;;  %v1207_v60 = vrot.slane %v1205_v35, 1 }
 0x26b   : > { %v1219_v61 = vshll.u32 %v3708_v33, 16  ;;  %v1015_v0 = vld [vmem:[#allocation2 + $0x2c] sm:$0x1]  ;;  %v1090_v3 = vshll.u32 %v3693_v44, 16  ;;  %v3695_v5 = vcombine.low %v4609_v45, %v1001_v51  ;;  %v3694_v6 = vcombine.low %v4611_v53, %v1000_v55  ;;  %v4617_v9 = vld [vmem:[#allocation2 + $0x38] sm:$0xf] }
 0x26c   : > { %v1086_v2 = vor.u32 %v1085_v43, %v1081_v56  ;;  %v1210_v7 = vshrl.u32 %v3707_v24, 16  ;;  %v1203_v8 = vshrl.u32 %v3706_v23, 16  ;;  %v1002_v10 = vld [vmem:[#allocation2 + $0x3c] sm:$0x1]  ;;  %v1016_v11 = vld [vmem:[#allocation2 + $0x34] sm:$0x1]  ;;  %v3709_v62 = vcombine.low %v4576_v15, %v1015_v0 }
 0x26d   : > { %1169 = vrot.lane.b32.xlu1 %v3704_v59, %s4261_s25  ;;  %v1221_v16 = vrot.slane %v1219_v61, 1  ;;  %v1017_v17 = vld [vmem:[#allocation2 + $0x3c] sm:$0x1]  ;;  %v1092_v18 = vrot.slane %v1090_v3, 1  ;;  %v1104_v19 = vshll.u32 %v3695_v5, 16  ;;  %v1097_v46 = vshll.u32 %v3694_v6, 16 }
 0x26e   : > { %1167 = vrot.lane.b32.xlu0 %v3703_v28, %s4261_s25  ;;  %v1215_v13 = vor.u32 %v1214_v58, %v1210_v7  ;;  %v1208_v27 = vor.u32 %v1207_v60, %v1203_v8  ;;  %v3696_v20 = vcombine.low %v4617_v9, %v1002_v10  ;;  %v1217_v47 = vshrl.u32 %v3708_v33, 16  ;;  %v1018_v24 = vld [vmem:[#allocation2 + $0x44] sm:$0x1]  ;;  %v1116_v60 = vpop.permute.xlu0 %1115 }
 0x26f   : > { %v1088_v21 = vshrl.u32 %v3693_v44, 16  ;;  %v3710_v22 = vcombine.low %v4574_v14, %v1016_v11  ;;  %v3711_v23 = vcombine.low %v4595_v49, %v1017_v17  ;;  %v1226_v50 = vshll.u32 %v3709_v62, 16 }
 0x270   : > { %v1222_v15 = vor.u32 %v1221_v16, %v1217_v47  ;;  %v1106_v26 = vrot.slane %v1104_v19, 1  ;;  %v1099_v59 = vrot.slane %v1097_v46, 1  ;;  %v1111_v28 = vshll.u32 %v3696_v20, 16 }
 0x271   : > { %1117 = vrot.lane.b32.xlu1 %v1072_v39, %s4260_s28  ;;  %v1093_v54 = vor.u32 %v1092_v18, %v1088_v21  ;;  %v1102_v63 = vshrl.u32 %v3695_v5, 16  ;;  %v1095_v29 = vshrl.u32 %v3694_v6, 16  ;;  %v3712_v31 = vcombine.low %v4588_v48, %v1018_v24 }
 0x272   : > { %1119 = vrot.lane.b32.xlu0 %v1079_v42, %s4260_s28  ;;  %v1228_v32 = vrot.slane %v1226_v50, 1  ;;  %v1240_v33 = vshll.u32 %v3711_v23, 16  ;;  %v1113_v49 = vrot.slane %v1111_v28, 1  ;;  %v1233_v34 = vshll.u32 %v3710_v22, 16 }
 0x273   : > { %v1107_v14 = vor.u32 %v1106_v26, %v1102_v63  ;;  %v1100_v36 = vor.u32 %v1099_v59, %v1095_v29  ;;  %v1224_v37 = vshrl.u32 %v3709_v62, 16  ;;  %v1109_v38 = vshrl.u32 %v3696_v20, 16 }
 0x274   : > { %v1242_v42 = vrot.slane %v1240_v33, 1  ;;  %v1235_v39 = vrot.slane %v1233_v34, 1  ;;  %v1247_v43 = vshll.u32 %v3712_v31, 16  ;;  %v1238_v48 = vshrl.u32 %v3711_v23, 16 }
 0x275   : > { %1121 = vrot.lane.b32.xlu1 %v1086_v2, %s4260_s28  ;;  %v1229_v40 = vor.u32 %v1228_v32, %v1224_v37  ;;  %v1114_v35 = vor.u32 %v1113_v49, %v1109_v38  ;;  %v1231_v44 = vshrl.u32 %v3710_v22, 16  ;;  %vm2400_vm7 = vcmask 326656  }
 0x276   : > { %1251 = vrot.lane.b32.xlu0 %v1201_v57, %s4262_s27  ;;  %v1243_v51 = vor.u32 %v1242_v42, %v1238_v48  ;;  %v1249_v56 = vrot.slane %v1247_v43, 1  ;;  %v1245_v57 = vshrl.u32 %v3712_v31, 16  ;;  %v1501_v43 = vld [vmem:[#allocation3 + $0x4] sm:$0x1]  ;;  %vm2466_vm9 = vcmask 588800  }
 0x277   : > { %v1236_v55 = vor.u32 %v1235_v39, %v1231_v44  ;;  %v1467_v39 = vld [vmem:[#allocation3] sm:$0x1]  ;;  %v1476_v44 = vld [vmem:[#allocation3 + $0x18] sm:$0x1] }
 0x278   : > { %v1250_v58 = vor.u32 %v1249_v56, %v1245_v57  ;;  %v1468_v48 = vsel %vm4678_vm15, 0, %v1467_v39  ;;  %v1477_v56 = vsel %vm4678_vm15, 0, %v1476_v44  ;;  %v1485_v39 = vld [vmem:[#allocation3 + $0x30] sm:$0x1] }
 0x279   : > { %1253 = vrot.lane.b32.xlu1 %v1208_v27, %s4262_s27  ;;  %v1269_v27 = vsel %vm634_vm0, %v4487_v52, %v1116_v60  ;;  %1469 = vst [vmem:[#allocation3] sm:$0x1] %v1468_v48  ;;  %v1502_v60 = vsel %vm4685_vm3, 0, %v1501_v43  ;;  %1478 = vst [vmem:[#allocation3 + $0x18] sm:$0x1] %v1477_v56  ;;  %v4241_v48 = vld [vmem:[%s4386_s2 + $0x20] sm:$0xff] }
 0x27a   : > { %1255 = vrot.lane.b32.xlu0 %v1215_v13, %s4262_s27  ;;  %1503 = vst [vmem:[#allocation3 + $0x4] sm:$0x1] %v1502_v60  ;;  %v1519_v43 = vld [vmem:[#allocation3 + $0x34] sm:$0x1]  ;;  %v3885_v44 = vpack.c.bf16 %v4241_v48, %v4241_v48  ;;  %v1486_v56 = vsel %vm4678_vm15, 0, %v1485_v39 }
 0x27b   : > { %1487 = vst [vmem:[#allocation3 + $0x30] sm:$0x1] %v1486_v56 }
 0x27d   : > { %1257 = vrot.lane.b32.xlu1 %v1222_v15, %s4262_s27 }
 0x27e   : > { %1123 = vrot.lane.b32.xlu0 %v1093_v54, %s4260_s28 }
 0x281   : > { %1125 = vrot.lane.b32.xlu1 %v1100_v36, %s4260_s28 }
 0x282   : > { %1127 = vrot.lane.b32.xlu0 %v1107_v14, %s4260_s28 }
 0x285   : > { %1129 = vrot.lane.b32.xlu1 %v1114_v35, %s4260_s28 }
 0x286   : > { %1259 = vrot.lane.b32.xlu0 %v1229_v40, %s4262_s27 }
 0x289   : > { %1261 = vrot.lane.b32.xlu1 %v1236_v55, %s4262_s27 }
 0x28a   : > { %1263 = vrot.lane.b32.xlu0 %v1243_v51, %s4262_s27  ;;  %v1494_v51 = vld [vmem:[#allocation3 + $0x48] sm:$0x1] }
 0x28b   : > { %v1495_v57 = vsel %vm4678_vm15, 0, %v1494_v51 }
 0x28c   : > { %1496 = vst [vmem:[#allocation3 + $0x48] sm:$0x1] %v1495_v57  ;;  %v1520_v57 = vsel %vm4685_vm3, 0, %v1519_v43 }
 0x28d   : > { %1265 = vrot.lane.b32.xlu1 %v1250_v58, %s4262_s27  ;;  %v1510_v58 = vld [vmem:[#allocation3 + $0x1c] sm:$0x1]  ;;  %1498 = vst.msk [vmem:[#allocation3 + $0x48] sm:$0xf] %vm1461_vm13, %v4259_v25  ;;  %1521 = vst [vmem:[#allocation3 + $0x34] sm:$0x1] %v1520_v57 }
 0x28e   : > { %vm2538_vm13 = vcmask 621568  }
 0x2d3   : > { %v1158_v61 = vpop.permute.xlu1 %1157 }
 0x2d4   : > { %v1156_v0 = vpop.permute.xlu0 %1155 }
 0x2d5   : > { %v1293_v17 = vsel %vm1291_vm10, %v1269_v27, %v1156_v0  ;;  %v4699_v0 = vld [vmem:[#allocation3] sm:$0xf]  ;;  %v1473_v27 = vld [vmem:[#allocation3 + $0x10] sm:$0x1] }
 0x2d7   : > { %v1162_v2 = vpop.permute.xlu1 %1161 }
 0x2d8   : > { %v1160_v3 = vpop.permute.xlu0 %1159 }
 0x2db   : > { %v1166_v5 = vpop.permute.xlu1 %1165 }
 0x2dc   : > { %v1164_v6 = vpop.permute.xlu0 %1163 }
 0x2df   : > { %v1170_v7 = vpop.permute.xlu1 %1169 }
 0x2e0   : > { %v1168_v8 = vpop.permute.xlu0 %1167 }
 0x2e3   : > { %v1118_v11 = vpop.permute.xlu1 %1117 }
 0x2e4   : > { %v1120_v10 = vpop.permute.xlu0 %1119  ;;  %v1272_v16 = vsel %vm634_vm0, %v4563_v4, %v1118_v11 }
 0x2e5   : > { %v1295_v19 = vsel %vm1291_vm10, %v1272_v16, %v1158_v61  ;;  %v1275_v20 = vsel %vm634_vm0, %v4557_v1, %v1120_v10  ;;  %v1511_v61 = vsel %vm4685_vm3, 0, %v1510_v58  ;;  %v1758_v58 = vld [vmem:[#allocation3 + $0x48] sm:$0xe] }
 0x2e6   : > { %v1297_v4 = vsel %vm1291_vm10, %v1275_v20, %v1160_v3  ;;  %1512 = vst [vmem:[#allocation3 + $0x1c] sm:$0x1] %v1511_v61 }
 0x2e7   : > { %v1122_v13 = vpop.permute.xlu1 %1121 }
 0x2e8   : > { %v1252_v62 = vpop.permute.xlu0 %1251  ;;  %v1278_v52 = vsel %vm634_vm0, %v4572_v12, %v1122_v13  ;;  %v1513_v13 = vld [vmem:[#allocation3 + $0x24] sm:$0x1] }
 0x2e9   : > { %v1310_v47 = vsel %vm1308_vm11, %v1293_v17, %v1252_v62  ;;  %v1299_v15 = vsel %vm1291_vm10, %v1278_v52, %v1162_v2  ;;  %v1694_v2 = vld [vmem:[#allocation3 + $0x4] sm:$0x1]  ;;  %v1479_v62 = vld [vmem:[#allocation3 + $0x20] sm:$0x1]  ;;  %v1514_v17 = vsel %vm4685_vm3, 0, %v1513_v13 }
 0x2ea   : > { %v3734_v3 = vcombine.low %v4699_v0, %v1694_v2  ;;  %v1480_v25 = vsel %vm4678_vm15, 0, %v1479_v62  ;;  %1515 = vst [vmem:[#allocation3 + $0x24] sm:$0x1] %v1514_v17  ;;  %v1702_v52 = vld [vmem:[#allocation3] sm:$0xe] }
 0x2eb   : > { %v1254_v46 = vpop.permute.xlu1 %1253  ;;  %1481 = vst [vmem:[#allocation3 + $0x20] sm:$0x1] %v1480_v25 }
 0x2ec   : > { %v1256_v18 = vpop.permute.xlu0 %1255  ;;  %v1312_v21 = vsel %vm1308_vm11, %v1295_v19, %v1254_v46  ;;  %v1507_v19 = vld [vmem:[#allocation3 + $0x14] sm:$0x1]  ;;  %v4237_v46 = vld [vmem:[%s4386_s2 + $0x8] sm:$0xff] }
 0x2ed   : > { %v3714_v22 = vcombine.low %v1310_v47, %v1312_v21  ;;  %v1314_v24 = vsel %vm1308_vm11, %v1297_v4, %v1256_v18  ;;  %v1474_v18 = vsel %vm4678_vm15, 0, %v1473_v27  ;;  %v3882_v20 = vpack.c.bf16 %v4237_v46, %v4237_v46  ;;  %v1528_v21 = vld [vmem:[#allocation3 + $0x4c] sm:$0x1] }
 0x2ee   : > { %1475 = vst [vmem:[#allocation3 + $0x10] sm:$0x1] %v1474_v18  ;;  %v1508_v47 = vsel %vm4685_vm3, 0, %v1507_v19  ;;  %v3742_v4 = vcombine.low %v1702_v52, %v1694_v2  ;;  %v4750_v2 = vld [vmem:[%s5442_s4] ss:$0 sm:$0xff] }
 0x2ef   : > { %3954 = vmatprep.mubr.msk.bf16.mxu0 %vm1375_vm12, %v3714_v22  ;;  %v1258_v50 = vpop.permute.xlu1 %1257  ;;  %1509 = vst [vmem:[#allocation3 + $0x14] sm:$0x1] %v1508_v47  ;;  %2313 = vrot.lane.b32.xlu1 %v3882_v20, %s4263_s21  ;;  %v1650_v20 = vld [vmem:[#allocation3 + $0x18] sm:$0xf] }
 0x2f0   : > { %v1124_v23 = vpop.permute.xlu0 %1123  ;;  %v1316_v1 = vsel %vm1308_vm11, %v1299_v15, %v1258_v50  ;;  %v1529_v50 = vsel %vm4685_vm3, 0, %v1528_v21 }
 0x2f1   : > { %v3715_v54 = vcombine.low %v1314_v24, %v1316_v1  ;;  %v1281_v63 = vsel %vm634_vm0, %v4601_v30, %v1124_v23  ;;  %v4238_v23 = vld [vmem:[%s4386_s2 + $0x18] sm:$0xff]  ;;  %v1488_v24 = vld [vmem:[#allocation3 + $0x38] sm:$0x1]  ;;  %1530 = vst [vmem:[#allocation3 + $0x4c] sm:$0x1] %v1529_v50 }
 0x2f2   : > { %v1301_v31 = vsel %vm1291_vm10, %v1281_v63, %v1164_v6  ;;  %v1504_v6 = vld [vmem:[#allocation3 + $0xc] sm:$0x1]  ;;  %v3884_v15 = vpack.c.bf16 %v4238_v23, %v4238_v23  ;;  %v1489_v1 = vsel %vm4678_vm15, 0, %v1488_v24  ;;  %v4239_v63 = vld [vmem:[%s4386_s2] sm:$0xff] }
 0x2f3   : > { %3955 = vmatmul.mubr.msk.bf16.vlgmr.msra.gmra.mrb[0].mxu0 %vm1375_vm12, %v3715_v54  ;;  %v1126_v12 = vpop.permute.xlu1 %1125  ;;  %v1505_v11 = vsel %vm4685_vm3, 0, %v1504_v6  ;;  %v1522_v54 = vld [vmem:[#allocation3 + $0x3c] sm:$0x1]  ;;  %1490 = vst [vmem:[#allocation3 + $0x38] sm:$0x1] %v1489_v1 }
 0x2f4   : > { %v1128_v26 = vpop.permute.xlu0 %1127  ;;  %v1284_v29 = vsel %vm634_vm0, %v4611_v53, %v1126_v12  ;;  %1506 = vst [vmem:[#allocation3 + $0xc] sm:$0x1] %v1505_v11  ;;  %v1523_v12 = vsel %vm4685_vm3, 0, %v1522_v54  ;;  %2317 = vrot.lane.b32.xlu1 %v3884_v15, %s4263_s21 }
 0x2f5   : > { %v1303_v32 = vsel %vm1291_vm10, %v1284_v29, %v1166_v5  ;;  %v1287_v14 = vsel %vm634_vm0, %v4609_v45, %v1128_v26  ;;  %v1470_v5 = vld [vmem:[#allocation3 + $0x8] sm:$0x1]  ;;  %v1911_v26 = vrot.slane %v3742_v4, 1  ;;  %1524 = vst [vmem:[#allocation3 + $0x3c] sm:$0x1] %v1523_v12  ;;  %v3881_v29 = vpack.c.bf16 %v4239_v63, %v4239_v63 }
 0x2f6   : > { %v1305_v38 = vsel %vm1291_vm10, %v1287_v14, %v1168_v8  ;;  %v1818_v8 = vshll.u32 %v3734_v3, 16  ;;  %v1471_v10 = vsel %vm4678_vm15, 0, %v1470_v5  ;;  %v1653_v4 = vld [vmem:[#allocation3 + $0x1c] sm:$0x1] }
 0x2f7   : > { %v1130_v28 = vpop.permute.xlu1 %1129  ;;  %1472 = vst [vmem:[#allocation3 + $0x8] sm:$0x1] %v1471_v10 }
 0x2f8   : > { %v1260_v59 = vpop.permute.xlu0 %1259  ;;  %v1290_v49 = vsel %vm634_vm0, %v4617_v9, %v1130_v28  ;;  %v1820_v16 = vrot.slane %v1818_v8, 1 }
 0x2f9   : > { %v1318_v36 = vsel %vm1308_vm11, %v1301_v31, %v1260_v59  ;;  %v1307_v53 = vsel %vm1291_vm10, %v1290_v49, %v1170_v7  ;;  %v1816_v7 = vshrl.u32 %v3734_v3, 16  ;;  %v1742_v59 = vld [vmem:[#allocation3 + $0x48] sm:$0xf]  ;;  %v1750_v31 = vld [vmem:[#allocation3 + $0x4c] sm:$0x1] }
 0x2fa   : > { %v3781_v28 = vcombine.low %v1742_v59, %v1742_v59  ;;  %v3797_v60 = vcombine.low %v1758_v58, %v1750_v31 }
 0x2fb   : > { %v1262_v33 = vpop.permute.xlu1 %1261  ;;  %v1821_v22 = vor.u32 %v1820_v16, %v1816_v7  ;;  %v1641_v63 = vld [vmem:[#allocation3 + $0xc] sm:$0x1] }
 0x2fc   : > { %v1320_v34 = vsel %vm1308_vm11, %v1303_v32, %v1262_v33  ;;  %v1264_v37 = vpop.permute.xlu0 %1263  ;;  %2157 = vrot.lane.b32.xlu1 %v3781_v28, %s4262_s27  ;;  %v3789_v32 = vcombine.low %v1742_v59, %v1750_v31  ;;  %v4240_v33 = vld [vmem:[%s4386_s2 + $0x10] sm:$0xff]  ;;  %v2286_v61 = vrot.slane %v3797_v60, 1 }
 0x2fd   : > { %v3716_v30 = vcombine.low %v1318_v36, %v1320_v34  ;;  %v1322_v35 = vsel %vm1308_vm11, %v1305_v38, %v1264_v37  ;;  %1871 = vrot.lane.b32.xlu0 %v1821_v22, %s4256_s3  ;;  %v3883_v14 = vpack.c.bf16 %v4240_v33, %v4240_v33  ;;  %v1482_v34 = vld [vmem:[#allocation3 + $0x28] sm:$0x1]  ;;  %v1491_v38 = vld [vmem:[#allocation3 + $0x40] sm:$0x1] }
 0x2fe   : > { %v2233_v36 = vshrl.u32 %v3789_v32, 16  ;;  %v2235_v49 = vshll.u32 %v3789_v32, 16  ;;  %v1483_v37 = vsel %vm4678_vm15, 0, %v1482_v34  ;;  %v1638_v54 = vld [vmem:[#allocation3 + $0x8] sm:$0xf] }
 0x2ff   : > { %3958 = vmatprep.mubr.msk.bf16.mxu0 %vm1375_vm12, %v3716_v30  ;;  %v1266_v40 = vpop.permute.xlu1 %1265  ;;  %v1516_v30 = vld [vmem:[#allocation3 + $0x2c] sm:$0x1]  ;;  %1484 = vst [vmem:[#allocation3 + $0x28] sm:$0x1] %v1483_v37 }
 0x300   : > { %v1324_v45 = vsel %vm1308_vm11, %v1307_v53, %v1266_v40  ;;  %v2237_v53 = vrot.slane %v2235_v49, 1  ;;  %v1517_v40 = vsel %vm4685_vm3, 0, %v1516_v30 }
 0x301   : > { %v3717_v42 = vcombine.low %v1322_v35, %v1324_v45  ;;  %1919 = vrot.lane.b32.xlu0 %v1911_v26, %s4260_s28  ;;  %v1492_v35 = vsel %vm4678_vm15, 0, %v1491_v38  ;;  %v1525_v45 = vld [vmem:[#allocation3 + $0x44] sm:$0x1]  ;;  %1518 = vst [vmem:[#allocation3 + $0x2c] sm:$0x1] %v1517_v40 }
 0x302   : > { %1493 = vst [vmem:[#allocation3 + $0x40] sm:$0x1] %v1492_v35  ;;  %v2238_v51 = vor.u32 %v2237_v53, %v2233_v36  ;;  %v1659_v36 = vld [vmem:[#allocation3 + $0x24] sm:$0x1]  ;;  %v1644_v40 = vld [vmem:[#allocation3 + $0x10] sm:$0xf] }
 0x303   : > { %3959 = vmatmul.mubr.msk.bf16.gmra.mrb[4].mxu0 %vm1375_vm12, %v3717_v42  ;;  %v1526_v42 = vsel %vm4685_vm3, 0, %v1525_v45  ;;  %v1647_v35 = vld [vmem:[#allocation3 + $0x14] sm:$0x1] }
 0x304   : > { %1527 = vst [vmem:[#allocation3 + $0x44] sm:$0x1] %v1526_v42  ;;  %2253 = vrot.lane.b32.xlu1 %v2238_v51, %s4264_s1 }
 0x305   : > { %2311 = vrot.lane.b32.xlu0 %v3881_v29, %s4263_s21 }
 0x308   : > { %2301 = vrot.lane.b32.xlu1 %v2286_v61, %s4265_s22 }
 0x309   : > { %2315 = vrot.lane.b32.xlu0 %v3883_v14, %s4263_s21 }
 0x30d   : > { %2319 = vrot.lane.b32.xlu0 %v3885_v44, %s4263_s21 }
 0x36f   : > { %v1872_v46 = vpop.permute.xlu0 %1871 }
 0x370   : > { %v2329_v15 = vsel %vm681_vm2, %v4699_v0, %v1872_v46  ;;  %v1656_v0 = vld [vmem:[#allocation3 + $0x20] sm:$0xf] }
 0x373   : > { %v1920_v32 = vpop.permute.xlu0 %1919 }
 0x374   : > { %v4765_v34 = vsel %vm634_vm0, %v2329_v15, %v1920_v32 }
 0x3c6   : > { %v3956_v55 = vpop.f32.mrb[0].mxu0 }
 0x3c7   : > { %v1431_v3 = vadd.f32 %v3956_v55, %v4750_v2  ;;  %v1422_v5 = vpop.f32.mrb[1].mxu0 }
 0x3c8   : > { %v1423_v6 = vadd.f32 %v4750_v2, %v1422_v5  ;;  %v3957_v7 = vpop.f32.mrb[2].mxu0 }
 0x3c9   : > { %v1455_v8 = vmax.f32 %v1431_v3, 0.0  ;;  %v1434_v10 = vadd.f32 %v3957_v7, %v4750_v2  ;;  %v1425_v11 = vpop.f32.mrb[3].mxu0 }
 0x3ca   : > { %v1453_v62 = vmax.f32 %v1423_v6, 0.0  ;;  %v1426_v25 = vadd.f32 %v4750_v2, %v1425_v11 }
 0x3cb   : > { %v3875_v13 = vpack.c.bf16 %v1455_v8, %v1455_v8  ;;  %v1456_v27 = vmax.f32 %v1434_v10, 0.0 }
 0x3cc   : > { %v3873_v16 = vpack.c.bf16 %v1453_v62, %v1453_v62  ;;  %v1454_v17 = vmax.f32 %v1426_v25, 0.0 }
 0x3cd   : > { %v1572_v18 = vshrl.u32 %v3875_v13, 16  ;;  %v3876_v19 = vpack.c.bf16 %v1456_v27, %v1456_v27  ;;  %v1575_v22 = vshll.u32 %v3875_v13, 16 }
 0x3ce   : > { %v1556_v47 = vshrl.u32 %v3873_v16, 16  ;;  %v3874_v52 = vpack.c.bf16 %v1454_v17, %v1454_v17  ;;  %v1559_v1 = vshll.u32 %v3873_v16, 16 }
 0x3cf   : > { %v1574_v21 = vrot.slane %v1572_v18, 7  ;;  %v1580_v23 = vshrl.u32 %v3876_v19, 16  ;;  %v1583_v26 = vshll.u32 %v3876_v19, 16 }
 0x3d0   : > { %v1558_v24 = vrot.slane %v1556_v47, 7  ;;  %v1564_v12 = vshrl.u32 %v3874_v52, 16  ;;  %v1567_v31 = vshll.u32 %v3874_v52, 16 }
 0x3d1   : > { %v1577_v59 = vor.u32 %v1575_v22, %v1574_v21  ;;  %v1578_v28 = vrot.slane %v1574_v21, 4  ;;  %v1582_v29 = vrot.slane %v1580_v23, 7  ;;  %v1674_v21 = vld [vmem:[#allocation3 + $0x38] sm:$0xf]  ;;  %v1677_v22 = vld [vmem:[#allocation3 + $0x3c] sm:$0x1] }
 0x3d2   : > { %v1561_v33 = vor.u32 %v1559_v1, %v1558_v24  ;;  %v1562_v14 = vrot.slane %v1558_v24, 4  ;;  %v1566_v49 = vrot.slane %v1564_v12, 7  ;;  %v1662_v1 = vld [vmem:[#allocation3 + $0x28] sm:$0xf] }
 0x3d3   : > { %v1651_v37 = vsel %vm4760_vm4, %v1577_v59, %v1650_v20  ;;  %v1654_v30 = vsel %vm4678_vm15, %v1578_v28, %v1653_v4  ;;  %v1585_v38 = vor.u32 %v1583_v26, %v1582_v29  ;;  %v1586_v53 = vrot.slane %v1582_v29, 4  ;;  %v1683_v29 = vld [vmem:[#allocation3 + $0x44] sm:$0x1] }
 0x3d4   : > { %1652 = vst [vmem:[#allocation3 + $0x18] sm:$0xf] %v1651_v37  ;;  %1655 = vst [vmem:[#allocation3 + $0x1c] sm:$0x1] %v1654_v30  ;;  %v1639_v45 = vsel %vm4760_vm4, %v1561_v33, %v1638_v54  ;;  %v1642_v42 = vsel %vm4678_vm15, %v1562_v14, %v1641_v63  ;;  %v1569_v39 = vor.u32 %v1567_v31, %v1566_v49  ;;  %v1570_v43 = vrot.slane %v1566_v49, 4 }
 0x3d5   : > { %1640 = vst [vmem:[#allocation3 + $0x8] sm:$0xf] %v1639_v45  ;;  %1643 = vst [vmem:[#allocation3 + $0xc] sm:$0x1] %v1642_v42  ;;  %v1657_v48 = vsel %vm4760_vm4, %v1585_v38, %v1656_v0  ;;  %v1660_v44 = vsel %vm4678_vm15, %v1586_v53, %v1659_v36  ;;  %v1665_v54 = vld [vmem:[#allocation3 + $0x2c] sm:$0x1] }
 0x3d6   : > { %1658 = vst [vmem:[#allocation3 + $0x20] sm:$0xf] %v1657_v48  ;;  %1661 = vst [vmem:[#allocation3 + $0x24] sm:$0x1] %v1660_v44  ;;  %v1645_v51 = vsel %vm4760_vm4, %v1569_v39, %v1644_v40  ;;  %v1648_v56 = vsel %vm4678_vm15, %v1570_v43, %v1647_v35  ;;  %v3960_v57 = vpop.f32.mrb[4].mxu0 }
 0x3d7   : > { %1646 = vst [vmem:[#allocation3 + $0x10] sm:$0xf] %v1645_v51  ;;  %1649 = vst [vmem:[#allocation3 + $0x14] sm:$0x1] %v1648_v56  ;;  %v1447_v58 = vadd.f32 %v3960_v57, %v4750_v2  ;;  %v1438_v60 = vpop.f32.mrb[5].mxu0 }
 0x3d8   : > { %v1439_v61 = vadd.f32 %v4750_v2, %v1438_v60  ;;  %v3961_v55 = vpop.f32.mrb[6].mxu0  ;;  %v1680_v63 = vld [vmem:[#allocation3 + $0x40] sm:$0xf]  ;;  %v1668_v37 = vld [vmem:[#allocation3 + $0x30] sm:$0xf] }
 0x3d9   : > { %v1459_v3 = vmax.f32 %v1447_v58, 0.0  ;;  %v1450_v5 = vadd.f32 %v3961_v55, %v4750_v2  ;;  %v1441_v6 = vpop.f32.mrb[7].mxu0  ;;  %v1671_v30 = vld [vmem:[#allocation3 + $0x34] sm:$0x1] }
 0x3da   : > { %v1457_v7 = vmax.f32 %v1439_v61, 0.0  ;;  %v1442_v8 = vadd.f32 %v4750_v2, %v1441_v6 }
 0x3db   : > { %v3879_v10 = vpack.c.bf16 %v1459_v3, %v1459_v3  ;;  %v1460_v11 = vmax.f32 %v1450_v5, 0.0  ;;  %v4787_v62 = vld [vmem:[#allocation3 + $0x18] sm:$0xf]  ;;  %v4795_v18 = vld [vmem:[#allocation3 + $0x1c] sm:$0x1] }
 0x3dc   : > { %v4789_v25 = vld [vmem:[#allocation3 + $0x18] sm:$0xf]  ;;  %v3877_v13 = vpack.c.bf16 %v1457_v7, %v1457_v7  ;;  %v1458_v27 = vmax.f32 %v1442_v8, 0.0  ;;  %v3775_v16 = vcombine.low %v4787_v62, %v4787_v62  ;;  %v4798_v47 = vld [vmem:[#allocation3 + $0x8] sm:$0xf] }
 0x3dd   : > { %v3752_v17 = vcombine.low %v4789_v25, %v4789_v25  ;;  %v1705_v19 = vld [vmem:[#allocation3 + $0x18] sm:$0xe]  ;;  %v1604_v46 = vshrl.u32 %v3879_v10, 16  ;;  %v3880_v20 = vpack.c.bf16 %v1460_v11, %v1460_v11  ;;  %v1607_v52 = vshll.u32 %v3879_v10, 16  ;;  %v4802_v59 = vld [vmem:[#allocation3 + $0x20] sm:$0xf] }
 0x3de   : > { %v3745_v2 = vcombine.low %v1705_v19, %v4795_v18  ;;  %v1588_v4 = vshrl.u32 %v3877_v13, 16  ;;  %v3878_v23 = vpack.c.bf16 %v1458_v27, %v1458_v27  ;;  %2145 = vrot.lane.b32.xlu1 %v3775_v16, %s4262_s27  ;;  %v1591_v24 = vshll.u32 %v3877_v13, 16  ;;  %v4810_v45 = vld [vmem:[#allocation3 + $0x1c] sm:$0x1]  ;;  %v1728_v42 = vld [vmem:[#allocation3 + $0x18] sm:$0xe] }
 0x3df   : > { %1963 = vrot.lane.b32.xlu0 %v3752_v17, %s4266_s26  ;;  %v1606_v15 = vrot.slane %v1604_v46, 7  ;;  %v1612_v26 = vshrl.u32 %v3880_v20, 16  ;;  %v1615_v12 = vshll.u32 %v3880_v20, 16  ;;  %v3750_v33 = vcombine.low %v4798_v47, %v4798_v47  ;;  %v1744_v51 = vld [vmem:[#allocation3 + $0x1c] sm:$0x1] }
 0x3e0   : > { %v1590_v28 = vrot.slane %v1588_v4, 7  ;;  %v1596_v31 = vshrl.u32 %v3878_v23, 16  ;;  %v1914_v32 = vrot.slane %v3745_v2, 1  ;;  %v1599_v49 = vshll.u32 %v3878_v23, 16  ;;  %v1752_v56 = vld [vmem:[#allocation3 + $0x18] sm:$0xe] }
 0x3e1   : > { %v1609_v14 = vor.u32 %v1607_v52, %v1606_v15  ;;  %v1610_v0 = vrot.slane %v1606_v15, 4  ;;  %v1614_v36 = vrot.slane %v1612_v26, 7  ;;  %v3753_v35 = vcombine.low %v4802_v59, %v4802_v59  ;;  %v1695_v6 = vld [vmem:[#allocation3 + $0xc] sm:$0x1]  ;;  %v1703_v7 = vld [vmem:[#allocation3 + $0x8] sm:$0xe] }
 0x3e2   : > { %v1593_v38 = vor.u32 %v1591_v24, %v1590_v28  ;;  %v1594_v53 = vrot.slane %v1590_v28, 4  ;;  %v1598_v40 = vrot.slane %v1596_v31, 7  ;;  %1925 = vrot.lane.b32.xlu1 %v1914_v32, %s4260_s28  ;;  %v3768_v5 = vcombine.low %v1728_v42, %v4810_v45  ;;  %v4830_v27 = vld [vmem:[#allocation3 + $0x20] sm:$0xf]  ;;  %v1718_v17 = vld [vmem:[#allocation3 + $0xc] sm:$0x1] }
 0x3e3   : > { %1959 = vrot.lane.b32.xlu0 %v3750_v33, %s4266_s26  ;;  %v1675_v39 = vsel %vm4760_vm4, %v1609_v14, %v1674_v21  ;;  %v1678_v43 = vsel %vm4678_vm15, %v1610_v0, %v1677_v22  ;;  %v1617_v48 = vor.u32 %v1615_v12, %v1614_v36  ;;  %v1618_v44 = vrot.slane %v1614_v36, 4  ;;  %v1726_v19 = vld [vmem:[#allocation3 + $0x8] sm:$0xe]  ;;  %v4836_v20 = vld [vmem:[#allocation3 + $0x18] sm:$0xf] }
 0x3e4   : > { %1676 = vst [vmem:[#allocation3 + $0x38] sm:$0xf] %v1675_v39  ;;  %1679 = vst [vmem:[#allocation3 + $0x3c] sm:$0x1] %v1678_v43  ;;  %v1663_v57 = vsel %vm4760_vm4, %v1593_v38, %v1662_v1  ;;  %v1666_v58 = vsel %vm4678_vm15, %v1594_v53, %v1665_v54  ;;  %v1601_v60 = vor.u32 %v1599_v49, %v1598_v40  ;;  %v1602_v61 = vrot.slane %v1598_v40, 4 }
 0x3e5   : > { %1664 = vst [vmem:[#allocation3 + $0x28] sm:$0xf] %v1663_v57  ;;  %1667 = vst [vmem:[#allocation3 + $0x2c] sm:$0x1] %v1666_v58  ;;  %v1681_v55 = vsel %vm4760_vm4, %v1617_v48, %v1680_v63  ;;  %v1684_v3 = vsel %vm4678_vm15, %v1618_v44, %v1683_v29  ;;  %v3791_v11 = vcombine.low %v1752_v56, %v1744_v51  ;;  %v2097_v13 = vrot.slane %v3768_v5, 1 }
 0x3e6   : > { %1682 = vst [vmem:[#allocation3 + $0x40] sm:$0xf] %v1681_v55  ;;  %1685 = vst [vmem:[#allocation3 + $0x44] sm:$0x1] %v1684_v3  ;;  %v1669_v8 = vsel %vm4760_vm4, %v1601_v60, %v1668_v37  ;;  %v1672_v10 = vsel %vm4678_vm15, %v1602_v61, %v1671_v30  ;;  %1965 = vrot.lane.b32.xlu1 %v3753_v35, %s4266_s26  ;;  %v3743_v46 = vcombine.low %v1703_v7, %v1695_v6  ;;  %v4839_v52 = vld [vmem:[#allocation3 + $0x10] sm:$0xf] }
 0x3e7   : > { %1670 = vst [vmem:[#allocation3 + $0x30] sm:$0xf] %v1669_v8  ;;  %1673 = vst [vmem:[#allocation3 + $0x34] sm:$0x1] %v1672_v10  ;;  %v2280_v16 = vrot.slane %v3791_v11, 1  ;;  %2107 = vrot.lane.b32.xlu0 %v2097_v13, %s4267_s23  ;;  %v3776_v9 = vcombine.low %v4830_v27, %v4830_v27  ;;  %v3766_v50 = vcombine.low %v1726_v19, %v1718_v17 }
 0x3e8   : > { %v1912_v2 = vrot.slane %v3743_v46, 1  ;;  %v1721_v21 = vld [vmem:[#allocation3 + $0x24] sm:$0x1]  ;;  %v1729_v22 = vld [vmem:[#allocation3 + $0x20] sm:$0xe]  ;;  %v3737_v23 = vcombine.low %v4836_v20, %v4795_v18  ;;  %v3751_v24 = vcombine.low %v4839_v52, %v4839_v52  ;;  %v3783_v18 = vcombine.low %v4787_v62, %v1744_v51 }
 0x3e9   : > { %v2095_v4 = vrot.slane %v3766_v50, 1  ;;  %v4844_v15 = vld [vmem:[#allocation3 + $0x10] sm:$0xf]  ;;  %v1745_v1 = vld [vmem:[#allocation3 + $0x24] sm:$0x1]  ;;  %v3769_v26 = vcombine.low %v1729_v22, %v1721_v21  ;;  %v3760_v39 = vcombine.low %v4789_v25, %v4810_v45  ;;  %v3761_v44 = vcombine.low %v4802_v59, %v1721_v21 }
 0x3ea   : > { %2289 = vrot.lane.b32.xlu1 %v2280_v16, %s4265_s22  ;;  %v1753_v54 = vld [vmem:[#allocation3 + $0x20] sm:$0xe]  ;;  %v1719_v12 = vld [vmem:[#allocation3 + $0x14] sm:$0x1]  ;;  %v1727_v28 = vld [vmem:[#allocation3 + $0x10] sm:$0xe]  ;;  %v3774_v63 = vcombine.low %v4844_v15, %v4844_v15  ;;  %v3758_v55 = vcombine.low %v4798_v47, %v1718_v17  ;;  %v3784_v8 = vcombine.low %v4830_v27, %v1745_v1 }
 0x3eb   : > { %2147 = vrot.lane.b32.xlu0 %v3776_v9, %s4262_s27  ;;  %v3792_v29 = vcombine.low %v1753_v54, %v1745_v1  ;;  %v2098_v31 = vrot.slane %v3769_v26, 1  ;;  %v1698_v32 = vld [vmem:[#allocation3 + $0x24] sm:$0x1]  ;;  %v1706_v33 = vld [vmem:[#allocation3 + $0x20] sm:$0xe]  ;;  %v3767_v14 = vcombine.low %v1727_v28, %v1719_v12  ;;  %v1839_v0 = vshll.u32 %v3737_v23, 16 }
 0x3ec   : > { %v4853_v36 = vld [vmem:[#allocation3 + $0x8] sm:$0xf]  ;;  %v3746_v37 = vcombine.low %v1706_v33, %v1698_v32  ;;  %v4857_v30 = vld [vmem:[#allocation3 + $0x14] sm:$0x1]  ;;  %v1704_v40 = vld [vmem:[#allocation3 + $0x10] sm:$0xe]  ;;  %v3759_v47 = vcombine.low %v4839_v52, %v1719_v12 }
 0x3ed   : > { %v2281_v49 = vrot.slane %v3792_v29, 1  ;;  %v3735_v38 = vcombine.low %v4853_v36, %v1695_v6  ;;  %v2096_v53 = vrot.slane %v3767_v14, 1  ;;  %v1841_v62 = vrot.slane %v1839_v0, 1  ;;  %v1743_v56 = vld [vmem:[#allocation3 + $0x14] sm:$0x1] }
 0x3ee   : > { %1921 = vrot.lane.b32.xlu1 %v1912_v2, %s4260_s28  ;;  %v2193_v35 = vshll.u32 %v3783_v18, 16  ;;  %v1837_v42 = vshrl.u32 %v3737_v23, 16  ;;  %v1915_v43 = vrot.slane %v3746_v37, 1  ;;  %v3744_v48 = vcombine.low %v1704_v40, %v4857_v30  ;;  %v1751_v57 = vld [vmem:[#allocation3 + $0x10] sm:$0xe] }
 0x3ef   : > { %2103 = vrot.lane.b32.xlu0 %v2095_v4, %s4267_s23  ;;  %v1825_v60 = vshll.u32 %v3735_v38, 16  ;;  %v2191_v61 = vshrl.u32 %v3783_v18, 16  ;;  %v3790_v5 = vcombine.low %v1751_v57, %v1743_v56  ;;  %v2016_v25 = vshll.u32 %v3760_v39, 16  ;;  %v4872_v16 = vld [vmem:[#allocation3 + $0x20] sm:$0xf] }
 0x3f0   : > { %v1842_v51 = vor.u32 %v1841_v62, %v1837_v42  ;;  %v2195_v58 = vrot.slane %v2193_v35, 1  ;;  %v1913_v3 = vrot.slane %v3744_v48, 1  ;;  %v2023_v7 = vshll.u32 %v3761_v44, 16  ;;  %v4882_v26 = vld [vmem:[#allocation3 + $0x10] sm:$0xf] }
 0x3f1   : > { %v1827_v6 = vrot.slane %v1825_v60, 1  ;;  %v1823_v59 = vshrl.u32 %v3735_v38, 16  ;;  %v2279_v10 = vrot.slane %v3790_v5, 1  ;;  %v2018_v11 = vrot.slane %v2016_v25, 1  ;;  %v4890_v14 = vld [vmem:[#allocation3 + $0x28] sm:$0xf] }
 0x3f2   : > { %1961 = vrot.lane.b32.xlu1 %v3751_v24, %s4266_s26  ;;  %v2196_v45 = vor.u32 %v2195_v58, %v2191_v61  ;;  %v2002_v13 = vshll.u32 %v3758_v55, 16  ;;  %v2025_v19 = vrot.slane %v2023_v7, 1  ;;  %v2014_v46 = vshrl.u32 %v3760_v39, 16  ;;  %v4879_v24 = vld [vmem:[#allocation3 + $0x38] sm:$0xf] }
 0x3f3   : > { %2143 = vrot.lane.b32.xlu0 %v3774_v63, %s4262_s27  ;;  %v1828_v17 = vor.u32 %v1827_v6, %v1823_v59  ;;  %v2021_v9 = vshrl.u32 %v3761_v44, 16  ;;  %v3738_v50 = vcombine.low %v4872_v16, %v1698_v32  ;;  %v2200_v27 = vshll.u32 %v3784_v8, 16  ;;  %v1709_v37 = vld [vmem:[#allocation3 + $0x38] sm:$0xe]  ;;  %v1754_v5 = vld [vmem:[#allocation3 + $0x28] sm:$0xe] }
 0x3f4   : > { %v2019_v2 = vor.u32 %v2018_v11, %v2014_v46  ;;  %v2004_v21 = vrot.slane %v2002_v13, 1  ;;  %v2009_v4 = vshll.u32 %v3759_v47, 16  ;;  %v2000_v23 = vshrl.u32 %v3758_v55, 16  ;;  %v4897_v62 = vld [vmem:[#allocation3 + $0x38] sm:$0xf] }
 0x3f5   : > { %v2026_v22 = vor.u32 %v2025_v19, %v2021_v9  ;;  %v2202_v1 = vrot.slane %v2200_v27, 1  ;;  %v1846_v54 = vshll.u32 %v3738_v50, 16  ;;  %v3779_v12 = vcombine.low %v4879_v24, %v4879_v24  ;;  %v4919_v59 = vld [vmem:[#allocation3 + $0x3c] sm:$0x1]  ;;  %v1707_v11 = vld [vmem:[#allocation3 + $0x28] sm:$0xe] }
 0x3f6   : > { %2109 = vrot.lane.b32.xlu1 %v2098_v31, %s4267_s23  ;;  %v2005_v52 = vor.u32 %v2004_v21, %v2000_v23  ;;  %v2011_v28 = vrot.slane %v2009_v4, 1  ;;  %v2198_v63 = vshrl.u32 %v3784_v8, 16  ;;  %v2007_v29 = vshrl.u32 %v3759_v47, 16  ;;  %v1732_v8 = vld [vmem:[#allocation3 + $0x38] sm:$0xe] }
 0x3f7   : > { %2291 = vrot.lane.b32.xlu0 %v2281_v49, %s4265_s22  ;;  %v3736_v18 = vcombine.low %v4882_v26, %v4857_v30  ;;  %v1848_v32 = vrot.slane %v1846_v54, 1  ;;  %v1844_v0 = vshrl.u32 %v3738_v50, 16  ;;  %v4893_v49 = vld [vmem:[#allocation3 + $0x3c] sm:$0x1]  ;;  %v3782_v38 = vcombine.low %v4844_v15, %v1743_v56  ;;  %v4906_v15 = vld [vmem:[#allocation3 + $0x40] sm:$0xf] }
 0x3f8   : > { %v2203_v31 = vor.u32 %v2202_v1, %v2198_v63  ;;  %v2012_v33 = vor.u32 %v2011_v28, %v2007_v29  ;;  %v3777_v30 = vcombine.low %v4890_v14, %v4890_v14  ;;  %v3749_v35 = vcombine.low %v1709_v37, %v4893_v49  ;;  %v1756_v56 = vld [vmem:[#allocation3 + $0x38] sm:$0xe]  ;;  %v4933_v50 = vld [vmem:[#allocation3 + $0x40] sm:$0xf]  ;;  %v4938_v27 = vld [vmem:[#allocation3 + $0x2c] sm:$0x1] }
 0x3f9   : > { %v1832_v40 = vshll.u32 %v3736_v18, 16  ;;  %v3756_v42 = vcombine.low %v4897_v62, %v4897_v62  ;;  %v1830_v44 = vshrl.u32 %v3736_v18, 16  ;;  %v3757_v60 = vcombine.low %v4906_v15, %v4906_v15  ;;  %v4931_v46 = vld [vmem:[#allocation3 + $0x38] sm:$0xf]  ;;  %v4941_v4 = vld [vmem:[#allocation3 + $0x30] sm:$0xf] }
 0x3fa   : > { %2105 = vrot.lane.b32.xlu1 %v2096_v53, %s4267_s23  ;;  %v1849_v53 = vor.u32 %v1848_v32, %v1844_v0  ;;  %v1918_v48 = vrot.slane %v3749_v35, 1  ;;  %v2184_v55 = vshrl.u32 %v3782_v38, 16  ;;  %v3772_v47 = vcombine.low %v1732_v8, %v4919_v59  ;;  %v4943_v23 = vld [vmem:[#allocation3 + $0x44] sm:$0x1]  ;;  %v4958_v18 = vld [vmem:[#allocation3 + $0x34] sm:$0x1]  ;;  %v4970_v35 = vpop.permute.xlu1 %2313 }
 0x3fb   : > { %1927 = vrot.lane.b32.xlu0 %v1915_v43, %s4260_s28  ;;  %v1834_v39 = vrot.slane %v1832_v40, 1  ;;  %v2186_v43 = vshll.u32 %v3782_v38, 16  ;;  %v3780_v1 = vcombine.low %v4933_v50, %v4933_v50  ;;  %v3741_v28 = vcombine.low %v4931_v46, %v4893_v49  ;;  %v4192_v0 = vld [vmem:[%s5443_s5 + $0x10] sm:$0xff]   ;;  %v1749_v38 = vld [vmem:[#allocation3 + $0x44] sm:$0x1] }
 0x3fc   : > { %v2101_v9 = vrot.slane %v3772_v47, 1  ;;  %v3755_v63 = vcombine.low %v4941_v4, %v4941_v4 }
 0x3fd   : > { %v1835_v57 = vor.u32 %v1834_v39, %v1830_v44  ;;  %v2188_v58 = vrot.slane %v2186_v43, 1  ;;  %v1700_v43 = vld [vmem:[#allocation3 + $0x34] sm:$0x1] }
 0x3fe   : > { %1877 = vrot.lane.b32.xlu1 %v1842_v51, %s4256_s3  ;;  %v1748_v51 = vld [vmem:[#allocation3 + $0x3c] sm:$0x1]  ;;  %v4987_v8 = vpop.permute.xlu1 %2317 }
 0x3ff   : > { %1923 = vrot.lane.b32.xlu0 %v1913_v3, %s4260_s28  ;;  %v3795_v61 = vcombine.low %v1756_v56, %v1748_v51  ;;  %v4913_v3 = vld [vmem:[#allocation3 + $0x2c] sm:$0x1]  ;;  %v2189_v25 = vor.u32 %v2188_v58, %v2184_v55  ;;  %v3787_v49 = vcombine.low %v4879_v24, %v1748_v51  ;;  %v1708_v56 = vld [vmem:[#allocation3 + $0x30] sm:$0xe] }
 0x400   : > { %v3793_v7 = vcombine.low %v1754_v5, %v4913_v3  ;;  %v3785_v44 = vcombine.low %v4890_v14, %v4913_v3  ;;  %v1747_v14 = vld [vmem:[#allocation3 + $0x34] sm:$0x1]  ;;  %v1755_v3 = vld [vmem:[#allocation3 + $0x30] sm:$0xe] }
 0x401   : > { %v2284_v6 = vrot.slane %v3795_v61, 1  ;;  %v2221_v58 = vshll.u32 %v3787_v49, 16  ;;  %v3764_v61 = vcombine.low %v4897_v62, %v4919_v59  ;;  %v2219_v62 = vshrl.u32 %v3787_v49, 16 }
 0x402   : > { %2241 = vrot.lane.b32.xlu1 %v2196_v45, %s4264_s1  ;;  %v4916_v45 = vld [vmem:[#allocation3 + $0x28] sm:$0xf] }
 0x403   : > { %2287 = vrot.lane.b32.xlu0 %v2279_v10, %s4265_s22  ;;  %v4922_v10 = vld [vmem:[#allocation3 + $0x2c] sm:$0x1]  ;;  %v3754_v13 = vcombine.low %v4916_v45, %v4916_v45 }
 0x404   : > { %v3747_v19 = vcombine.low %v1707_v11, %v4922_v10  ;;  %v2207_v11 = vshll.u32 %v3785_v44, 16 }
 0x406   : > { %1873 = vrot.lane.b32.xlu1 %v1828_v17, %s4256_s3  ;;  %v2282_v17 = vrot.slane %v3793_v7, 1  ;;  %v1916_v21 = vrot.slane %v3747_v19, 1  ;;  %v2223_v7 = vrot.slane %v2221_v58, 1  ;;  %v2044_v19 = vshll.u32 %v3764_v61, 16 }
 0x407   : > { %2059 = vrot.lane.b32.xlu0 %v2019_v2, %s4261_s25  ;;  %v4190_v2 = vld [vmem:[%s5443_s5] sm:$0xff]  }
 0x408   : > { %3962 = vmatprep.subr.bf16.mxu1 %v4190_v2 }
 0x409   : > { %3963 = vmatpush3.bf16.msra.mxu1 %v4190_v2  ;;  %v3765_v2 = vcombine.low %v4906_v15, %v4943_v23  ;;  %v3763_v15 = vcombine.low %v4941_v4, %v4958_v18 }
 0x40a   : > { %2061 = vrot.lane.b32.xlu1 %v2026_v22, %s4261_s25  ;;  %v1730_v22 = vld [vmem:[#allocation3 + $0x28] sm:$0xe] }
 0x40b   : > { %2055 = vrot.lane.b32.xlu0 %v2005_v52, %s4261_s25  ;;  %v1733_v52 = vld [vmem:[#allocation3 + $0x40] sm:$0xe]  ;;  %v3770_v54 = vcombine.low %v1730_v22, %v4938_v27  ;;  %v2209_v22 = vrot.slane %v2207_v11, 1 }
 0x40c   : > { %v3773_v29 = vcombine.low %v1733_v52, %v4943_v23  ;;  %v2205_v52 = vshrl.u32 %v3785_v44, 16  ;;  %v5007_v23 = vld [vmem:[#allocation3 + $0x30] sm:$0xf] }
 0x40d   : > { %v2099_v32 = vrot.slane %v3770_v54, 1  ;;  %v5002_v54 = vpop.permute.xlu1 %2157 }
 0x40e   : > { %2153 = vrot.lane.b32.xlu1 %v3779_v12, %s4262_s27  ;;  %v4191_v12 = vld [vmem:[%s5443_s5 + $0x8] sm:$0xff]   ;;  %v2102_v37 = vrot.slane %v3773_v29, 1  ;;  %v2051_v29 = vshll.u32 %v3765_v2, 16 }
 0x40f   : > { %2243 = vrot.lane.b32.xlu0 %v2203_v31, %s4264_s1  ;;  %v1731_v31 = vld [vmem:[#allocation3 + $0x30] sm:$0xe]  ;;  %3964 = vmatprep.subr.bf16.mxu1 %v4191_v12 }
 0x410   : > { %3965 = vmatpush3.bf16.msra.mxu1 %v4191_v12  ;;  %v3771_v40 = vcombine.low %v1731_v31, %v4958_v18  ;;  %v2210_v31 = vor.u32 %v2209_v22, %v2205_v52 }
 0x411   : > { %3966 = vmatprep.subr.bf16.mxu1 %v4192_v0  ;;  %v5014_v4 = vpop.permute.xlu1 %2253 }
 0x412   : > { %2057 = vrot.lane.b32.xlu1 %v2012_v33, %s4261_s25  ;;  %v4961_v33 = vld [vmem:[#allocation3 + $0x30] sm:$0xf]  ;;  %v2100_v51 = vrot.slane %v3771_v40, 1  ;;  %v2037_v40 = vshll.u32 %v3763_v15, 16 }
 0x413   : > { %1879 = vrot.lane.b32.xlu0 %v1849_v53, %s4256_s3  ;;  %v1757_v53 = vld [vmem:[#allocation3 + $0x40] sm:$0xe]  ;;  %v3778_v39 = vcombine.low %v4961_v33, %v4961_v33 }
 0x414   : > { %3967 = vmatpush3.bf16.msra.mxu1 %v4192_v0  ;;  %v3796_v24 = vcombine.low %v1757_v53, %v1749_v38  ;;  %v2053_v53 = vrot.slane %v2051_v29, 1 }
 0x416   : > { %2149 = vrot.lane.b32.xlu1 %v3777_v30, %s4262_s27  ;;  %v1867_v30 = vshll.u32 %v3741_v28, 16  ;;  %v2285_v5 = vrot.slane %v3796_v24, 1  ;;  %v2049_v24 = vshrl.u32 %v3765_v2, 16 }
 0x417   : > { %1971 = vrot.lane.b32.xlu0 %v3756_v42, %s4266_s26  ;;  %v4972_v42 = vld [vmem:[#allocation3 + $0x28] sm:$0xf] }
 0x418   : > { %v3739_v55 = vcombine.low %v4972_v42, %v4922_v10  ;;  %v3762_v10 = vcombine.low %v4916_v45, %v4938_v27  ;;  %v3788_v27 = vcombine.low %v4933_v50, %v1749_v38  ;;  %v3740_v50 = vcombine.low %v5007_v23, %v1700_v43 }
 0x41a   : > { %1933 = vrot.lane.b32.xlu1 %v1918_v48, %s4260_s28  ;;  %v4193_v48 = vld [vmem:[%s5443_s5 + $0x18] sm:$0xff]   ;;  %v2030_v45 = vshll.u32 %v3762_v10, 16  ;;  %v1851_v0 = vshrl.u32 %v3739_v55, 16  ;;  %v2028_v18 = vshrl.u32 %v3762_v10, 16  ;;  %v1860_v44 = vshll.u32 %v3740_v50, 16 }
 0x41b   : > { %1875 = vrot.lane.b32.xlu0 %v1835_v57, %s4256_s3  ;;  %v1869_v57 = vrot.slane %v1867_v30, 1  ;;  %3968 = vmatprep.subr.bf16.mxu1 %v4193_v48  ;;  %v2226_v58 = vshrl.u32 %v3788_v27, 16 }
 0x41c   : > { %3969 = vmatpush3.bf16.msra.mxu1 %v4193_v48  ;;  %v2032_v49 = vrot.slane %v2030_v45, 1 }
 0x41e   : > { %1973 = vrot.lane.b32.xlu1 %v3757_v60, %s4266_s26  ;;  %v1865_v60 = vshrl.u32 %v3741_v28, 16  ;;  %v2046_v28 = vrot.slane %v2044_v19, 1 }
 0x41f   : > { %2239 = vrot.lane.b32.xlu0 %v2189_v25, %s4264_s1  ;;  %v3748_v25 = vcombine.low %v1708_v56, %v1700_v43  ;;  %v2033_v56 = vor.u32 %v2032_v49, %v2028_v18  ;;  %v2039_v43 = vrot.slane %v2037_v40, 1 }
 0x421   : > { %v1917_v47 = vrot.slane %v3748_v25, 1 }
 0x422   : > { %2297 = vrot.lane.b32.xlu1 %v2284_v6, %s4265_s22  ;;  %v1870_v6 = vor.u32 %v1869_v57, %v1865_v60  ;;  %v2054_v57 = vor.u32 %v2053_v53, %v2049_v24  ;;  %v2035_v60 = vshrl.u32 %v3763_v15, 16 }
 0x423   : > { %1967 = vrot.lane.b32.xlu0 %v3754_v13, %s4266_s26  ;;  %v4194_v13 = vld [vmem:[%s5443_s5 + $0x20] sm:$0x3f]  }
 0x424   : > { %4064 = vmatprep.subr.msk.bf16.mxu1 %vm2551_vm5, %v4194_v13  ;;  %v2553_v59 = vsel %vm2551_vm5, %v4194_v13, 0 }
 0x425   : > { %3971 = vmatpush3.bf16.msra.mxu1 %v2553_v59 }
 0x426   : > { %2293 = vrot.lane.b32.xlu1 %v2282_v17, %s4265_s22  ;;  %v3794_v17 = vcombine.low %v1755_v3, %v1747_v14 }
 0x427   : > { %2115 = vrot.lane.b32.xlu0 %v2101_v9, %s4267_s23  ;;  %v1853_v9 = vshll.u32 %v3739_v55, 16  ;;  %v5023_v55 = vpop.permute.xlu1 %2301 }
 0x428   : > { %v2283_v12 = vrot.slane %v3794_v17, 1 }
 0x42a   : > { %1929 = vrot.lane.b32.xlu1 %v1916_v21, %s4260_s28  ;;  %v2224_v21 = vor.u32 %v2223_v7, %v2219_v62 }
 0x42b   : > { %2155 = vrot.lane.b32.xlu0 %v3780_v1, %s4262_s27  ;;  %v5000_v1 = vpop.permute.xlu0 %2311 }
 0x42e   : > { %1969 = vrot.lane.b32.xlu1 %v3755_v63, %s4266_s26  ;;  %v1855_v63 = vrot.slane %v1853_v9, 1 }
 0x42f   : > { %2111 = vrot.lane.b32.xlu0 %v2099_v32, %s4267_s23  ;;  %v2042_v32 = vshrl.u32 %v3764_v61, 16 }
 0x430   : > { %v1856_v30 = vor.u32 %v1855_v63, %v1851_v0 }
 0x431   : > { %v2047_v38 = vor.u32 %v2046_v28, %v2042_v32 }
 0x432   : > { %2117 = vrot.lane.b32.xlu1 %v2102_v37, %s4267_s23  ;;  %v2228_v37 = vshll.u32 %v3788_v27, 16 }
 0x433   : > { %2151 = vrot.lane.b32.xlu0 %v3778_v39, %s4262_s27  ;;  %v5012_v39 = vpop.permute.xlu0 %2315  ;;  %s5478_s27 = sshll.u32 %s5480_s30, 6 }
 0x434   : > { %v2230_v48 = vrot.slane %v2228_v37, 1 }
 0x436   : > { %2113 = vrot.lane.b32.xlu1 %v2100_v51, %s4267_s23  ;;  %v3786_v51 = vcombine.low %v4961_v33, %v1747_v14  ;;  %v2231_v3 = vor.u32 %v2230_v48, %v2226_v58  ;;  %v1858_v33 = vshrl.u32 %v3740_v50, 16  ;;  %v4242_v14 = vld [vmem:[%s4386_s2 + $0x28] sm:$0xff] }
 0x437   : > { %2299 = vrot.lane.b32.xlu0 %v2285_v5, %s4265_s22  ;;  %v5021_v61 = vpop.permute.xlu0 %2319  ;;  %v1862_v5 = vrot.slane %v1860_v44, 1  ;;  %v3886_v7 = vpack.c.bf16 %v4242_v14, %v4242_v14 }
 0x438   : > { %v2214_v25 = vshll.u32 %v3786_v51, 16  ;;  %v2212_v10 = vshrl.u32 %v3786_v51, 16 }
 0x439   : > { %v1863_v13 = vor.u32 %v1862_v5, %v1858_v33 }
 0x43a   : > { %1885 = vrot.lane.b32.xlu1 %v1870_v6, %s4256_s3  ;;  %v2040_v6 = vor.u32 %v2039_v43, %v2035_v60  ;;  %v2216_v11 = vrot.slane %v2214_v25, 1 }
 0x43b   : > { %1931 = vrot.lane.b32.xlu0 %v1917_v47, %s4260_s28  ;;  %v4243_v47 = vld [vmem:[%s4386_s2 + $0x38] sm:$0xff] }
 0x43c   : > { %v3888_v17 = vpack.c.bf16 %v4243_v47, %v4243_v47  ;;  %v2217_v19 = vor.u32 %v2216_v11, %v2212_v10 }
 0x43e   : > { %2249 = vrot.lane.b32.xlu1 %v2224_v21, %s4264_s1  ;;  %v4244_v21 = vld [vmem:[%s4386_s2 + $0x30] sm:$0xff] }
 0x43f   : > { %2295 = vrot.lane.b32.xlu0 %v2283_v12, %s4265_s22  ;;  %v3887_v22 = vpack.c.bf16 %v4244_v21, %v4244_v21 }
 0x442   : > { %2245 = vrot.lane.b32.xlu1 %v2210_v31, %s4264_s1 }
 0x443   : > { %2067 = vrot.lane.b32.xlu0 %v2047_v38, %s4261_s25 }
 0x446   : > { %1881 = vrot.lane.b32.xlu1 %v1856_v30, %s4256_s3 }
 0x447   : > { %2063 = vrot.lane.b32.xlu0 %v2033_v56, %s4261_s25 }
 0x44a   : > { %2069 = vrot.lane.b32.xlu1 %v2054_v57, %s4261_s25 }
 0x44b   : > { %2251 = vrot.lane.b32.xlu0 %v2231_v3, %s4264_s1 }
 0x44e   : > { %2065 = vrot.lane.b32.xlu1 %v2040_v6, %s4261_s25 }
 0x44f   : > { %1883 = vrot.lane.b32.xlu0 %v1863_v13, %s4256_s3  ;;  %s602_s3 = scalar_lea.vmem %s5457_s19, %s5478_s27 }
 0x450   : > { %v2146_v59 = vpop.permute.xlu1 %2145 }
 0x451   : > { %v5028_v62 = vpop.permute.xlu0 %1963 }
 0x452   : > { %2321 = vrot.lane.b32.xlu1 %v3886_v7, %s4263_s21 }
 0x453   : > { %2247 = vrot.lane.b32.xlu0 %v2217_v19, %s4264_s1 }
 0x454   : > { %v1926_v9 = vpop.permute.xlu1 %1925 }
 0x455   : > { %v1960_v2 = vpop.permute.xlu0 %1959 }
 0x456   : > { %2325 = vrot.lane.b32.xlu1 %v3888_v17, %s4263_s21 }
 0x457   : > { %2323 = vrot.lane.b32.xlu0 %v3887_v22, %s4263_s21 }
 0x458   : > { %v1966_v52 = vpop.permute.xlu1 %1965 }
 0x459   : > { %v2108_v45 = vpop.permute.xlu0 %2107 }
 0x45c   : > { %v2290_v27 = vpop.permute.xlu1 %2289 }
 0x45d   : > { %v2148_v12 = vpop.permute.xlu0 %2147 }
 0x460   : > { %v1922_v28 = vpop.permute.xlu1 %1921 }
 0x461   : > { %v2104_v63 = vpop.permute.xlu0 %2103 }
 0x464   : > { %v1962_v29 = vpop.permute.xlu1 %1961 }
 0x465   : > { %v2144_v15 = vpop.permute.xlu0 %2143 }
 0x468   : > { %v2110_v31 = vpop.permute.xlu1 %2109 }
 0x469   : > { %v2292_v32 = vpop.permute.xlu0 %2291 }
 0x46c   : > { %v2106_v0 = vpop.permute.xlu1 %2105 }
 0x46d   : > { %v5037_v49 = vpop.permute.xlu0 %1927 }
 0x470   : > { %v1878_v37 = vpop.permute.xlu1 %1877 }
 0x471   : > { %v2338_v50 = vsel %vm681_vm2, %v4836_v20, %v1878_v37  ;;  %v1924_v53 = vpop.permute.xlu0 %1923 }
 0x472   : > { %v2358_v38 = vsel %vm634_vm0, %v2338_v50, %v1926_v9 }
 0x473   : > { %v2375_v40 = vsel %vm2367_vm6, %v2358_v38, %v1966_v52 }
 0x474   : > { %v2242_v30 = vpop.permute.xlu1 %2241 }
 0x475   : > { %v2288_v18 = vpop.permute.xlu0 %2287 }
 0x478   : > { %v1874_v24 = vpop.permute.xlu1 %1873 }
 0x479   : > { %v2060_v48 = vpop.permute.xlu0 %2059  ;;  %v2332_v20 = vsel %vm681_vm2, %v4853_v36, %v1874_v24  ;;  %v2369_v36 = vsel %vm2367_vm6, %v4765_v34, %v1960_v2 }
 0x47a   : > { %v2354_v58 = vsel %vm634_vm0, %v2332_v20, %v1922_v28 }
 0x47b   : > { %v2371_v25 = vsel %vm2367_vm6, %v2354_v58, %v1962_v29 }
 0x47c   : > { %v2062_v44 = vpop.permute.xlu1 %2061 }
 0x47d   : > { %v2391_v51 = vsel %vm1291_vm10, %v2375_v40, %v2062_v44  ;;  %v2056_v43 = vpop.permute.xlu0 %2055 }
 0x47e   : > { %v2408_v56 = vsel %vm2400_vm7, %v2391_v51, %v2110_v31  ;;  %v2385_v13 = vsel %vm1291_vm10, %v2369_v36, %v2056_v43 }
 0x47f   : > { %v2402_v17 = vsel %vm2400_vm7, %v2385_v13, %v2104_v63 }
 0x480   : > { %v5047_v57 = vpop.permute.xlu1 %2153  ;;  %v2418_v52 = vsel %vm1308_vm11, %v2402_v17, %v2144_v15 }
 0x481   : > { %v2244_v60 = vpop.permute.xlu0 %2243 }
 0x484   : > { %v2058_v5 = vpop.permute.xlu1 %2057 }
 0x485   : > { %v5051_v3 = vpop.permute.xlu0 %1879  ;;  %v2387_v6 = vsel %vm1291_vm10, %v2371_v25, %v2058_v5 }
 0x486   : > { %v2404_v14 = vsel %vm2400_vm7, %v2387_v6, %v2106_v0 }
 0x487   : > { %v2420_v10 = vsel %vm1308_vm11, %v2404_v14, %v2146_v59 }
 0x488   : > { %v2150_v33 = vpop.permute.xlu1 %2149  ;;  %v2437_v21 = vsel %vm2433_vm8, %v2420_v10, %v2242_v30 }
 0x489   : > { %v5055_v7 = vpop.permute.xlu0 %1971  ;;  %v2453_v28 = vsel %vm1375_vm12, %v2437_v21, %v2290_v27  ;;  %v2424_v58 = vsel %vm1308_vm11, %v2408_v56, %v2150_v33 }
 0x48a   : > { %v2470_v37 = vsel %vm2466_vm9, %v2453_v28, %v4970_v35 }
 0x48c   : > { %v1934_v11 = vpop.permute.xlu1 %1933 }
 0x48d   : > { %v1876_v47 = vpop.permute.xlu0 %1875 }
 0x48e   : > { %v2335_v19 = vsel %vm681_vm2, %v4882_v26, %v1876_v47 }
 0x48f   : > { %v2356_v22 = vsel %vm634_vm0, %v2335_v19, %v1924_v53 }
 0x490   : > { %v1974_v9 = vpop.permute.xlu1 %1973  ;;  %v2373_v34 = vsel %vm2367_vm6, %v2356_v22, %v5028_v62 }
 0x491   : > { %v2389_v2 = vsel %vm1291_vm10, %v2373_v34, %v2060_v48  ;;  %v2240_v59 = vpop.permute.xlu0 %2239 }
 0x492   : > { %v2406_v63 = vsel %vm2400_vm7, %v2389_v2, %v2108_v45  ;;  %v2435_v26 = vsel %vm2433_vm8, %v2418_v52, %v2240_v59 }
 0x493   : > { %v2422_v31 = vsel %vm1308_vm11, %v2406_v63, %v2148_v12  ;;  %v2451_v0 = vsel %vm1375_vm12, %v2435_v26, %v2288_v18 }
 0x494   : > { %v2298_v29 = vpop.permute.xlu1 %2297  ;;  %v2468_v62 = vsel %vm2466_vm9, %v2451_v0, %v5000_v1  ;;  %v2439_v15 = vsel %vm2433_vm8, %v2422_v31, %v2244_v60 }
 0x495   : > { %v1968_v27 = vpop.permute.xlu0 %1967  ;;  %v3807_v50 = vcombine.low %v2468_v62, %v2470_v37  ;;  %v2455_v45 = vsel %vm1375_vm12, %v2439_v15, %v2292_v32 }
 0x496   : > { %v2472_v14 = vsel %vm2466_vm9, %v2455_v45, %v5012_v39 }
 0x497   : > { %3972 = vmatprep.mubr.msk.bf16.mxu1 %vm2538_vm13, %v3807_v50 }
 0x498   : > { %v2294_v38 = vpop.permute.xlu1 %2293 }
 0x499   : > { %v2116_v53 = vpop.permute.xlu0 %2115 }
 0x49c   : > { %v1930_v12 = vpop.permute.xlu1 %1929 }
 0x49d   : > { %v2156_v40 = vpop.permute.xlu0 %2155 }
 0x4a0   : > { %v1970_v30 = vpop.permute.xlu1 %1969 }
 0x4a1   : > { %v2112_v18 = vpop.permute.xlu0 %2111 }
 0x4a4   : > { %v2118_v24 = vpop.permute.xlu1 %2117 }
 0x4a5   : > { %v2152_v1 = vpop.permute.xlu0 %2151 }
 0x4a8   : > { %v2114_v48 = vpop.permute.xlu1 %2113 }
 0x4a9   : > { %v2300_v44 = vpop.permute.xlu0 %2299 }
 0x4ac   : > { %v1886_v35 = vpop.permute.xlu1 %1885 }
 0x4ad   : > { %v1932_v51 = vpop.permute.xlu0 %1931  ;;  %v2350_v5 = vsel %vm681_vm2, %v4931_v46, %v1886_v35  ;;  %v2341_v46 = vsel %vm681_vm2, %v4872_v16, %v5051_v3 }
 0x4ae   : > { %v2366_v47 = vsel %vm634_vm0, %v2350_v5, %v1934_v11  ;;  %v2360_v11 = vsel %vm634_vm0, %v2341_v46, %v5037_v49 }
 0x4af   : > { %v2383_v17 = vsel %vm2367_vm6, %v2366_v47, %v1974_v9 }
 0x4b0   : > { %v2250_v43 = vpop.permute.xlu1 %2249 }
 0x4b1   : > { %v2296_v20 = vpop.permute.xlu0 %2295 }
 0x4b4   : > { %v2246_v60 = vpop.permute.xlu1 %2245 }
 0x4b5   : > { %v2441_v32 = vsel %vm2433_vm8, %v2424_v58, %v2246_v60  ;;  %v2068_v6 = vpop.permute.xlu0 %2067  ;;  %v3806_v58 = vld [vmem:[%s5444_s6] ss:$0 sm:$0xff] }
 0x4b6   : > { %v2457_v25 = vsel %vm1375_vm12, %v2441_v32, %v2294_v38 }
 0x4b7   : > { %v2474_v36 = vsel %vm2466_vm9, %v2457_v25, %v4987_v8 }
 0x4b8   : > { %v3808_v13 = vcombine.low %v2472_v14, %v2474_v36  ;;  %v1882_v10 = vpop.permute.xlu1 %1881 }
 0x4b9   : > { %v2344_v56 = vsel %vm681_vm2, %v4972_v42, %v1882_v10  ;;  %v2064_v33 = vpop.permute.xlu0 %2063  ;;  %v2377_v42 = vsel %vm2367_vm6, %v2360_v11, %v1968_v27 }
 0x4ba   : > { %3973 = vmatmul.mubr.msk.bf16.vlgmr.msra.gmra.mrb[0].mxu1 %vm2538_vm13, %v3808_v13  ;;  %v2362_v19 = vsel %vm634_vm0, %v2344_v56, %v1930_v12  ;;  %v2393_v16 = vsel %vm1291_vm10, %v2377_v42, %v2064_v33 }
 0x4bb   : > { %v2379_v34 = vsel %vm2367_vm6, %v2362_v19, %v1970_v30  ;;  %v2410_v28 = vsel %vm2400_vm7, %v2393_v16, %v2112_v18 }
 0x4bc   : > { %v2070_v39 = vpop.permute.xlu1 %2069  ;;  %v2426_v15 = vsel %vm1308_vm11, %v2410_v28, %v2152_v1 }
 0x4bd   : > { %v2399_v8 = vsel %vm1291_vm10, %v2383_v17, %v2070_v39  ;;  %v2252_v21 = vpop.permute.xlu0 %2251 }
 0x4be   : > { %v2416_v22 = vsel %vm2400_vm7, %v2399_v8, %v2118_v24 }
 0x4bf   : > { %v2432_v52 = vsel %vm1308_vm11, %v2416_v22, %v5002_v54 }
 0x4c0   : > { %v2066_v2 = vpop.permute.xlu1 %2065  ;;  %v2449_v54 = vsel %vm2433_vm8, %v2432_v52, %v5014_v4 }
 0x4c1   : > { %v2395_v3 = vsel %vm1291_vm10, %v2379_v34, %v2066_v2  ;;  %v1884_v59 = vpop.permute.xlu0 %1883 }
 0x4c2   : > { %v2412_v9 = vsel %vm2400_vm7, %v2395_v3, %v2114_v48  ;;  %v2347_v63 = vsel %vm681_vm2, %v5007_v23, %v1884_v59 }
 0x4c3   : > { %v2428_v49 = vsel %vm1308_vm11, %v2412_v9, %v5047_v57  ;;  %v2364_v0 = vsel %vm634_vm0, %v2347_v63, %v1932_v51  ;;  %vm2756_vm0 = vcmask 1043456  }
 0x4c4   : > { %v2445_v26 = vsel %vm2433_vm8, %v2428_v49, %v2250_v43  ;;  %v2322_v31 = vpop.permute.xlu1 %2321  ;;  %v2381_v37 = vsel %vm2367_vm6, %v2364_v0, %v5055_v7  ;;  %v2465_v7 = vsel %vm1375_vm12, %v2449_v54, %v5023_v55  ;;  %v2622_v55 = vld [vmem:[%s5447_s9] sm:$0xf] }
 0x4c5   : > { %v2461_v62 = vsel %vm1375_vm12, %v2445_v26, %v2298_v29  ;;  %v2397_v57 = vsel %vm1291_vm10, %v2381_v37, %v2068_v6  ;;  %v2248_v27 = vpop.permute.xlu0 %2247  ;;  %vm4269_vm10 = vmmov 0  }
 0x4c6   : > { %v2443_v23 = vsel %vm2433_vm8, %v2426_v15, %v2248_v27  ;;  %v2478_v50 = vsel %vm2466_vm9, %v2461_v62, %v2322_v31  ;;  %v2414_v45 = vsel %vm2400_vm7, %v2397_v57, %v2116_v53 }
 0x4c7   : > { %v2459_v29 = vsel %vm1375_vm12, %v2443_v23, %v2296_v20  ;;  %v2430_v12 = vsel %vm1308_vm11, %v2414_v45, %v2156_v40  ;;  %v2758_v40 = vsel %vm2756_vm0, %v2622_v55, 0  ;;  %vm2811_vm11 = vcmask 1041408  }
 0x4c8   : > { %v2326_v38 = vpop.permute.xlu1 %2325  ;;  %v2476_v4 = vsel %vm2466_vm9, %v2459_v29, %v5021_v61  ;;  %v2447_v30 = vsel %vm2433_vm8, %v2430_v12, %v2252_v21  ;;  %v4268_v61 = vmov 0.0  }
 0x4c9   : > { %v2482_v18 = vsel %vm2466_vm9, %v2465_v7, %v2326_v38  ;;  %v3809_v24 = vcombine.low %v2476_v4, %v2478_v50  ;;  %v2463_v1 = vsel %vm1375_vm12, %v2447_v30, %v2300_v44  ;;  %v2324_v48 = vpop.permute.xlu0 %2323  ;;  %3980 = vmatprep.subr.bf16.mxu1 %v4268_v61 }
 0x4ca   : > { %v2480_v53 = vsel %vm2466_vm9, %v2463_v1, %v2324_v48  ;;  %3981 = vmatpush3.bf16.msra.mxu1 %v2758_v40 }
 0x4cb   : > { %v3810_v35 = vcombine.low %v2480_v53, %v2482_v18  ;;  %3976 = vmatprep.mubr.msk.bf16.mxu1 %vm2538_vm13, %v3809_v24  ;;  %3986 = vmatprep.subr.bf16.mxu1 %v4268_v61 }
 0x4cd   : > { %3977 = vmatmul.mubr.msk.bf16.gmra.mrb[4].mxu1 %vm2538_vm13, %v3810_v35 }
 0x4ce   : > { %3982 = vmatprep.mubr.msk.bf16.mxu1 %vm4269_vm10, %v4268_v61 }
 0x58d   : > { %v3974_v44 = vpop.f32.mrb[0].mxu1 }
 0x58e   : > { %v2589_v51 = vpop.f32.mrb[1].mxu1  ;;  %v5157_v25 = vadd.f32 %v3974_v44, %v3806_v58 }
 0x58f   : > { %v3975_v43 = vpop.f32.mrb[2].mxu1  ;;  %v5153_v32 = vadd.f32 %v3806_v58, %v2589_v51 }
 0x590   : > { %v2592_v20 = vpop.f32.mrb[3].mxu1  ;;  %v2629_v36 = vsel %vm681_vm2, %v5157_v25, 0.0  ;;  %v5163_v13 = vadd.f32 %v3975_v43, %v3806_v58 }
 0x591   : > { %v5151_v60 = vadd.f32 %v3806_v58, %v2592_v20  ;;  %v2626_v6 = vsel %vm681_vm2, %v5153_v32, 0.0 }
 0x592   : > { %v2631_v33 = vsel %vm681_vm2, %v5163_v13, 0.0 }
 0x593   : > { %v2627_v5 = vsel %vm681_vm2, %v5151_v60, 0.0 }
 0x594   : > { %v2628_v14 = vadd.f32 %v2627_v5, %v2626_v6 }
 0x596   : > { %v2630_v10 = vadd.f32 %v2629_v36, %v2628_v14 }
 0x598   : > { %v2632_v39 = vadd.f32 %v2631_v33, %v2630_v10 }
 0x5a0   : > { %v3978_v47 = vpop.f32.mrb[4].mxu1 }
 0x5a1   : > { %v2605_v56 = vpop.f32.mrb[5].mxu1  ;;  %v5169_v8 = vadd.f32 %v3978_v47, %v3806_v58 }
 0x5a2   : > { %v5167_v46 = vadd.f32 %v3806_v58, %v2605_v56  ;;  %v3979_v17 = vpop.f32.mrb[6].mxu1 }
 0x5a3   : > { %v2608_v19 = vpop.f32.mrb[7].mxu1  ;;  %v5175_v22 = vadd.f32 %v3979_v17, %v3806_v58  ;;  %v2637_v16 = vsel %vm681_vm2, %v5169_v8, 0.0 }
 0x5a4   : > { %v2633_v11 = vsel %vm681_vm2, %v5167_v46, 0.0  ;;  %v5173_v21 = vadd.f32 %v3806_v58, %v2608_v19 }
 0x5a5   : > { %v2634_v42 = vadd.f32 %v2633_v11, %v2632_v39  ;;  %v2639_v9 = vsel %vm681_vm2, %v5175_v22, 0.0 }
 0x5a6   : > { %v2635_v34 = vsel %vm681_vm2, %v5173_v21, 0.0 }
 0x5a7   : > { %v2636_v2 = vadd.f32 %v2635_v34, %v2634_v42  ;;  %v3820_v42 = vld [vmem:[%s5445_s7] ss:$0 sm:$0xff] }
 0x5a9   : > { %v2638_v3 = vadd.f32 %v2637_v16, %v2636_v2 }
 0x5ab   : > { %v2640_v52 = vadd.f32 %v2639_v9, %v2638_v3  ;;  %v3821_v9 = vld [vmem:[%s5446_s8] ss:$0 sm:$0xff] }
 0x5ad   : > { %v2641_v59 = vrot.slane %v2640_v52, 4 }
 0x5af   : > { %v2642_v49 = vadd.f32 %v2641_v59, %v2640_v52 }
 0x5b1   : > { %v2643_v28 = vrot.slane %v2642_v49, 2 }
 0x5b3   : > { %v2644_v63 = vadd.f32 %v2643_v28, %v2642_v49 }
 0x5b5   : > { %v2645_v26 = vrot.slane %v2644_v63, 1 }
 0x5b7   : > { %v2646_v31 = vadd.f32 %v2645_v26, %v2644_v63 }
 0x5b9   : > { %v2647_v0 = vmul.f32 0.015625, %v2646_v31 }
 0x5bb   : > { %v2648_v62 = vsub.f32 %v5153_v32, %v2647_v0  ;;  %v2649_v37 = vsub.f32 %v5151_v60, %v2647_v0  ;;  %v2650_v54 = vsub.f32 %v5157_v25, %v2647_v0  ;;  %v2651_v57 = vsub.f32 %v5163_v13, %v2647_v0 }
 0x5bc   : > { %v2652_v15 = vsub.f32 %v5167_v46, %v2647_v0  ;;  %v2653_v45 = vsub.f32 %v5173_v21, %v2647_v0  ;;  %v2654_v4 = vsub.f32 %v5169_v8, %v2647_v0  ;;  %v2655_v1 = vsub.f32 %v5175_v22, %v2647_v0 }
 0x5bd   : > { %v2656_v27 = vmul.f32 %v2648_v62, %v2648_v62  ;;  %v2657_v23 = vmul.f32 %v2649_v37, %v2649_v37  ;;  %v2658_v50 = vmul.f32 %v2650_v54, %v2650_v54  ;;  %v2659_v38 = vmul.f32 %v2651_v57, %v2651_v57 }
 0x5be   : > { %v2660_v30 = vmul.f32 %v2652_v15, %v2652_v15  ;;  %v2661_v48 = vmul.f32 %v2653_v45, %v2653_v45  ;;  %v2662_v55 = vmul.f32 %v2654_v4, %v2654_v4  ;;  %v2663_v51 = vmul.f32 %v2655_v1, %v2655_v1 }
 0x5bf   : > { %v2664_v29 = vsel %vm681_vm2, %v2656_v27, 0.0  ;;  %v2665_v12 = vsel %vm681_vm2, %v2657_v23, 0.0  ;;  %v2667_v18 = vsel %vm681_vm2, %v2658_v50, 0.0  ;;  %v2669_v53 = vsel %vm681_vm2, %v2659_v38, 0.0 }
 0x5c0   : > { %v2666_v7 = vadd.f32 %v2665_v12, %v2664_v29  ;;  %v2671_v40 = vsel %vm681_vm2, %v2660_v30, 0.0  ;;  %v2673_v43 = vsel %vm681_vm2, %v2661_v48, 0.0  ;;  %v2675_v58 = vsel %vm681_vm2, %v2662_v55, 0.0 }
 0x5c1   : > { %v2677_v6 = vsel %vm681_vm2, %v2663_v51, 0.0 }
 0x5c2   : > { %v2668_v24 = vadd.f32 %v2667_v18, %v2666_v7 }
 0x5c4   : > { %v2670_v35 = vadd.f32 %v2669_v53, %v2668_v24 }
 0x5c6   : > { %v2672_v44 = vadd.f32 %v2671_v40, %v2670_v35 }
 0x5c8   : > { %v2674_v20 = vadd.f32 %v2673_v43, %v2672_v44 }
 0x5ca   : > { %v2676_v5 = vadd.f32 %v2675_v58, %v2674_v20 }
 0x5cc   : > { %v2678_v14 = vadd.f32 %v2677_v6, %v2676_v5 }
 0x5ce   : > { %v2679_v36 = vrot.slane %v2678_v14, 4 }
 0x5d0   : > { %v2680_v10 = vadd.f32 %v2679_v36, %v2678_v14 }
 0x5d2   : > { %v2681_v47 = vrot.slane %v2680_v10, 2 }
 0x5d4   : > { %v2682_v56 = vadd.f32 %v2681_v47, %v2680_v10  ;;  %v2624_v47 = vld [vmem:[%s5449_s11] sm:$0x3] }
 0x5d6   : > { %v2683_v33 = vrot.slane %v2682_v56, 1 }
 0x5d8   : > { %v2684_v17 = vadd.f32 %v2683_v33, %v2682_v56 }
 0x5da   : > { %v2685_v39 = vmul.f32 0.015625, %v2684_v17  ;;  %v2813_v17 = vsel %vm2811_vm11, %v2624_v47, 0 }
 0x5dc   : > { %v2686_v19 = vadd.f32 1e-05, %v2685_v39  ;;  %v3822_v39 = vld [vmem:[%s5448_s10] ss:$0 sm:$0xff] }
 0x5de   : > { %4197 = vrsqrt.f32 %v2686_v19 }
 0x5e8   : > { %v4198_v11 = vpop.eup %4197 }
 0x5e9   : > { %v2688_v34 = vmul.f32 %v4198_v11, %v2648_v62  ;;  %v2689_v2 = vmul.f32 %v4198_v11, %v2649_v37  ;;  %v2690_v16 = vmul.f32 %v4198_v11, %v2650_v54  ;;  %v2691_v3 = vmul.f32 %v4198_v11, %v2651_v57 }
 0x5ea   : > { %v2692_v52 = vmul.f32 %v4198_v11, %v2652_v15  ;;  %v2693_v59 = vmul.f32 %v4198_v11, %v2653_v45  ;;  %v2694_v31 = vmul.f32 %v4198_v11, %v2654_v4  ;;  %v2695_v37 = vmul.f32 %v4198_v11, %v2655_v1 }
 0x5eb   : > { %v2702_v49 = vmul.f32 %v3820_v42, %v2688_v34  ;;  %v2703_v28 = vmul.f32 %v3820_v42, %v2689_v2  ;;  %v2704_v63 = vmul.f32 %v3820_v42, %v2690_v16  ;;  %v2705_v26 = vmul.f32 %v3820_v42, %v2691_v3 }
 0x5ec   : > { %v2706_v0 = vmul.f32 %v3820_v42, %v2692_v52  ;;  %v2707_v54 = vmul.f32 %v3820_v42, %v2693_v59  ;;  %v2708_v38 = vmul.f32 %v3820_v42, %v2694_v31  ;;  %v2709_v4 = vmul.f32 %v3820_v42, %v2695_v37 }
 0x5ed   : > { %v5205_v27 = vadd.f32 %v3821_v9, %v2702_v49  ;;  %v5207_v23 = vadd.f32 %v3821_v9, %v2703_v28  ;;  %v5209_v62 = vadd.f32 %v3821_v9, %v2704_v63  ;;  %v5211_v57 = vadd.f32 %v3821_v9, %v2705_v26  ;;  %v3824_v49 = vld [vmem:[%s5450_s12] ss:$0 sm:$0xff]  ;;  %v5263_v63 = vld [vmem:[%s5453_s15 + $0x8] sm:$0xf] }
 0x5ee   : > { %v5217_v29 = vadd.f32 %v3821_v9, %v2706_v0  ;;  %v5221_v30 = vadd.f32 %v3821_v9, %v2707_v54  ;;  %v5225_v1 = vadd.f32 %v3821_v9, %v2708_v38  ;;  %v5229_v35 = vadd.f32 %v3821_v9, %v2709_v4  ;;  %v3834_v9 = vld [vmem:[%s5453_s15 + $0x4] sm:$0xf] }
 0x5ef   : > { %v2724_v15 = vsel %vm681_vm2, %v5205_v27, 0.0  ;;  %v2725_v50 = vsel %vm681_vm2, %v5207_v23, 0.0  ;;  %v2727_v12 = vsel %vm681_vm2, %v5209_v62, 0.0  ;;  %v2729_v18 = vsel %vm681_vm2, %v5211_v57, 0.0 }
 0x5f0   : > { %v2726_v45 = vadd.f32 %v2725_v50, %v2724_v15  ;;  %v2731_v48 = vsel %vm681_vm2, %v5217_v29, 0.0  ;;  %v2733_v55 = vsel %vm681_vm2, %v5221_v30, 0.0  ;;  %v2735_v44 = vsel %vm681_vm2, %v5225_v1, 0.0 }
 0x5f1   : > { %v2737_v43 = vsel %vm681_vm2, %v5229_v35, 0.0  ;;  %v3086_v52 = vsel %vm2756_vm0, %v3834_v9, 0 }
 0x5f2   : > { %v2728_v7 = vadd.f32 %v2727_v12, %v2726_v45 }
 0x5f4   : > { %v2730_v24 = vadd.f32 %v2729_v18, %v2728_v7 }
 0x5f6   : > { %v2732_v53 = vadd.f32 %v2731_v48, %v2730_v24 }
 0x5f8   : > { %v2734_v40 = vadd.f32 %v2733_v55, %v2732_v53 }
 0x5fa   : > { %v2736_v51 = vadd.f32 %v2735_v44, %v2734_v40 }
 0x5fc   : > { %v2738_v20 = vadd.f32 %v2737_v43, %v2736_v51 }
 0x5fe   : > { %v2739_v58 = vrot.slane %v2738_v20, 4 }
 0x600   : > { %v2740_v5 = vadd.f32 %v2739_v58, %v2738_v20 }
 0x602   : > { %v2741_v6 = vrot.slane %v2740_v5, 2 }
 0x604   : > { %v2742_v14 = vadd.f32 %v2741_v6, %v2740_v5 }
 0x606   : > { %v2743_v36 = vrot.slane %v2742_v14, 1 }
 0x608   : > { %v2744_v10 = vadd.f32 %v2743_v36, %v2742_v14 }
 0x60a   : > { %v2745_v56 = vmul.f32 0.015625, %v2744_v10 }
 0x60c   : > { %v2746_v33 = vpack.c.bf16 %v2745_v56, %v2745_v56 }
 0x60e   : > { %3983 = vmatmul.mubr.msk.bf16.vlgmr.msra.gmra.mrb[8].mxu1 %vm681_vm2, %v2746_v33 }
 0x60f   : > { %3987 = vmatpush3.bf16.msra.mxu1 %v2813_v17  ;;  %3988 = vmatprep.mubr.msk.bf16.mxu1 %vm4269_vm10, %v4268_v61  ;;  %v2987_v61 = vld [vmem:[%s5453_s15] sm:$0xf] }
 0x610   : > { %4066 = vmatprep.subr.msk.bf16.mxu1 %vm2756_vm0, %v3834_v9  ;;  %4065 = vmatprep.subr.msk.bf16.mxu0 %vm2756_vm0, %v2987_v61  ;;  %v3008_v59 = vsel %vm2756_vm0, %v2987_v61, 0 }
 0x611   : > { %3993 = vmatpush3.bf16.msra.mxu0 %v3008_v59 }
 0x612   : > { %4067 = vmatprep.subr.msk.bf16.mxu0 %vm2756_vm0, %v5263_v63 }
 0x6e1   : > { %v2794_v19 = vpop.f32.mrb[8].mxu1 }
 0x6e2   : > { %v2795_v11 = vadd.f32 %v3822_v39, %v2794_v19  ;;  %v3984_v42 = vpop.f32.mrb[9].mxu1 }
 0x6e3   : > { %v2797_v34 = vpop.f32.mrb[10].mxu1 }
 0x6e4   : > { %v2800_v2 = vmax.f32 %v2795_v11, 0.0  ;;  %v3985_v16 = vpop.f32.mrb[11].mxu1 }
 0x6e6   : > { %v2801_v3 = vpack.c.bf16 %v2800_v2, %v2800_v2 }
 0x6e8   : > { %3989 = vmatmul.mubr.msk.bf16.vlgmr.msra.gmra.mrb[12].mxu1 %vm679_vm1, %v2801_v3 }
 0x6e9   : > { %4003 = vmatpush3.bf16.msra.mxu1 %v3086_v52 }
 0x7bb   : > { %v2849_v28 = vpop.f32.mrb[12].mxu1 }
 0x7bc   : > { %v2850_v26 = vadd.f32 %v3824_v49, %v2849_v28  ;;  %v3990_v31 = vpop.f32.mrb[13].mxu1 }
 0x7bd   : > { %v2852_v0 = vpop.f32.mrb[14].mxu1 }
 0x7be   : > { %v3826_v37 = vmul.f32 -1.442695, %v2850_v26  ;;  %v3991_v54 = vpop.f32.mrb[15].mxu1 }
 0x7c0   : > { %4199 = vpow2.f32 %v3826_v37 }
 0x7ca   : > { %v4200_v15 = vpop.eup %4199 }
 0x7cb   : > { %v2858_v50 = vadd.f32 1.0, %v4200_v15 }
 0x7cd   : > { %4201 = vrcp.f32 %v2858_v50 }
 0x7d7   : > { %v4202_v45 = vpop.eup %4201 }
 0x7d8   : > { %v2864_v38 = vrot.slane %v4202_v45, %v4412_v41 }
 0x7da   : > { %v2865_v12 = vmul.f32 %v2864_v38, %v5205_v27  ;;  %v2866_v7 = vmul.f32 %v2864_v38, %v5207_v23  ;;  %v2867_v4 = vmul.f32 %v2864_v38, %v5209_v62  ;;  %v2868_v18 = vmul.f32 %v2864_v38, %v5211_v57 }
 0x7db   : > { %v2869_v24 = vmul.f32 %v2864_v38, %v5217_v29  ;;  %v2870_v41 = vmul.f32 %v2864_v38, %v5221_v30  ;;  %v2872_v30 = vmul.f32 %v2864_v38, %v5229_v35 }
 0x7dc   : > { %v5274_v48 = vadd.f32 %v2865_v12, %v5153_v32  ;;  %v5277_v53 = vadd.f32 %v2866_v7, %v5151_v60  ;;  %v5280_v55 = vadd.f32 %v2867_v4, %v5157_v25  ;;  %v5284_v27 = vadd.f32 %v2868_v18, %v5163_v13 }
 0x7dd   : > { %v2871_v32 = vmul.f32 %v2864_v38, %v5225_v1  ;;  %v5292_v60 = vadd.f32 %v2869_v24, %v5167_v46  ;;  %v5298_v13 = vadd.f32 %v2870_v41, %v5173_v21  ;;  %v5308_v43 = vadd.f32 %v2872_v30, %v5175_v22 }
 0x7de   : > { %v2885_v23 = vsel %vm681_vm2, %v5274_v48, 0.0  ;;  %v2886_v62 = vsel %vm681_vm2, %v5277_v53, 0.0  ;;  %v2888_v25 = vsel %vm681_vm2, %v5280_v55, 0.0  ;;  %v2890_v40 = vsel %vm681_vm2, %v5284_v27, 0.0 }
 0x7df   : > { %v2887_v57 = vadd.f32 %v2886_v62, %v2885_v23  ;;  %v5303_v51 = vadd.f32 %v2871_v32, %v5169_v8  ;;  %v2892_v46 = vsel %vm681_vm2, %v5292_v60, 0.0  ;;  %v2894_v35 = vsel %vm681_vm2, %v5298_v13, 0.0 }
 0x7e0   : > { %v2898_v5 = vsel %vm681_vm2, %v5308_v43, 0.0 }
 0x7e1   : > { %v2889_v29 = vadd.f32 %v2888_v25, %v2887_v57  ;;  %v2896_v21 = vsel %vm681_vm2, %v5303_v51, 0.0 }
 0x7e3   : > { %v2891_v44 = vadd.f32 %v2890_v40, %v2889_v29 }
 0x7e5   : > { %v2893_v1 = vadd.f32 %v2892_v46, %v2891_v44  ;;  %v3827_v46 = vld [vmem:[%s5451_s13] ss:$0 sm:$0xff] }
 0x7e7   : > { %v2895_v20 = vadd.f32 %v2894_v35, %v2893_v1 }
 0x7e9   : > { %v2897_v58 = vadd.f32 %v2896_v21, %v2895_v20 }
 0x7eb   : > { %v2899_v8 = vadd.f32 %v2898_v5, %v2897_v58  ;;  %v3828_v58 = vld [vmem:[%s5452_s14] ss:$0 sm:$0xff] }
 0x7ed   : > { %v2900_v6 = vrot.slane %v2899_v8, 4 }
 0x7ef   : > { %v2901_v14 = vadd.f32 %v2900_v6, %v2899_v8 }
 0x7f1   : > { %v2902_v36 = vrot.slane %v2901_v14, 2 }
 0x7f3   : > { %v2903_v10 = vadd.f32 %v2902_v36, %v2901_v14 }
 0x7f5   : > { %v2904_v47 = vrot.slane %v2903_v10, 1 }
 0x7f7   : > { %v2905_v56 = vadd.f32 %v2904_v47, %v2903_v10 }
 0x7f9   : > { %v2906_v22 = vmul.f32 0.015625, %v2905_v56 }
 0x7fb   : > { %v2907_v33 = vsub.f32 %v5274_v48, %v2906_v22  ;;  %v2908_v17 = vsub.f32 %v5277_v53, %v2906_v22  ;;  %v2909_v39 = vsub.f32 %v5280_v55, %v2906_v22  ;;  %v2910_v19 = vsub.f32 %v5284_v27, %v2906_v22 }
 0x7fc   : > { %v2911_v11 = vsub.f32 %v5292_v60, %v2906_v22  ;;  %v2912_v16 = vsub.f32 %v5298_v13, %v2906_v22  ;;  %v2913_v59 = vsub.f32 %v5303_v51, %v2906_v22  ;;  %v2914_v31 = vsub.f32 %v5308_v43, %v2906_v22 }
 0x7fd   : > { %v2915_v42 = vmul.f32 %v2907_v33, %v2907_v33  ;;  %v2916_v34 = vmul.f32 %v2908_v17, %v2908_v17  ;;  %v2917_v2 = vmul.f32 %v2909_v39, %v2909_v39  ;;  %v2918_v3 = vmul.f32 %v2910_v19, %v2910_v19 }
 0x7fe   : > { %v2919_v49 = vmul.f32 %v2911_v11, %v2911_v11  ;;  %v2920_v0 = vmul.f32 %v2912_v16, %v2912_v16  ;;  %v2921_v15 = vmul.f32 %v2913_v59, %v2913_v59  ;;  %v2922_v38 = vmul.f32 %v2914_v31, %v2914_v31 }
 0x7ff   : > { %v2923_v9 = vsel %vm681_vm2, %v2915_v42, 0.0  ;;  %v2924_v61 = vsel %vm681_vm2, %v2916_v34, 0.0  ;;  %v2926_v28 = vsel %vm681_vm2, %v2917_v2, 0.0  ;;  %v2928_v37 = vsel %vm681_vm2, %v2918_v3, 0.0 }
 0x800   : > { %v2925_v52 = vadd.f32 %v2924_v61, %v2923_v9  ;;  %v2930_v50 = vsel %vm681_vm2, %v2919_v49, 0.0  ;;  %v2932_v12 = vsel %vm681_vm2, %v2920_v0, 0.0  ;;  %v2934_v4 = vsel %vm681_vm2, %v2921_v15, 0.0  ;;  %v3836_v0 = vld [vmem:[%s5454_s16 + $0x1] ss:$0 sm:$0xff] }
 0x801   : > { %v2936_v24 = vsel %vm681_vm2, %v2922_v38, 0.0 }
 0x802   : > { %v2927_v26 = vadd.f32 %v2926_v28, %v2925_v52 }
 0x804   : > { %v2929_v54 = vadd.f32 %v2928_v37, %v2927_v26 }
 0x806   : > { %v2931_v45 = vadd.f32 %v2930_v50, %v2929_v54 }
 0x808   : > { %v2933_v7 = vadd.f32 %v2932_v12, %v2931_v45 }
 0x80a   : > { %v2935_v18 = vadd.f32 %v2934_v4, %v2933_v7 }
 0x80c   : > { %v2937_v41 = vadd.f32 %v2936_v24, %v2935_v18 }
 0x80e   : > { %v2938_v23 = vrot.slane %v2937_v41, 4 }
 0x810   : > { %v2939_v62 = vadd.f32 %v2938_v23, %v2937_v41 }
 0x812   : > { %v2940_v57 = vrot.slane %v2939_v62, 2 }
 0x814   : > { %v2941_v32 = vadd.f32 %v2940_v57, %v2939_v62 }
 0x816   : > { %v2942_v25 = vrot.slane %v2941_v32, 1 }
 0x818   : > { %v2943_v29 = vadd.f32 %v2942_v25, %v2941_v32 }
 0x81a   : > { %v2944_v30 = vmul.f32 0.015625, %v2943_v29 }
 0x81c   : > { %v2945_v40 = vadd.f32 1e-05, %v2944_v30 }
 0x81e   : > { %4203 = vrsqrt.f32 %v2945_v40 }
 0x828   : > { %v4204_v44 = vpop.eup %4203 }
 0x829   : > { %v2947_v1 = vmul.f32 %v4204_v44, %v2907_v33  ;;  %v2948_v35 = vmul.f32 %v4204_v44, %v2908_v17  ;;  %v2949_v20 = vmul.f32 %v4204_v44, %v2909_v39  ;;  %v2950_v21 = vmul.f32 %v4204_v44, %v2910_v19 }
 0x82a   : > { %v2951_v5 = vmul.f32 %v4204_v44, %v2911_v11  ;;  %v2952_v8 = vmul.f32 %v4204_v44, %v2912_v16  ;;  %v2953_v22 = vmul.f32 %v4204_v44, %v2913_v59  ;;  %v2954_v42 = vmul.f32 %v4204_v44, %v2914_v31 }
 0x82b   : > { %v2961_v6 = vmul.f32 %v3827_v46, %v2947_v1  ;;  %v2962_v14 = vmul.f32 %v3827_v46, %v2948_v35  ;;  %v2963_v36 = vmul.f32 %v3827_v46, %v2949_v20  ;;  %v2964_v10 = vmul.f32 %v3827_v46, %v2950_v21 }
 0x82c   : > { %v2965_v47 = vmul.f32 %v3827_v46, %v2951_v5  ;;  %v2966_v56 = vmul.f32 %v3827_v46, %v2952_v8  ;;  %v2967_v61 = vmul.f32 %v3827_v46, %v2953_v22  ;;  %v2968_v52 = vmul.f32 %v3827_v46, %v2954_v42 }
 0x82d   : > { %v2975_v34 = vadd.f32 %v3828_v58, %v2961_v6  ;;  %v2976_v2 = vadd.f32 %v3828_v58, %v2962_v14  ;;  %v2977_v33 = vadd.f32 %v3828_v58, %v2963_v36  ;;  %v2978_v17 = vadd.f32 %v3828_v58, %v2964_v10 }
 0x82e   : > { %v2979_v39 = vadd.f32 %v3828_v58, %v2965_v47  ;;  %v2980_v19 = vadd.f32 %v3828_v58, %v2966_v56  ;;  %v3164_v16 = vsel %vm2756_vm0, %v5263_v63, 0  ;;  %v2981_v59 = vadd.f32 %v3828_v58, %v2967_v61  ;;  %v3829_v63 = vld [vmem:[%s5454_s16] ss:$0 sm:$0xff] }
 0x82f   : > { %v2983_v3 = vpack.c.bf16 %v2976_v2, %v2975_v34  ;;  %v2984_v9 = vpack.c.bf16 %v2978_v17, %v2977_v33  ;;  %v2982_v49 = vadd.f32 %v3828_v58, %v2968_v52 }
 0x830   : > { %v2985_v11 = vpack.c.bf16 %v2980_v19, %v2979_v39 }
 0x831   : > { %3994 = vmatprep.mubr.msk.bf16.mxu0 %vm681_vm2, %v2983_v3  ;;  %4004 = vmatprep.mubr.msk.bf16.mxu1 %vm681_vm2, %v2983_v3  ;;  %v2986_v28 = vpack.c.bf16 %v2982_v49, %v2981_v59 }
 0x832   : > { %3995 = vmatmul.mubr.msk.bf16.vlgmr.msra.gmra.mrb[8].mxu0 %vm681_vm2, %v2984_v9  ;;  %4005 = vmatmul.mubr.msk.bf16.vlgmr.msra.gmra.mrb[16].mxu1 %vm681_vm2, %v2984_v9 }
 0x833   : > { %3998 = vmatprep.mubr.msk.bf16.mxu0 %vm681_vm2, %v2985_v11  ;;  %4008 = vmatprep.mubr.msk.bf16.mxu1 %vm681_vm2, %v2985_v11 }
 0x834   : > { %4013 = vmatpush3.bf16.msra.mxu0 %v3164_v16  ;;  %v3843_v16 = vld [vmem:[%s5454_s16 + $0x2] ss:$0 sm:$0xff] }
 0x83a   : > { %3999 = vmatmul.mubr.msk.bf16.gmra.mrb[12].mxu0 %vm681_vm2, %v2986_v28  ;;  %4009 = vmatmul.mubr.msk.bf16.gmra.mrb[20].mxu1 %vm681_vm2, %v2986_v28 }
 0x83b   : > { %4014 = vmatprep.mubr.msk.bf16.mxu0 %vm681_vm2, %v2983_v3 }
 0x842   : > { %4015 = vmatmul.mubr.msk.bf16.vlgmr.msra.gmra.mrb[16].mxu0 %vm681_vm2, %v2984_v9 }
 0x843   : > { %4018 = vmatprep.mubr.msk.bf16.mxu0 %vm681_vm2, %v2985_v11 }
 0x84a   : > { %4019 = vmatmul.mubr.msk.bf16.gmra.mrb[20].mxu0 %vm681_vm2, %v2986_v28 }
 0x905   : > { %v3996_v26 = vpop.f32.mrb[8].mxu0  ;;  %v4006_v31 = vpop.f32.mrb[16].mxu1 }
 0x906   : > { %v3053_v37 = vadd.f32 %v3996_v26, %v3829_v63  ;;  %v3044_v54 = vpop.f32.mrb[9].mxu0  ;;  %v3122_v15 = vpop.f32.mrb[17].mxu1  ;;  %v3131_v12 = vadd.f32 %v4006_v31, %v3836_v0 }
 0x907   : > { %v3045_v50 = vadd.f32 %v3829_v63, %v3044_v54  ;;  %v3997_v45 = vpop.f32.mrb[10].mxu0  ;;  %v4007_v38 = vpop.f32.mrb[18].mxu1  ;;  %v3123_v41 = vadd.f32 %v3836_v0, %v3122_v15 }
 0x908   : > { %v3056_v7 = vadd.f32 %v3997_v45, %v3829_v63  ;;  %v3134_v4 = vadd.f32 %v4007_v38, %v3836_v0  ;;  %v3047_v18 = vpop.f32.mrb[11].mxu0  ;;  %v3125_v24 = vpop.f32.mrb[19].mxu1  ;;  %v5358_v57 = vmul.f32 0.35355338, %v3053_v37 }
 0x909   : > { %v3048_v23 = vadd.f32 %v3829_v63, %v3047_v18  ;;  %v3126_v62 = vadd.f32 %v3836_v0, %v3125_v24  ;;  %v3231_v29 = vmul.f32 0.35355338, %v3045_v50 }
 0x90a   : > { %v5360_v32 = vmul.f32 0.35355338, %v3056_v7  ;;  %v3244_v25 = vpack.c.bf16 %v3134_v4, %v3131_v12 }
 0x90b   : > { %v3232_v30 = vmul.f32 0.35355338, %v3048_v23  ;;  %v3243_v40 = vpack.c.bf16 %v3126_v62, %v3123_v41 }
 0x90c   : > { %v3240_v44 = vpack.c.bf16 %v5360_v32, %v5358_v57  ;;  %v3267_v59 = vsel %vm681_vm2, %v3244_v25, 0 }
 0x90d   : > { %v3239_v46 = vpack.c.bf16 %v3232_v30, %v3231_v29  ;;  %v4000_v1 = vpop.f32.mrb[12].mxu0  ;;  %v4010_v35 = vpop.f32.mrb[20].mxu1  ;;  %4068 = vmatprep.subr.msk.bf16.mxu1 %vm681_vm2, %v3243_v40  ;;  %v3264_v20 = vsel %vm681_vm2, %v3243_v40, 0 }
 0x90e   : > { %v3069_v21 = vadd.f32 %v4000_v1, %v3829_v63  ;;  %v3060_v58 = vpop.f32.mrb[13].mxu0  ;;  %v3138_v5 = vpop.f32.mrb[21].mxu1  ;;  %4023 = vmatpush3.bf16.xpose.msra.mxu1 %v3264_v20  ;;  %v3147_v36 = vadd.f32 %v4010_v35, %v3836_v0 }
 0x90f   : > { %v3061_v8 = vadd.f32 %v3829_v63, %v3060_v58  ;;  %v4001_v6 = vpop.f32.mrb[14].mxu0  ;;  %v4011_v14 = vpop.f32.mrb[22].mxu1  ;;  %4069 = vmatprep.subr.msk.bf16.mxu1 %vm681_vm2, %v3244_v25  ;;  %4030 = vmatprep.mubr.msk.bf16.mxu1 %vm681_vm2, %v3239_v46  ;;  %v3139_v42 = vadd.f32 %v3836_v0, %v3138_v5 }
 0x910   : > { %v3072_v10 = vadd.f32 %v4001_v6, %v3829_v63  ;;  %v3150_v47 = vadd.f32 %v4011_v14, %v3836_v0  ;;  %v3063_v56 = vpop.f32.mrb[15].mxu0  ;;  %v3141_v22 = vpop.f32.mrb[23].mxu1  ;;  %v3237_v33 = vmul.f32 0.35355338, %v3069_v21 }
 0x911   : > { %v3064_v34 = vadd.f32 %v3829_v63, %v3063_v56  ;;  %v3142_v2 = vadd.f32 %v3836_v0, %v3141_v22  ;;  %v3235_v19 = vmul.f32 0.35355338, %v3061_v8 }
 0x912   : > { %v3238_v17 = vmul.f32 0.35355338, %v3072_v10  ;;  %v3246_v39 = vpack.c.bf16 %v3150_v47, %v3147_v36 }
 0x913   : > { %v3236_v3 = vmul.f32 0.35355338, %v3064_v34  ;;  %v3245_v9 = vpack.c.bf16 %v3142_v2, %v3139_v42 }
 0x914   : > { %v3242_v61 = vpack.c.bf16 %v3238_v17, %v3237_v33  ;;  %v3273_v25 = vsel %vm681_vm2, %v3246_v39, 0 }
 0x915   : > { %v3241_v52 = vpack.c.bf16 %v3236_v3, %v3235_v19  ;;  %v4016_v11 = vpop.f32.mrb[16].mxu0  ;;  %v3270_v45 = vsel %vm681_vm2, %v3245_v9, 0 }
 0x916   : > { %v3200_v49 = vpop.f32.mrb[17].mxu0  ;;  %4025 = vmatpush3.bf16.xpose.msra.mxu1 %v3267_v59  ;;  %v3209_v63 = vadd.f32 %v4016_v11, %v3843_v16 }
 0x917   : > { %v4017_v28 = vpop.f32.mrb[18].mxu0  ;;  %4070 = vmatprep.subr.msk.bf16.mxu1 %vm681_vm2, %v3245_v9  ;;  %v3201_v0 = vadd.f32 %v3843_v16, %v3200_v49 }
 0x918   : > { %v3212_v26 = vadd.f32 %v4017_v28, %v3843_v16  ;;  %v3203_v31 = vpop.f32.mrb[19].mxu0 }
 0x919   : > { %v3204_v37 = vadd.f32 %v3843_v16, %v3203_v31 }
 0x91a   : > { %v3248_v54 = vpack.c.bf16 %v3212_v26, %v3209_v63 }
 0x91b   : > { %v3247_v15 = vpack.c.bf16 %v3204_v37, %v3201_v0 }
 0x91d   : > { %v4020_v50 = vpop.f32.mrb[20].mxu0  ;;  %4038 = vmatprep.subr.bf16.mxu0 %v3247_v15 }
 0x91e   : > { %v3216_v38 = vpop.f32.mrb[21].mxu0  ;;  %4027 = vmatpush3.bf16.xpose.msra.mxu1 %v3270_v45  ;;  %4039 = vmatpush3.bf16.msra.mxu0 %v3247_v15  ;;  %v3225_v7 = vadd.f32 %v4020_v50, %v3843_v16 }
 0x91f   : > { %v4021_v12 = vpop.f32.mrb[22].mxu0  ;;  %4071 = vmatprep.subr.msk.bf16.mxu1 %vm681_vm2, %v3246_v39  ;;  %4040 = vmatprep.subr.bf16.mxu0 %v3248_v54  ;;  %v3217_v24 = vadd.f32 %v3843_v16, %v3216_v38 }
 0x920   : > { %v3228_v4 = vadd.f32 %v4021_v12, %v3843_v16  ;;  %v3219_v18 = vpop.f32.mrb[23].mxu0 }
 0x921   : > { %v3220_v41 = vadd.f32 %v3843_v16, %v3219_v18 }
 0x922   : > { %v3250_v23 = vpack.c.bf16 %v3228_v4, %v3225_v7  ;;  %4041 = vmatpush3.bf16.msra.mxu0 %v3248_v54 }
 0x923   : > { %v3249_v62 = vpack.c.bf16 %v3220_v41, %v3217_v24 }
 0x925   : > { %4042 = vmatprep.subr.bf16.mxu0 %v3249_v62 }
 0x926   : > { %4029 = vmatpush3.bf16.xpose.msra.mxu1 %v3273_v25  ;;  %4043 = vmatpush3.bf16.msra.mxu0 %v3249_v62 }
 0x927   : > { %4044 = vmatprep.subr.bf16.mxu0 %v3250_v23 }
 0x92a   : > { %4045 = vmatpush3.bf16.msra.mxu0 %v3250_v23 }
 0x92d   : > { %4031 = vmatmul.mubr.msk.bf16.vlgmr.msra.gmra.mrb[24].mxu1 %vm681_vm2, %v3240_v44 }
 0x92e   : > { %4034 = vmatprep.mubr.msk.bf16.mxu1 %vm681_vm2, %v3241_v52 }
 0x935   : > { %4035 = vmatmul.mubr.msk.bf16.gmra.mrb[28].mxu1 %vm681_vm2, %v3242_v61 }
 0xa00   : > { %v4032_v29 = vpop.f32.mrb[24].mxu1 }
 0xa01   : > { %v3309_v30 = vpop.f32.mrb[25].mxu1  ;;  %v3346_v20 = vsel %vm1375_vm12, %v4032_v29, -inf }
 0xa02   : > { %v4033_v40 = vpop.f32.mrb[26].mxu1  ;;  %v3340_v46 = vsel %vm1375_vm12, %v3309_v30, -inf }
 0xa03   : > { %3341 = vmax.xlane.f32.xlu0 %v3340_v46  ;;  %v3312_v1 = vpop.f32.mrb[27].mxu1  ;;  %v3349_v21 = vsel %vm1375_vm12, %v4033_v40, -inf }
 0xa04   : > { %v3343_v35 = vsel %vm1375_vm12, %v3312_v1, -inf }
 0xa05   : > { %3344 = vmax.xlane.f32.xlu1 %v3343_v35 }
 0xa07   : > { %3347 = vmax.xlane.f32.xlu0 %v3346_v20 }
 0xa08   : > { %v4036_v57 = vpop.f32.mrb[28].mxu1 }
 0xa09   : > { %v3325_v32 = vpop.f32.mrb[29].mxu1  ;;  %v3358_v6 = vsel %vm1375_vm12, %v4036_v57, -inf }
 0xa0a   : > { %v4037_v44 = vpop.f32.mrb[30].mxu1  ;;  %v3352_v58 = vsel %vm1375_vm12, %v3325_v32, -inf }
 0xa0b   : > { %3350 = vmax.xlane.f32.xlu0 %v3349_v21  ;;  %3353 = vmax.xlane.f32.xlu1 %v3352_v58  ;;  %v3328_v5 = vpop.f32.mrb[31].mxu1  ;;  %v3361_v14 = vsel %vm1375_vm12, %v4037_v44, -inf }
 0xa0c   : > { %v3355_v8 = vsel %vm1375_vm12, %v3328_v5, -inf }
 0xa0f   : > { %3359 = vmax.xlane.f32.xlu1 %v3358_v6  ;;  %3356 = vmax.xlane.f32.xlu0 %v3355_v8 }
 0xa13   : > { %3362 = vmax.xlane.f32.xlu0 %v3361_v14 }
 0xa90   : > { %v3342_v36 = vpop.xlane.xlu0 %3341 }
 0xa91   : > { %v3364_v10 = vsub.f32 %v3309_v30, %v3342_v36 }
 0xa92   : > { %v3345_v47 = vpop.xlane.xlu1 %3344 }
 0xa93   : > { %v3372_v56 = vmul.f32 1.442695, %v3364_v10  ;;  %v3365_v22 = vsub.f32 %v3312_v1, %v3345_v47  ;;  %v2883_v1 = vld [vmem:[%s5455_s17] sm:$0xf] }
 0xa94   : > { %v3348_v42 = vpop.xlane.xlu0 %3347  ;;  %4072 = vmatprep.subr.msk.bf16.mxu0 %vm2756_vm0, %v2883_v1  ;;  %v3532_v35 = vsel %vm2756_vm0, %v2883_v1, 0 }
 0xa95   : > { %4205 = vpow2.f32 %v3372_v56  ;;  %v3374_v34 = vmul.f32 1.442695, %v3365_v22  ;;  %v3366_v2 = vsub.f32 %v4032_v29, %v3348_v42 }
 0xa97   : > { %4207 = vpow2.f32 %v3374_v34  ;;  %v3376_v33 = vmul.f32 1.442695, %v3366_v2 }
 0xa98   : > { %v3351_v17 = vpop.xlane.xlu0 %3350  ;;  %v3354_v39 = vpop.xlane.xlu1 %3353 }
 0xa99   : > { %4209 = vpow2.f32 %v3376_v33  ;;  %v3367_v19 = vsub.f32 %v4033_v40, %v3351_v17  ;;  %v3368_v3 = vsub.f32 %v3325_v32, %v3354_v39 }
 0xa9b   : > { %v3378_v9 = vmul.f32 1.442695, %v3367_v19  ;;  %v3380_v61 = vmul.f32 1.442695, %v3368_v3 }
 0xa9c   : > { %v3360_v52 = vpop.xlane.xlu1 %3359  ;;  %v3357_v11 = vpop.xlane.xlu0 %3356 }
 0xa9d   : > { %4211 = vpow2.f32 %v3378_v9  ;;  %v3370_v16 = vsub.f32 %v4036_v57, %v3360_v52  ;;  %v3369_v59 = vsub.f32 %v3328_v5, %v3357_v11 }
 0xa9e   : > { %4213 = vpow2.f32 %v3380_v61 }
 0xa9f   : > { %v4206_v49 = vpop.eup %4205  ;;  %v3384_v28 = vmul.f32 1.442695, %v3370_v16  ;;  %v3382_v63 = vmul.f32 1.442695, %v3369_v59 }
 0xaa0   : > { %v3363_v26 = vpop.xlane.xlu0 %3362  ;;  %v3388_v31 = vsel %vm1375_vm12, %v4206_v49, 0.0 }
 0xaa1   : > { %v4208_v0 = vpop.eup %4207  ;;  %4215 = vpow2.f32 %v3384_v28  ;;  %v3371_v37 = vsub.f32 %v4037_v44, %v3363_v26  ;;  %3389 = vadd.xlane.f32.xlu1 %v3388_v31 }
 0xaa2   : > { %4217 = vpow2.f32 %v3382_v63  ;;  %v3391_v54 = vsel %vm1375_vm12, %v4208_v0, 0.0  ;;  %v3412_v15 = vpack.c.bf16 %v4208_v0, %v4206_v49 }
 0xaa3   : > { %v4210_v50 = vpop.eup %4209  ;;  %v3386_v45 = vmul.f32 1.442695, %v3371_v37  ;;  %3392 = vadd.xlane.f32.xlu0 %v3391_v54  ;;  %v3856_v54 = vld [vmem:[%s5456_s18] ss:$0 sm:$0xff] }
 0xaa4   : > { %4046 = vmatprep.mubr.msk.bf16.mxu0 %vm1375_vm12, %v3412_v15  ;;  %v3394_v38 = vsel %vm1375_vm12, %v4210_v50, 0.0 }
 0xaa5   : > { %4219 = vpow2.f32 %v3386_v45  ;;  %3395 = vadd.xlane.f32.xlu1 %v3394_v38 }
 0xaa7   : > { %v4212_v12 = vpop.eup %4211 }
 0xaa8   : > { %v4214_v7 = vpop.eup %4213  ;;  %v3413_v4 = vpack.c.bf16 %v4212_v12, %v4210_v50  ;;  %v3397_v18 = vsel %vm1375_vm12, %v4212_v12, 0.0 }
 0xaa9   : > { %v3400_v24 = vsel %vm1375_vm12, %v4214_v7, 0.0  ;;  %3398 = vadd.xlane.f32.xlu0 %v3397_v18 }
 0xaaa   : > { %3401 = vadd.xlane.f32.xlu1 %v3400_v24  ;;  %4047 = vmatmul.mubr.msk.bf16.vlgmr.msra.gmra.mrb[24].mxu0 %vm1375_vm12, %v3413_v4 }
 0xaab   : > { %v4216_v41 = vpop.eup %4215  ;;  %4055 = vmatpush3.bf16.msra.mxu0 %v3532_v35 }
 0xaac   : > { %v4218_v23 = vpop.eup %4217  ;;  %v3406_v62 = vsel %vm1375_vm12, %v4216_v41, 0.0 }
 0xaad   : > { %v3403_v25 = vsel %vm1375_vm12, %v4218_v23, 0.0  ;;  %v3414_v29 = vpack.c.bf16 %v4218_v23, %v4214_v7 }
 0xaae   : > { %3407 = vadd.xlane.f32.xlu1 %v3406_v62  ;;  %3404 = vadd.xlane.f32.xlu0 %v3403_v25 }
 0xaaf   : > { %v4220_v30 = vpop.eup %4219  ;;  %4050 = vmatprep.mubr.msk.bf16.mxu0 %vm1375_vm12, %v3414_v29 }
 0xab0   : > { %v3409_v40 = vsel %vm1375_vm12, %v4220_v30, 0.0  ;;  %v3415_v46 = vpack.c.bf16 %v4220_v30, %v4216_v41 }
 0xab2   : > { %3410 = vadd.xlane.f32.xlu0 %v3409_v40  ;;  %4051 = vmatmul.mubr.msk.bf16.gmra.mrb[28].mxu0 %vm1375_vm12, %v3415_v46 }
 0xb2e   : > { %v3390_v20 = vpop.xlane.xlu1 %3389 }
 0xb2f   : > { %4221 = vrcp.f32 %v3390_v20 }
 0xb30   : > { %v3393_v57 = vpop.xlane.xlu0 %3392 }
 0xb32   : > { %v3396_v32 = vpop.xlane.xlu1 %3395 }
 0xb33   : > { %4223 = vrcp.f32 %v3396_v32 }
 0xb36   : > { %v3399_v44 = vpop.xlane.xlu0 %3398 }
 0xb37   : > { %v3402_v21 = vpop.xlane.xlu1 %3401  ;;  %4225 = vrcp.f32 %v3399_v44 }
 0xb38   : > { %4227 = vrcp.f32 %v3393_v57 }
 0xb39   : > { %4229 = vrcp.f32 %v3402_v21  ;;  %v4222_v6 = vpop.eup %4221 }
 0xb3b   : > { %v3405_v58 = vpop.xlane.xlu0 %3404  ;;  %v3408_v5 = vpop.xlane.xlu1 %3407 }
 0xb3c   : > { %4231 = vrcp.f32 %v3408_v5 }
 0xb3d   : > { %v4224_v36 = vpop.eup %4223 }
 0xb3f   : > { %v3411_v8 = vpop.xlane.xlu0 %3410 }
 0xb40   : > { %4233 = vrcp.f32 %v3411_v8 }
 0xb41   : > { %4235 = vrcp.f32 %v3405_v58  ;;  %v4226_v47 = vpop.eup %4225 }
 0xb42   : > { %v4228_v22 = vpop.eup %4227 }
 0xb43   : > { %v4230_v3 = vpop.eup %4229 }
 0xb46   : > { %v4232_v61 = vpop.eup %4231 }
 0xb4a   : > { %v4234_v11 = vpop.eup %4233 }
 0xb4b   : > { %v4236_v59 = vpop.eup %4235 }
 0xb7d   : > { %v4048_v14 = vpop.f32.mrb[24].mxu0 }
 0xb7e   : > { %v3462_v10 = vpop.f32.mrb[25].mxu0  ;;  %v3503_v42 = vmul.f32 %v4224_v36, %v4048_v14 }
 0xb7f   : > { %v4049_v56 = vpop.f32.mrb[26].mxu0  ;;  %v3501_v33 = vmul.f32 %v4222_v6, %v3462_v10 }
 0xb80   : > { %v3504_v34 = vmul.f32 %v4226_v47, %v4049_v56  ;;  %v3465_v2 = vpop.f32.mrb[27].mxu0 }
 0xb81   : > { %v3502_v17 = vmul.f32 %v4228_v22, %v3465_v2 }
 0xb82   : > { %v3510_v39 = vpack.c.bf16 %v3504_v34, %v3503_v42 }
 0xb83   : > { %v3509_v19 = vpack.c.bf16 %v3502_v17, %v3501_v33 }
 0xb85   : > { %v4052_v9 = vpop.f32.mrb[28].mxu0  ;;  %4056 = vmatprep.mubr.msk.bf16.mxu0 %vm681_vm2, %v3509_v19 }
 0xb86   : > { %v3478_v52 = vpop.f32.mrb[29].mxu0  ;;  %4057 = vmatmul.mubr.msk.bf16.vlgmr.msra.gmra.mrb[32].mxu0 %vm681_vm2, %v3510_v39  ;;  %v3507_v49 = vmul.f32 %v4232_v61, %v4052_v9 }
 0xb87   : > { %v4053_v16 = vpop.f32.mrb[30].mxu0  ;;  %v3505_v26 = vmul.f32 %v4230_v3, %v3478_v52 }
 0xb88   : > { %v3508_v28 = vmul.f32 %v4234_v11, %v4053_v16  ;;  %v3481_v63 = vpop.f32.mrb[31].mxu0 }
 0xb89   : > { %v3506_v31 = vmul.f32 %v4236_v59, %v3481_v63 }
 0xb8a   : > { %v3512_v0 = vpack.c.bf16 %v3508_v28, %v3507_v49 }
 0xb8b   : > { %v3511_v37 = vpack.c.bf16 %v3506_v31, %v3505_v26 }
 0xb8d   : > { %4060 = vmatprep.mubr.msk.bf16.mxu0 %vm681_vm2, %v3511_v37 }
 0xb8e   : > { %4061 = vmatmul.mubr.msk.bf16.gmra.mrb[36].mxu0 %vm681_vm2, %v3512_v0 }
 0xc59   : > { %v4058_v15 = vpop.f32.mrb[32].mxu0 }
 0xc5a   : > { %v3577_v50 = vadd.f32 %v4058_v15, %v3856_v54  ;;  %v3568_v45 = vpop.f32.mrb[33].mxu0 }
 0xc5b   : > { %v3569_v38 = vadd.f32 %v3856_v54, %v3568_v45  ;;  %v4059_v12 = vpop.f32.mrb[34].mxu0 }
 0xc5c   : > { %v3601_v7 = vadd.f32 %v3577_v50, %v5280_v55  ;;  %v3580_v4 = vadd.f32 %v4059_v12, %v3856_v54  ;;  %v3571_v18 = vpop.f32.mrb[35].mxu0 }
 0xc5d   : > { %v3599_v24 = vadd.f32 %v3569_v38, %v5274_v48  ;;  %v3572_v41 = vadd.f32 %v3856_v54, %v3571_v18 }
 0xc5e   : > { %3609 = vst.msk [vmem:[%s602_s3 + $0x10] sm:$0xff] %vm681_vm2, %v3601_v7  ;;  %v3602_v23 = vadd.f32 %v3580_v4, %v5284_v27 }
 0xc5f   : > { %3607 = vst.msk [vmem:[%s602_s3] sm:$0xff] %vm681_vm2, %v3599_v24  ;;  %v3600_v62 = vadd.f32 %v3572_v41, %v5277_v53 }
 0xc60   : > { %3610 = vst.msk [vmem:[%s602_s3 + $0x18] sm:$0xff] %vm681_vm2, %v3602_v23 }
 0xc61   : > { %3608 = vst.msk [vmem:[%s602_s3 + $0x8] sm:$0xff] %vm681_vm2, %v3600_v62  ;;  %v4062_v25 = vpop.f32.mrb[36].mxu0 }
 0xc62   : > { %v3593_v29 = vadd.f32 %v4062_v25, %v3856_v54  ;;  %v3584_v55 = vpop.f32.mrb[37].mxu0 }
 0xc63   : > { %v3585_v30 = vadd.f32 %v3856_v54, %v3584_v55  ;;  %v4063_v40 = vpop.f32.mrb[38].mxu0 }
 0xc64   : > { %v3605_v48 = vadd.f32 %v3593_v29, %v5303_v51  ;;  %v3596_v46 = vadd.f32 %v4063_v40, %v3856_v54  ;;  %v3587_v1 = vpop.f32.mrb[39].mxu0 }
 0xc65   : > { %v3603_v35 = vadd.f32 %v3585_v30, %v5292_v60  ;;  %v3588_v27 = vadd.f32 %v3856_v54, %v3587_v1 }
 0xc66   : > { %3613 = vst.msk [vmem:[%s602_s3 + $0x30] sm:$0xff] %vm681_vm2, %v3605_v48  ;;  %v3606_v53 = vadd.f32 %v3596_v46, %v5308_v43 }
 0xc67   : > { %3611 = vst.msk [vmem:[%s602_s3 + $0x20] sm:$0xff] %vm681_vm2, %v3603_v35  ;;  %v3604_v20 = vadd.f32 %v3588_v27, %v5298_v13 }
 0xc68   : > { %3614 = vst.msk [vmem:[%s602_s3 + $0x38] sm:$0xff] %vm681_vm2, %v3606_v53 }
 0xc69   : > { %3612 = vst.msk [vmem:[%s602_s3 + $0x28] sm:$0xff] %vm681_vm2, %v3604_v20 }
 0xc6a PF: > { %s29_s0 = sadd.s32 1, %s4251_s0  }
 0xc6b   : > { %p26_p4 = scmp.ge.s32.totalorder %s29_s0, 4  }
 0xc6d   :  { %28 = sbr.rel (!%p26_p4) target bundleno = 5 (0x5), region = 134 }

</bundles_post_ra>
